<compile_context>
chip_gen: v7x
topology: tpu7x:2x2x1
jax: 0.10.0
libtpu: 0.0.40
codegen_flags: <defaults>
</compile_context>

<pallas_src>
import jax
import jax.numpy as jnp
from jax import lax
from jax.experimental import pallas as pl
from jax.experimental.pallas import tpu as pltpu


def _attn_kernel(inv_scale_ref, q_ref, k_ref, v_ref, ot_ref):
    # Blocks: q/k/v are (Bg, S, D); ot is (Bg, D, S) (lane-dense output).
    scale = 1.0 / inv_scale_ref[0]            # single scalar reciprocal (scalar unit)
    q = q_ref[...] * scale                    # scale q (S*D elems) instead of qk (S*S)
    k = k_ref[...]
    v = v_ref[...]

    # s[b] = q[b] @ k[b]^T, contracting over D directly (no explicit transpose).
    s = lax.dot_general(
        q, k,
        dimension_numbers=(((2,), (2,)), ((0,), (0,))),
        preferred_element_type=jnp.float32)   # (Bg, Sq, Sk)

    # Numerically-stable softmax numerator; defer normalization past the PV matmul.
    m = jnp.max(s, axis=-1, keepdims=True)
    p = jnp.exp(s - m)                        # (Bg, Sq, Sk)
    l = jnp.sum(p, axis=-1)                   # (Bg, Sq)

    # dropout with p == 0.0 is the identity (matches F.dropout(p=0)); nothing to do.
    # TODO(synk): for nonzero dropout_p, build a keep mask with pltpu.prng_seed +
    # pltpu.prng_random_bits and scale by 1/(1-p).

    # Transposed output: o_t[b] = v[b]^T @ p[b]^T -> (Bg, D, Sq); last dim is 128-wide.
    acc = lax.dot_general(
        v, p,
        dimension_numbers=(((1,), (2,)), ((0,), (0,))),
        preferred_element_type=jnp.float32)   # (Bg, D, Sq)

    inv_l = pl.reciprocal(l, approx=True)     # EUP; normalizes S*D elems, not S*S
    ot_ref[...] = (acc * inv_l[:, None, :]).astype(ot_ref.dtype)


def sdpa_pallas(query, key, value, inverse_scale_factor, dropout_p=0.0):
    assert float(dropout_p) == 0.0, "kernel implements the p=0 (identity) dropout path"
    B, S, D = query.shape

    # 2-way batch split: amortizes per-step overhead while keeping both v7x
    # TensorCores busy via the "parallel" grid axis; falls back to 1 step if B is odd.
    G = 2 if (B % 2 == 0 and B >= 2) else 1
    Bg = B // G

    inv_scale = jnp.asarray(inverse_scale_factor, jnp.float32).reshape((1,))

    out_t = pl.pallas_call(
        _attn_kernel,
        out_shape=jax.ShapeDtypeStruct((B, D, S), query.dtype),  # transposed, lane-dense
        grid=(G,),
        in_specs=[
            pl.BlockSpec(memory_space=pltpu.MemorySpace.SMEM),     # scalar scale
            pl.BlockSpec((Bg, S, D), lambda g: (g, 0, 0)),          # query
            pl.BlockSpec((Bg, S, D), lambda g: (g, 0, 0)),          # key
            pl.BlockSpec((Bg, S, D), lambda g: (g, 0, 0)),          # value
        ],
        out_specs=pl.BlockSpec((Bg, D, S), lambda g: (g, 0, 0)),
        compiler_params=pltpu.CompilerParams(
            dimension_semantics=("parallel",)),
    )(inv_scale, query, key, value)

    # Tiny (≈32 KB) transpose back to the module's (B, S, D) layout on the XLA side.
    return jnp.swapaxes(out_t, 1, 2)


if __name__ == "__main__":
    # Shapes consistent with the module: (B, S, D) = (16, 128, 4)
    B, S, D = 16, 128, 4
    k0, k1, k2 = jax.random.split(jax.random.PRNGKey(0), 3)
    query = jax.random.normal(k0, (B, S, D), jnp.float32)
    key = jax.random.normal(k1, (B, S, D), jnp.float32)
    value = jax.random.normal(k2, (B, S, D), jnp.float32)
    inverse_scale_factor = jnp.float32(1.0)
    dropout_p = 0.0

    out = sdpa_pallas(query, key, value, inverse_scale_factor, dropout_p)
    out = jax.block_until_ready(out)

    # Pure-JAX reference check
    qk = jnp.einsum("bsd,btd->bst", query, key) / inverse_scale_factor
    ref = jnp.einsum("bst,btd->bsd", jax.nn.softmax(qk, axis=-1), value)
    assert out.shape == (B, S, D)
    # Slightly relaxed tolerance to accommodate the approx EUP reciprocal.
    assert jnp.allclose(out, ref, atol=2e-4, rtol=2e-3)

    print("KERNEL_OK")
</pallas_src>

<mosaic_0001>
module attributes {stable_mosaic.version = 11 : i64} {
  func.func @_attn_kernel(%arg0: i32, %arg1: memref<1xf32, #tpu.memory_space<smem>>, %arg2: memref<8x128x4xf32, #tpu.memory_space<vmem>>, %arg3: memref<8x128x4xf32, #tpu.memory_space<vmem>>, %arg4: memref<8x128x4xf32, #tpu.memory_space<vmem>>, %arg5: memref<8x4x128xf32, #tpu.memory_space<vmem>>) attributes {dimension_semantics = [#tpu.dimension_semantics<parallel>], iteration_bounds = array<i64: 2>, scalar_prefetch = 0 : i64, scratch_operands = 0 : i64, tpu.core_type = #tpu.core_type<tc>, window_params = [{transform_indices = @transform_0, window_bounds = array<i64: 1>}, {transform_indices = @transform_1, window_bounds = array<i64: 8, 128, 4>}, {transform_indices = @transform_2, window_bounds = array<i64: 8, 128, 4>}, {transform_indices = @transform_3, window_bounds = array<i64: 8, 128, 4>}, {transform_indices = @transform_4, window_bounds = array<i64: 8, 4, 128>}]} {
    %c0 = arith.constant 0 : index
    %0 = memref.load %arg1[%c0] : memref<1xf32, #tpu.memory_space<smem>>
    %cst = arith.constant 1.000000e+00 : f32
    %1 = arith.divf %cst, %0 : f32
    %c0_0 = arith.constant 0 : index
    %c0_1 = arith.constant 0 : index
    %c0_2 = arith.constant 0 : index
    %2 = vector.load %arg2[%c0_0, %c0_1, %c0_2] : memref<8x128x4xf32, #tpu.memory_space<vmem>>, vector<8x128x4xf32>
    %3 = vector.broadcast %1 : f32 to vector<8x128x4xf32>
    %4 = arith.mulf %2, %3 : vector<8x128x4xf32>
    %c0_3 = arith.constant 0 : index
    %c0_4 = arith.constant 0 : index
    %c0_5 = arith.constant 0 : index
    %5 = vector.load %arg3[%c0_3, %c0_4, %c0_5] : memref<8x128x4xf32, #tpu.memory_space<vmem>>, vector<8x128x4xf32>
    %c0_6 = arith.constant 0 : index
    %c0_7 = arith.constant 0 : index
    %c0_8 = arith.constant 0 : index
    %6 = vector.load %arg4[%c0_6, %c0_7, %c0_8] : memref<8x128x4xf32, #tpu.memory_space<vmem>>, vector<8x128x4xf32>
    %cst_9 = arith.constant dense<0.000000e+00> : vector<8x128x128xf32>
    %7 = tpu.matmul %4, %5, %cst_9 {dimension_numbers = #tpu.dot_dimension_numbers<[2], [2], [1], [1], [0, 0, 0, 1, 1, 1], [0], [0]>} : vector<8x128x4xf32>, vector<8x128x4xf32>, vector<8x128x128xf32> -> vector<8x128x128xf32>
    %cst_10 = arith.constant dense<0xFF800000> : vector<8x128xf32>
    %8 = vector.multi_reduction <maximumf>, %7, %cst_10 [2] : vector<8x128x128xf32> to vector<8x128xf32>
    %9 = vector.shape_cast %8 : vector<8x128xf32> to vector<8x128x1xf32>
    %10 = vector.broadcast %9 : vector<8x128x1xf32> to vector<8x128x128xf32>
    %11 = arith.subf %7, %10 : vector<8x128x128xf32>
    %12 = math.exp %11 : vector<8x128x128xf32>
    %cst_11 = arith.constant dense<0.000000e+00> : vector<8x128xf32>
    %13 = vector.multi_reduction <add>, %12, %cst_11 [2] : vector<8x128x128xf32> to vector<8x128xf32>
    %cst_12 = arith.constant dense<0.000000e+00> : vector<8x4x128xf32>
    %14 = tpu.matmul %6, %12, %cst_12 {dimension_numbers = #tpu.dot_dimension_numbers<[1], [2], [2], [1], [0, 0, 0, 2, 1, 1], [0], [0]>} : vector<8x128x4xf32>, vector<8x128x128xf32>, vector<8x4x128xf32> -> vector<8x4x128xf32>
    %15 = tpu.reciprocal %13 {approx = true} : vector<8x128xf32> -> vector<8x128xf32>
    %16 = vector.shape_cast %15 : vector<8x128xf32> to vector<8x1x128xf32>
    %17 = vector.broadcast %16 : vector<8x1x128xf32> to vector<8x4x128xf32>
    %18 = arith.mulf %14, %17 : vector<8x4x128xf32>
    %c0_13 = arith.constant 0 : index
    %c0_14 = arith.constant 0 : index
    %c0_15 = arith.constant 0 : index
    %19 = vector.load %arg5[%c0_13, %c0_14, %c0_15] : memref<8x4x128xf32, #tpu.memory_space<vmem>>, vector<8x4x128xf32>
    tpu.vector_store %arg5[%c0_13, %c0_14, %c0_15], %18 {strides = array<i32>} : memref<8x4x128xf32, #tpu.memory_space<vmem>>, vector<8x4x128xf32>,
    return
  }
  func.func @transform_0(%arg0: i32) -> i32 {
    %c0_i32 = arith.constant 0 : i32
    %c0_i32_0 = arith.constant 0 : i32
    return %c0_i32 : i32
  }
  func.func @transform_1(%arg0: i32) -> (i32, i32, i32) {
    %c0_i32 = arith.constant 0 : i32
    %c0_i32_0 = arith.constant 0 : i32
    %c0_i32_1 = arith.constant 0 : i32
    return %arg0, %c0_i32, %c0_i32_0 : i32, i32, i32
  }
  func.func @transform_2(%arg0: i32) -> (i32, i32, i32) {
    %c0_i32 = arith.constant 0 : i32
    %c0_i32_0 = arith.constant 0 : i32
    %c0_i32_1 = arith.constant 0 : i32
    return %arg0, %c0_i32, %c0_i32_0 : i32, i32, i32
  }
  func.func @transform_3(%arg0: i32) -> (i32, i32, i32) {
    %c0_i32 = arith.constant 0 : i32
    %c0_i32_0 = arith.constant 0 : i32
    %c0_i32_1 = arith.constant 0 : i32
    return %arg0, %c0_i32, %c0_i32_0 : i32, i32, i32
  }
  func.func @transform_4(%arg0: i32) -> (i32, i32, i32) {
    %c0_i32 = arith.constant 0 : i32
    %c0_i32_0 = arith.constant 0 : i32
    %c0_i32_1 = arith.constant 0 : i32
    return %arg0, %c0_i32, %c0_i32_0 : i32, i32, i32
  }
}

</mosaic_0001>

<bundles_post_ra>
// kernel: tpu_custom_call.1
= control target key start
LH: loop header
LB: loop body
LE: loop exit
PB: predicated region body
PF: predicated region fallthrough
CT: control target
= control target key end

     0   :  { %s11181_s0 = inlined_call_operand.<no memory space> [shape: f32[1], index: 0, kind: input, shape index: {}]   ;;  %s11182_s1 = inlined_call_operand.vmem [shape: f32[16,128,4], index: 1, kind: input, shape index: {}]   ;;  %s11183_s2 = inlined_call_operand.vmem [shape: f32[16,128,4], index: 2, kind: input, shape index: {}]   ;;  %s11184_s3 = inlined_call_operand.vmem [shape: f32[16,128,4], index: 3, kind: input, shape index: {}]   ;;  %s11185_s4 = inlined_call_operand.hbm [shape: f32[16,4,128], index: 4, kind: output, shape index: {}]  }
   0x1   :  { %9 = sst [smem:[#allocation2]] %s11181_s0 }
   0x2   :  { %10 = vsyncpa [#allocation4], 0 }
   0x3   :  { %12 = vsyncpa [#allocation4 + $0x1], 0  ;;  %s8254_s17 = smov 0   ;;  %s8256_s18 = smov 0  }
   0x4   :  { %s8258_s19 = smov 0   ;;  %s8260_s20 = smov 0  }
   0x5 LB: > { %s8275_s0 = sadd.s32 4294967295, %s8218_s20   ;;  %s5473_s21 = sadd.s32 4294967294, %s8218_s20   ;;  %s8218_s20 = sphi %s8260_s20, %s11699_s20   ;;  %s8214_s19 = sphi %s8258_s19, %s11698_s19   ;;  %s8210_s18 = sphi %s8256_s18, %s11697_s18   ;;  %s8206_s17 = sphi %s8254_s17, %s11696_s17  }
   0x6   : > { %s8279_s22 = sadd.s32 1, %s8218_s20   ;;  %s124_s23 = sadd.s32 1, %s8214_s19 }
   0x7   : > { %s121_s24 = ssub.s32 %s8218_s20, %s8279_s22  ;;  %p134_p0 = scmp.ne.s32.totalorder %s8214_s19, %s8210_s18 }
   0x8   : > { %p122_p1 = scmp.eq.s32.totalorder %s121_s24, 0  ;;  %p135_p2 = scmp.eq.s32.totalorder %s8275_s0, 1 }
   0x9   : > { %p140_p3 = scmp.ne.s32.totalorder %s8210_s18, %s8206_s17  ;;  %p141_p4 = scmp.eq.s32.totalorder %s5473_s21, 1 }
   0xa   : > { %s8290_s25 = scalar_select %p122_p1, %s8214_s19, %s124_s23  }
   0xb   : > { %p8292_p5 = por %p135_p2, %p134_p0  ;;  %p8296_p6 = por %p141_p4, %p140_p3 }
   0xc   : > { %p5476_p7 = scmp.ge.s32.totalorder %s8218_s20, 1  ;;  %p192_p8 = scmp.lt.s32.totalorder %s8218_s20, 3 }
   0xe   : > { %p193_p9 = pnand %p5476_p7, %p192_p8 }
  0x10   : > { %196 = sbr.rel (%p193_p9) target bundleno = 1142 (0x476), region = 36 }
  0x17   : > { %s5478_s28 = sshll.u32 %s8275_s0, 3  ;;  %s253_s29 = sld [smem:[#allocation2]]  ;;  %vm770_vm0 = vcmask 31744   ;;  %vm8221_vm2 = vmmov 0   ;;  %vm4678_vm3 = vcmask 130112   ;;  %vm4685_vm4 = vcmask 195712  }
  0x18   : > { %p232_p10 = scmp.lt.s32.totalorder %s5478_s28, 15  ;;  %vm8313_vm1 = vmpackc.low %vm770_vm0, %vm770_vm0  ;;  %vm4692_vm5 = vcmask 261312   ;;  %vm4699_vm6 = vcmask 326912   ;;  %vm4706_vm7 = vcmask 392512   ;;  %vm4713_vm8 = vcmask 458112   ;;  %s228_s15 = sand.u32 1, %s8210_s18  }
  0x19   : > { %vm4720_vm9 = vcmask 523712   ;;  %vm4727_vm10 = vcmask 589312   ;;  %vm4734_vm11 = vcmask 654912   ;;  %vm4741_vm12 = vcmask 720512   ;;  %s5477_s16 = sshll.u32 %s228_s15, 5  ;;  %s5751_s23 = sshll.u32 %s8275_s0, 9 }
  0x1a   : > { %s11701_s28 = smov (!%p232_p10, %s5478_s28), 15  ;;  %vm4748_vm13 = vcmask 786112   ;;  %vm4755_vm14 = vcmask 851712   ;;  %vm4762_vm15 = vcmask 917312   ;;  %s10767_s21 = scalar_lea.vmem [#allocation3], %s5477_s16 }
  0x1b   : > { %s8303_s30 = sshll.u32 %s11701_s28, 7  ;;  %s5387_s24 = sshll.u32 %s10767_s21, 4  ;;  %s11135_s24 = int_to_ptr.vmem [resolvable:$true] %s5387_s24 }
  0x1c   : > { %s8309_s7 = scalar_lea.vmem %s11183_s2, %s8303_s30  ;;  %s8369_s10 = scalar_lea.vmem %s11184_s3, %s8303_s30 }
  0x1d   : > { %v254_v1 = vstv %s253_s29  ;;  %v514_v2 = vld [vmem:[%s8309_s7] sm:$0xff]  ;;  %v515_v3 = vld [vmem:[%s8309_s7 + $0x8] sm:$0xff]  ;;  %v516_v7 = vld [vmem:[%s8309_s7 + $0x10] sm:$0xff]  ;;  %s8437_s13 = scalar_lea.vmem %s11182_s1, %s8303_s30  ;;  %s11133_s30 = scalar_lea.hbm %s11185_s4, %s5751_s23 }
  0x1e   : > { %v530_v4 = vld [vmem:[%s8309_s7 + $0x80] sm:$0xff]  ;;  %7642 = vrcp.f32 %v254_v1  ;;  %v6872_v5 = vpack.c.bf16 %v515_v3, %v514_v2  ;;  %v531_v6 = vld [vmem:[%s8309_s7 + $0x88] sm:$0xff]  ;;  %v517_v8 = vld [vmem:[%s8309_s7 + $0x18] sm:$0xff]  ;;  %s11140_s0 = scalar_lea.sflag [#allocation4], %s228_s15  ;;  %s8156_s5 = scalar_lea.vmem %s11135_s24, 512 }
  0x1f   : > { %v6920_v9 = vpack.c.bf16 %v531_v6, %v530_v4  ;;  %v6878_v10 = vpack.c.bf16 %v517_v8, %v516_v7  ;;  %v532_v11 = vld [vmem:[%s8309_s7 + $0x90] sm:$0xff]  ;;  %v533_v12 = vld [vmem:[%s8309_s7 + $0x98] sm:$0xff]  ;;  %v518_v14 = vld [vmem:[%s8309_s7 + $0x20] sm:$0xff]  ;;  %p8157_p11 = scmp.ne.s32.totalorder %s11135_s24, %s8156_s5  ;;  %s8223_s6 = smov [#allocation3]  }
  0x20   : > { %6874 = vmatprep.subr.msk.bf16.mxu0 %vm8313_vm1, %v6872_v5  ;;  %v6926_v13 = vpack.c.bf16 %v533_v12, %v532_v11  ;;  %v519_v15 = vld [vmem:[%s8309_s7 + $0x28] sm:$0xff]  ;;  %v534_v16 = vld [vmem:[%s8309_s7 + $0xa0] sm:$0xff]  ;;  %v520_v21 = vld [vmem:[%s8309_s7 + $0x30] sm:$0xff] }
  0x21   : > { %6922 = vmatprep.subr.msk.bf16.mxu1 %vm8313_vm1, %v6920_v9  ;;  %6877 = vmatpush3.bf16.xpose.msk.msra.mxu0 %vm8313_vm1, %v6872_v5  ;;  %v535_v17 = vld [vmem:[%s8309_s7 + $0xa8] sm:$0xff]  ;;  %v6884_v18 = vpack.c.bf16 %v519_v15, %v518_v14  ;;  %v521_v22 = vld [vmem:[%s8309_s7 + $0x38] sm:$0xff]  ;;  %v536_v23 = vld [vmem:[%s8309_s7 + $0xb0] sm:$0xff]  ;;  %p8158_p12 = pnand %p8157_p11, %p8292_p5 }
  0x22   : > { %6925 = vmatpush3.bf16.xpose.msk.msra.mxu1 %vm8313_vm1, %v6920_v9  ;;  %6880 = vmatprep.subr.msk.bf16.mxu0 %vm8313_vm1, %v6878_v10  ;;  %v6932_v20 = vpack.c.bf16 %v535_v17, %v534_v16  ;;  %v537_v24 = vld [vmem:[%s8309_s7 + $0xb8] sm:$0xff]  ;;  %v6890_v25 = vpack.c.bf16 %v521_v22, %v520_v21  ;;  %v522_v27 = vld [vmem:[%s8309_s7 + $0x40] sm:$0xff]  ;;  %v523_v28 = vld [vmem:[%s8309_s7 + $0x48] sm:$0xff] }
  0x23   : > { %6928 = vmatprep.subr.msk.bf16.mxu1 %vm8313_vm1, %v6926_v13  ;;  %v6938_v26 = vpack.c.bf16 %v537_v24, %v536_v23  ;;  %v538_v29 = vld [vmem:[%s8309_s7 + $0xc0] sm:$0xff]  ;;  %v539_v30 = vld [vmem:[%s8309_s7 + $0xc8] sm:$0xff]  ;;  %v6896_v31 = vpack.c.bf16 %v523_v28, %v522_v27  ;;  %v524_v33 = vld [vmem:[%s8309_s7 + $0x50] sm:$0xff]  ;;  %p8159_p13 = pneg %p8158_p12 }
  0x24   : > { %v6944_v32 = vpack.c.bf16 %v539_v30, %v538_v29  ;;  %v525_v34 = vld [vmem:[%s8309_s7 + $0x58] sm:$0xff]  ;;  %v540_v35 = vld [vmem:[%s8309_s7 + $0xd0] sm:$0xff]  ;;  %v642_v36 = vld [vmem:[%s8369_s10] sm:$0xff] }
  0x25   : > { %v658_v37 = vld [vmem:[%s8369_s10 + $0x80] sm:$0xff]  ;;  %v541_v38 = vld [vmem:[%s8309_s7 + $0xd8] sm:$0xff]  ;;  %v643_v40 = vld [vmem:[%s8369_s10 + $0x8] sm:$0xff]  ;;  %v6902_v42 = vpack.c.bf16 %v525_v34, %v524_v33 }
  0x26   : > { %v7494_v39 = vpack.i.bf16 %v658_v37, %v642_v36  ;;  %v659_v41 = vld [vmem:[%s8369_s10 + $0x88] sm:$0xff]  ;;  %v6950_v43 = vpack.c.bf16 %v541_v38, %v540_v35  ;;  %v644_v45 = vld [vmem:[%s8369_s10 + $0x10] sm:$0xff]  ;;  %v526_v47 = vld [vmem:[%s8309_s7 + $0x60] sm:$0xff] }
  0x27   : > { %v7496_v44 = vpack.i.bf16 %v659_v41, %v643_v40  ;;  %v660_v46 = vld [vmem:[%s8369_s10 + $0x90] sm:$0xff]  ;;  %v527_v48 = vld [vmem:[%s8309_s7 + $0x68] sm:$0xff]  ;;  %v542_v49 = vld [vmem:[%s8309_s7 + $0xe0] sm:$0xff] }
  0x28   : > { %v7643_v19 = vpop.eup %7642  ;;  %7495 = vxpose.xlu0.b32.start [1/16] (narrow) %v7494_v39, 8  ;;  %v7498_v50 = vpack.i.bf16 %v660_v46, %v644_v45  ;;  %v543_v51 = vld [vmem:[%s8309_s7 + $0xe8] sm:$0xff]  ;;  %v645_v52 = vld [vmem:[%s8369_s10 + $0x18] sm:$0xff]  ;;  %v6908_v54 = vpack.c.bf16 %v527_v48, %v526_v47  ;;  %v646_v57 = vld [vmem:[%s8369_s10 + $0x20] sm:$0xff] }
  0x29   : > { %7448 = vpush %v7643_v19  ;;  %6883 = vmatpush3.bf16.xpose.msk.msra.mxu0 %vm8313_vm1, %v6878_v10  ;;  %v661_v53 = vld [vmem:[%s8369_s10 + $0x98] sm:$0xff]  ;;  %v6956_v55 = vpack.c.bf16 %v543_v51, %v542_v49  ;;  %v662_v58 = vld [vmem:[%s8369_s10 + $0xa0] sm:$0xff]  ;;  %v528_v59 = vld [vmem:[%s8309_s7 + $0x70] sm:$0xff] }
  0x2a   : > { %6931 = vmatpush3.bf16.xpose.msk.msra.mxu1 %vm8313_vm1, %v6926_v13  ;;  %6886 = vmatprep.subr.msk.bf16.mxu0 %vm8313_vm1, %v6884_v18  ;;  %v7500_v56 = vpack.i.bf16 %v661_v53, %v645_v52  ;;  %v529_v60 = vld [vmem:[%s8309_s7 + $0x78] sm:$0xff]  ;;  %v544_v61 = vld [vmem:[%s8309_s7 + $0xf0] sm:$0xff]  ;;  %v7502_v62 = vpack.i.bf16 %v662_v58, %v646_v57  ;;  %v647_v1 = vld [vmem:[%s8369_s10 + $0x28] sm:$0xff] }
  0x2b   : > { %6934 = vmatprep.subr.msk.bf16.mxu1 %vm8313_vm1, %v6932_v20  ;;  %v545_v63 = vld [vmem:[%s8309_s7 + $0xf8] sm:$0xff]  ;;  %v663_v2 = vld [vmem:[%s8369_s10 + $0xa8] sm:$0xff]  ;;  %v6914_v3 = vpack.c.bf16 %v529_v60, %v528_v59  ;;  %v648_v6 = vld [vmem:[%s8369_s10 + $0x30] sm:$0xff] }
  0x2c   : > { %7497 = vxpose.xlu0.b32.cont [2/16] (narrow) %v7496_v44, 8  ;;  %v6962_v4 = vpack.c.bf16 %v545_v63, %v544_v61  ;;  %v7504_v5 = vpack.i.bf16 %v663_v2, %v647_v1  ;;  %v664_v7 = vld [vmem:[%s8369_s10 + $0xb0] sm:$0xff]  ;;  %v546_v8 = vld [vmem:[%s8309_s7 + $0x100] sm:$0xff]  ;;  %v547_v9 = vld [vmem:[%s8309_s7 + $0x108] sm:$0xff] }
  0x2d   : > { %v7506_v10 = vpack.i.bf16 %v664_v7, %v648_v6  ;;  %v562_v11 = vld [vmem:[%s8309_s7 + $0x180] sm:$0xff]  ;;  %v563_v12 = vld [vmem:[%s8309_s7 + $0x188] sm:$0xff]  ;;  %v649_v13 = vld [vmem:[%s8369_s10 + $0x38] sm:$0xff]  ;;  %v6968_v15 = vpack.c.bf16 %v547_v9, %v546_v8 }
  0x2e   : > { %v665_v14 = vld [vmem:[%s8369_s10 + $0xb8] sm:$0xff]  ;;  %v7016_v16 = vpack.c.bf16 %v563_v12, %v562_v11  ;;  %v257_v17 = vld [vmem:[%s8437_s13] sm:$0xff]  ;;  %v274_v22 = vld [vmem:[%s8437_s13 + $0x88] sm:$0xff] }
  0x2f   : > { %v7508_v19 = vpack.i.bf16 %v665_v14, %v649_v13  ;;  %v548_v27 = vld [vmem:[%s8309_s7 + $0x110] sm:$0xff]  ;;  %v549_v28 = vld [vmem:[%s8309_s7 + $0x118] sm:$0xff]  ;;  %v261_v38 = vld [vmem:[%s8437_s13 + $0x20] sm:$0xff] }
  0x30   : > { %7499 = vxpose.xlu0.b32.cont [3/16] (narrow) %v7498_v50, 8  ;;  %v275_v30 = vld [vmem:[%s8437_s13 + $0x90] sm:$0xff]  ;;  %v260_v34 = vld [vmem:[%s8437_s13 + $0x18] sm:$0xff]  ;;  %v6974_v36 = vpack.c.bf16 %v549_v28, %v548_v27  ;;  %v650_v40 = vld [vmem:[%s8369_s10 + $0x40] sm:$0xff] }
  0x31   : > { %6889 = vmatpush3.bf16.xpose.msk.msra.mxu0 %vm8313_vm1, %v6884_v18  ;;  %v273_v18 = vld [vmem:[%s8437_s13 + $0x80] sm:$0xff]  ;;  %v276_v35 = vld [vmem:[%s8437_s13 + $0x98] sm:$0xff]  ;;  %v262_v46 = vld [vmem:[%s8437_s13 + $0x28] sm:$0xff] }
  0x32   : > { %6937 = vmatpush3.bf16.xpose.msk.msra.mxu1 %vm8313_vm1, %v6932_v20  ;;  %6892 = vmatprep.subr.msk.bf16.mxu0 %vm8313_vm1, %v6890_v25  ;;  %v258_v20 = vld [vmem:[%s8437_s13 + $0x8] sm:$0xff]  ;;  %v666_v41 = vld [vmem:[%s8369_s10 + $0xc0] sm:$0xff]  ;;  %v263_v50 = vld [vmem:[%s8437_s13 + $0x30] sm:$0xff] }
  0x33   : > { %6940 = vmatprep.subr.msk.bf16.mxu1 %vm8313_vm1, %v6938_v26  ;;  %v278_v47 = vld [vmem:[%s8437_s13 + $0xa8] sm:$0xff]  ;;  %v7510_v48 = vpack.i.bf16 %v666_v41, %v650_v40  ;;  %v550_v51 = vld [vmem:[%s8309_s7 + $0x120] sm:$0xff]  ;;  %v279_v53 = vld [vmem:[%s8437_s13 + $0xb0] sm:$0xff] }
  0x34   : > { %7501 = vxpose.xlu0.b32.cont [4/16] (narrow) %v7500_v56, 8  ;;  %v551_v52 = vld [vmem:[%s8309_s7 + $0x128] sm:$0xff]  ;;  %v264_v59 = vld [vmem:[%s8437_s13 + $0x38] sm:$0xff]  ;;  %v265_v2 = vld [vmem:[%s8437_s13 + $0x40] sm:$0xff] }
  0x35   : > { %v6980_v60 = vpack.c.bf16 %v551_v52, %v550_v51  ;;  %v651_v61 = vld [vmem:[%s8369_s10 + $0x48] sm:$0xff]  ;;  %v280_v1 = vld [vmem:[%s8437_s13 + $0xb8] sm:$0xff]  ;;  %v267_v12 = vld [vmem:[%s8437_s13 + $0x50] sm:$0xff] }
  0x36   : > { %v266_v9 = vld [vmem:[%s8437_s13 + $0x48] sm:$0xff]  ;;  %v552_v13 = vld [vmem:[%s8309_s7 + $0x130] sm:$0xff]  ;;  %v553_v14 = vld [vmem:[%s8309_s7 + $0x138] sm:$0xff] }
  0x37   : > { %v269_v28 = vld [vmem:[%s8437_s13 + $0x60] sm:$0xff]  ;;  %v271_v41 = vld [vmem:[%s8437_s13 + $0x70] sm:$0xff]  ;;  %v288_v51 = vld [vmem:[%s8437_s13 + $0xf8] sm:$0xff] }
  0x38   : > { %7503 = vxpose.xlu0.b32.cont [5/16] (narrow) %v7502_v62, 8  ;;  %v667_v62 = vld [vmem:[%s8369_s10 + $0xc8] sm:$0xff] }
  0x39   : > { %6895 = vmatpush3.bf16.xpose.msk.msra.mxu0 %vm8313_vm1, %v6890_v25  ;;  %v7512_v6 = vpack.i.bf16 %v667_v62, %v651_v61 }
  0x3a   : > { %6943 = vmatpush3.bf16.xpose.msk.msra.mxu1 %vm8313_vm1, %v6938_v26  ;;  %6898 = vmatprep.subr.msk.bf16.mxu0 %vm8313_vm1, %v6896_v31  ;;  %v259_v26 = vld [vmem:[%s8437_s13 + $0x10] sm:$0xff] }
  0x3b   : > { %6946 = vmatprep.subr.msk.bf16.mxu1 %vm8313_vm1, %v6944_v32 }
  0x3c   : > { %7505 = vxpose.xlu0.b32.cont [6/16] (narrow) %v7504_v5, 8 }
  0x40   : > { %7507 = vxpose.xlu0.b32.cont [7/16] (narrow) %v7506_v10, 8  ;;  %v282_v10 = vld [vmem:[%s8437_s13 + $0xc8] sm:$0xff] }
  0x41   : > { %6901 = vmatpush3.bf16.xpose.msk.msra.mxu0 %vm8313_vm1, %v6896_v31  ;;  %v564_v31 = vld [vmem:[%s8309_s7 + $0x190] sm:$0xff] }
  0x42   : > { %6949 = vmatpush3.bf16.xpose.msk.msra.mxu1 %vm8313_vm1, %v6944_v32  ;;  %6904 = vmatprep.subr.msk.bf16.mxu0 %vm8313_vm1, %v6902_v42  ;;  %v565_v32 = vld [vmem:[%s8309_s7 + $0x198] sm:$0xff] }
  0x43   : > { %6952 = vmatprep.subr.msk.bf16.mxu1 %vm8313_vm1, %v6950_v43  ;;  %v7022_v39 = vpack.c.bf16 %v565_v32, %v564_v31  ;;  %v690_v31 = vld [vmem:[%s8369_s10 + $0x180] sm:$0xff] }
  0x44   : > { %7509 = vxpose.xlu0.b32.cont [8/16] (narrow) %v7508_v19, 8  ;;  %v268_v19 = vld [vmem:[%s8437_s13 + $0x58] sm:$0xff]  ;;  %v285_v32 = vld [vmem:[%s8437_s13 + $0xe0] sm:$0xff] }
  0x48   : > { %7511 = vxpose.xlu0.b32.cont [9/16] (narrow) %v7510_v48, 8  ;;  %v272_v48 = vld [vmem:[%s8437_s13 + $0x78] sm:$0xff] }
  0x49   : > { %6907 = vmatpush3.bf16.xpose.msk.msra.mxu0 %vm8313_vm1, %v6902_v42  ;;  %v277_v42 = vld [vmem:[%s8437_s13 + $0xa0] sm:$0xff] }
  0x4a   : > { %6955 = vmatpush3.bf16.xpose.msk.msra.mxu1 %vm8313_vm1, %v6950_v43  ;;  %6910 = vmatprep.subr.msk.bf16.mxu0 %vm8313_vm1, %v6908_v54 }
  0x4b   : > { %6958 = vmatprep.subr.msk.bf16.mxu1 %vm8313_vm1, %v6956_v55 }
  0x4c   : > { %7513 = vxpose.xlu0.b32.cont [10/16] (narrow) %v7512_v6, 8  ;;  %v556_v6 = vld [vmem:[%s8309_s7 + $0x150] sm:$0xff] }
  0x51   : > { %6913 = vmatpush3.bf16.xpose.msk.msra.mxu0 %vm8313_vm1, %v6908_v54  ;;  %v566_v54 = vld [vmem:[%s8309_s7 + $0x1a0] sm:$0xff] }
  0x52   : > { %6961 = vmatpush3.bf16.xpose.msk.msra.mxu1 %vm8313_vm1, %v6956_v55  ;;  %6916 = vmatprep.subr.msk.bf16.mxu0 %vm8313_vm1, %v6914_v3  ;;  %v567_v55 = vld [vmem:[%s8309_s7 + $0x1a8] sm:$0xff] }
  0x53   : > { %6964 = vmatprep.subr.msk.bf16.mxu1 %vm8313_vm1, %v6962_v4 }
  0x59   : > { %6919 = vmatpush3.bf16.xpose.msk.msra.mxu0 %vm8313_vm1, %v6914_v3  ;;  %v7028_v3 = vpack.c.bf16 %v567_v55, %v566_v54  ;;  %v669_v54 = vld [vmem:[%s8369_s10 + $0xd8] sm:$0xff] }
  0x5a   : > { %s7449_s14 = spop %7448  ;;  %6967 = vmatpush3.bf16.xpose.msk.msra.mxu1 %vm8313_vm1, %v6962_v4  ;;  %6970 = vmatprep.subr.msk.bf16.mxu0 %vm8313_vm1, %v6968_v15  ;;  %v281_v4 = vld [vmem:[%s8437_s13 + $0xc0] sm:$0xff] }
  0x5b   : > { %v8448_v21 = vstv %s7449_s14  ;;  %7018 = vmatprep.subr.msk.bf16.mxu1 %vm8313_vm1, %v7016_v16 }
  0x5c   : > { %v386_v23 = vmul.f32 %v8448_v21, %v257_v17  ;;  %v402_v24 = vmul.f32 %v8448_v21, %v273_v18  ;;  %v387_v25 = vmul.f32 %v8448_v21, %v258_v20  ;;  %v403_v29 = vmul.f32 %v8448_v21, %v274_v22  ;;  %v569_v17 = vld [vmem:[%s8309_s7 + $0x1b8] sm:$0xff] }
  0x5d   : > { %v388_v33 = vmul.f32 %v8448_v21, %v259_v26  ;;  %v404_v37 = vmul.f32 %v8448_v21, %v275_v30  ;;  %v389_v43 = vmul.f32 %v8448_v21, %v260_v34  ;;  %v405_v44 = vmul.f32 %v8448_v21, %v276_v35  ;;  %v668_v26 = vld [vmem:[%s8369_s10 + $0xd0] sm:$0xff]  ;;  %v674_v30 = vld [vmem:[%s8369_s10 + $0x100] sm:$0xff] }
  0x5e   : > { %6176 = vmatprep.mubr.msk.f32.mxu0 %vm770_vm0, %v386_v23  ;;  %6232 = vmatprep.mubr.msk.f32.mxu1 %vm770_vm0, %v402_v24  ;;  %v390_v45 = vmul.f32 %v8448_v21, %v261_v38  ;;  %v406_v49 = vmul.f32 %v8448_v21, %v277_v42  ;;  %v391_v56 = vmul.f32 %v8448_v21, %v262_v46  ;;  %v284_v23 = vld [vmem:[%s8437_s13 + $0xd8] sm:$0xff]  ;;  %v286_v38 = vld [vmem:[%s8437_s13 + $0xe8] sm:$0xff]  ;;  %v554_v42 = vld [vmem:[%s8309_s7 + $0x140] sm:$0xff] }
  0x5f   : > { %v407_v57 = vmul.f32 %v8448_v21, %v278_v47  ;;  %v392_v58 = vmul.f32 %v8448_v21, %v263_v50  ;;  %v408_v63 = vmul.f32 %v8448_v21, %v279_v53  ;;  %v393_v5 = vmul.f32 %v8448_v21, %v264_v59  ;;  %v571_v46 = vld [vmem:[%s8309_s7 + $0x1c8] sm:$0xff]  ;;  %v653_v53 = vld [vmem:[%s8369_s10 + $0x58] sm:$0xff] }
  0x60   : > { %6177 = vmatmul.mubr.msk.f32.vlgmr.msra.gmra.mrb[0].mxu0 %vm770_vm0, %v387_v25  ;;  %v409_v7 = vmul.f32 %v8448_v21, %v280_v1  ;;  %v394_v8 = vmul.f32 %v8448_v21, %v265_v2  ;;  %v410_v11 = vmul.f32 %v8448_v21, %v281_v4  ;;  %v395_v18 = vmul.f32 %v8448_v21, %v266_v9  ;;  %v652_v25 = vld [vmem:[%s8369_s10 + $0x50] sm:$0xff]  ;;  %v691_v59 = vld [vmem:[%s8369_s10 + $0x188] sm:$0xff]  ;;  %v654_v2 = vld [vmem:[%s8369_s10 + $0x60] sm:$0xff] }
  0x61   : > { %6233 = vmatmul.mubr.msk.f32.vlgmr.msra.gmra.mrb[0].mxu1 %vm770_vm0, %v403_v29  ;;  %6179 = vmatprep.mubr.msk.f32.mxu0 %vm770_vm0, %v388_v33  ;;  %v411_v20 = vmul.f32 %v8448_v21, %v282_v10  ;;  %v396_v22 = vmul.f32 %v8448_v21, %v267_v12  ;;  %v6986_v24 = vpack.c.bf16 %v553_v14, %v552_v13  ;;  %v573_v9 = vld [vmem:[%s8309_s7 + $0x1d8] sm:$0xff]  ;;  %v676_v10 = vld [vmem:[%s8369_s10 + $0x110] sm:$0xff]  ;;  %v655_v14 = vld [vmem:[%s8369_s10 + $0x68] sm:$0xff] }
  0x62   : > { %6235 = vmatprep.mubr.msk.f32.mxu1 %vm770_vm0, %v404_v37  ;;  %6973 = vmatpush3.bf16.xpose.msk.msra.mxu0 %vm8313_vm1, %v6968_v15  ;;  %v283_v15 = vld [vmem:[%s8437_s13 + $0xd0] sm:$0xff]  ;;  %v397_v33 = vmul.f32 %v8448_v21, %v268_v19  ;;  %v7514_v34 = vpack.i.bf16 %v668_v26, %v652_v25  ;;  %v413_v35 = vmul.f32 %v8448_v21, %v284_v23  ;;  %v270_v37 = vld [vmem:[%s8437_s13 + $0x68] sm:$0xff]  ;;  %v693_v19 = vld [vmem:[%s8369_s10 + $0x198] sm:$0xff] }
  0x63   : > { %7021 = vmatpush3.bf16.xpose.msk.msra.mxu1 %vm8313_vm1, %v7016_v16  ;;  %6976 = vmatprep.subr.msk.bf16.mxu0 %vm8313_vm1, %v6974_v36  ;;  %v568_v16 = vld [vmem:[%s8309_s7 + $0x1b0] sm:$0xff]  ;;  %v412_v27 = vmul.f32 %v8448_v21, %v283_v15  ;;  %v414_v40 = vmul.f32 %v8448_v21, %v285_v32  ;;  %v399_v47 = vmul.f32 %v8448_v21, %v270_v37  ;;  %v671_v15 = vld [vmem:[%s8369_s10 + $0xe8] sm:$0xff]  ;;  %v574_v26 = vld [vmem:[%s8309_s7 + $0x1e0] sm:$0xff] }
  0x64   : > { %6180 = vmatmul.mubr.msk.f32.gmra.mrb[2].mxu0 %vm770_vm0, %v389_v43  ;;  %7024 = vmatprep.subr.msk.bf16.mxu1 %vm8313_vm1, %v7022_v39  ;;  %v7034_v29 = vpack.c.bf16 %v569_v17, %v568_v16  ;;  %v555_v43 = vld [vmem:[%s8309_s7 + $0x148] sm:$0xff]  ;;  %v400_v50 = vmul.f32 %v8448_v21, %v271_v41  ;;  %v401_v61 = vmul.f32 %v8448_v21, %v272_v48  ;;  %v672_v23 = vld [vmem:[%s8369_s10 + $0xf0] sm:$0xff]  ;;  %v722_v41 = vld [vmem:[%s8369_s10 + $0x280] sm:$0xff] }
  0x65   : > { %6236 = vmatmul.mubr.msk.f32.gmra.mrb[2].mxu1 %vm770_vm0, %v405_v44  ;;  %6182 = vmatprep.mubr.msk.f32.mxu0 %vm770_vm0, %v390_v45  ;;  %v287_v44 = vld [vmem:[%s8437_s13 + $0xf0] sm:$0xff]  ;;  %v570_v45 = vld [vmem:[%s8309_s7 + $0x1c0] sm:$0xff]  ;;  %v6992_v52 = vpack.c.bf16 %v555_v43, %v554_v42  ;;  %v7516_v62 = vpack.i.bf16 %v669_v54, %v653_v53  ;;  %v559_v25 = vld [vmem:[%s8309_s7 + $0x168] sm:$0xff] }
  0x66   : > { %6238 = vmatprep.mubr.msk.f32.mxu1 %vm770_vm0, %v406_v49  ;;  %7515 = vxpose.xlu0.b32.cont [11/16] (narrow) %v7514_v34, 8  ;;  %v415_v49 = vmul.f32 %v8448_v21, %v286_v38  ;;  %v416_v55 = vmul.f32 %v8448_v21, %v287_v44  ;;  %v673_v34 = vld [vmem:[%s8369_s10 + $0xf8] sm:$0xff]  ;;  %v679_v37 = vld [vmem:[%s8369_s10 + $0x128] sm:$0xff]  ;;  %v560_v42 = vld [vmem:[%s8309_s7 + $0x170] sm:$0xff] }
  0x67   : > { %v695_v38 = vld [vmem:[%s8369_s10 + $0x1a8] sm:$0xff]  ;;  %v561_v43 = vld [vmem:[%s8309_s7 + $0x178] sm:$0xff]  ;;  %v576_v44 = vld [vmem:[%s8309_s7 + $0x1f0] sm:$0xff] }
  0x68   : > { %6183 = vmatmul.mubr.msk.f32.gmra.mrb[4].mxu0 %vm770_vm0, %v391_v56  ;;  %v289_v56 = vld [vmem:[%s8437_s13 + $0x100] sm:$0xff]  ;;  %v696_v48 = vld [vmem:[%s8369_s10 + $0x1b0] sm:$0xff] }
  0x69   : > { %6239 = vmatmul.mubr.msk.f32.gmra.mrb[4].mxu1 %vm770_vm0, %v407_v57  ;;  %6185 = vmatprep.mubr.msk.f32.mxu0 %vm770_vm0, %v392_v58  ;;  %v7040_v57 = vpack.c.bf16 %v571_v46, %v570_v45  ;;  %v675_v58 = vld [vmem:[%s8369_s10 + $0x108] sm:$0xff]  ;;  %v418_v1 = vmul.f32 %v8448_v21, %v289_v56  ;;  %v7541_v45 = vpack.i.bf16 %v695_v38, %v679_v37  ;;  %v577_v46 = vld [vmem:[%s8309_s7 + $0x1f8] sm:$0xff] }
  0x6a   : > { %6241 = vmatprep.mubr.msk.f32.mxu1 %vm770_vm0, %v408_v63  ;;  %6979 = vmatpush3.bf16.xpose.msk.msra.mxu0 %vm8313_vm1, %v6974_v36  ;;  %v398_v36 = vmul.f32 %v8448_v21, %v269_v28  ;;  %v417_v63 = vmul.f32 %v8448_v21, %v288_v51  ;;  %v7533_v4 = vpack.i.bf16 %v691_v59, %v675_v58  ;;  %v575_v28 = vld [vmem:[%s8309_s7 + $0x1e8] sm:$0xff]  ;;  %v697_v56 = vld [vmem:[%s8369_s10 + $0x1b8] sm:$0xff]  ;;  %v708_v58 = vld [vmem:[%s8369_s10 + $0x210] sm:$0xff] }
  0x6b   : > { %7027 = vmatpush3.bf16.xpose.msk.msra.mxu1 %vm8313_vm1, %v7022_v39  ;;  %6982 = vmatprep.subr.msk.bf16.mxu0 %vm8313_vm1, %v6980_v60  ;;  %v7531_v39 = vpack.i.bf16 %v690_v31, %v674_v30  ;;  %v694_v30 = vld [vmem:[%s8369_s10 + $0x1a0] sm:$0xff]  ;;  %v707_v51 = vld [vmem:[%s8369_s10 + $0x208] sm:$0xff]  ;;  %v7058_v53 = vpack.c.bf16 %v577_v46, %v576_v44  ;;  %v724_v59 = vld [vmem:[%s8369_s10 + $0x290] sm:$0xff] }
  0x6c   : > { %6186 = vmatmul.mubr.msk.f32.gmra.mrb[6].mxu0 %vm770_vm0, %v393_v5  ;;  %7030 = vmatprep.subr.msk.bf16.mxu1 %vm8313_vm1, %v7028_v3  ;;  %v582_v46 = vld [vmem:[%s8309_s7 + $0x220] sm:$0xff] }
  0x6d   : > { %6242 = vmatmul.mubr.msk.f32.gmra.mrb[6].mxu1 %vm770_vm0, %v409_v7  ;;  %6188 = vmatprep.mubr.msk.f32.mxu0 %vm770_vm0, %v394_v8  ;;  %v557_v7 = vld [vmem:[%s8309_s7 + $0x158] sm:$0xff]  ;;  %v572_v8 = vld [vmem:[%s8309_s7 + $0x1d0] sm:$0xff] }
  0x6e   : > { %6244 = vmatprep.mubr.msk.f32.mxu1 %vm770_vm0, %v410_v11  ;;  %7532 = vxpose.xlu1.b32.start [1/16] (narrow) %v7531_v39, 8  ;;  %v692_v11 = vld [vmem:[%s8369_s10 + $0x190] sm:$0xff]  ;;  %v6998_v13 = vpack.c.bf16 %v557_v7, %v556_v6  ;;  %v7046_v16 = vpack.c.bf16 %v573_v9, %v572_v8  ;;  %v709_v6 = vld [vmem:[%s8369_s10 + $0x218] sm:$0xff] }
  0x6f   : > { %7517 = vxpose.xlu0.b32.cont [12/16] (narrow) %v7516_v62, 8  ;;  %v7535_v17 = vpack.i.bf16 %v692_v11, %v676_v10  ;;  %v594_v62 = vld [vmem:[%s8309_s7 + $0x280] sm:$0xff]  ;;  %v725_v7 = vld [vmem:[%s8369_s10 + $0x298] sm:$0xff]  ;;  %v683_v10 = vld [vmem:[%s8369_s10 + $0x148] sm:$0xff] }
  0x70   : > { %6189 = vmatmul.mubr.msk.f32.gmra.mrb[8].mxu0 %vm770_vm0, %v395_v18  ;;  %v677_v18 = vld [vmem:[%s8369_s10 + $0x118] sm:$0xff]  ;;  %v699_v11 = vld [vmem:[%s8369_s10 + $0x1c8] sm:$0xff] }
  0x71   : > { %6245 = vmatmul.mubr.msk.f32.gmra.mrb[8].mxu1 %vm770_vm0, %v411_v20  ;;  %6191 = vmatprep.mubr.msk.f32.mxu0 %vm770_vm0, %v396_v22  ;;  %v7520_v20 = vpack.i.bf16 %v671_v15, %v655_v14  ;;  %v656_v22 = vld [vmem:[%s8369_s10 + $0x70] sm:$0xff]  ;;  %v306_v14 = vld [vmem:[%s8437_s13 + $0x188] sm:$0xff]  ;;  %v7549_v15 = vpack.i.bf16 %v699_v11, %v683_v10 }
  0x72   : > { %6247 = vmatprep.mubr.msk.f32.mxu1 %vm770_vm0, %v412_v27  ;;  %6985 = vmatpush3.bf16.xpose.msk.msra.mxu0 %vm8313_vm1, %v6980_v60  ;;  %v305_v60 = vld [vmem:[%s8437_s13 + $0x180] sm:$0xff]  ;;  %v7537_v27 = vpack.i.bf16 %v693_v19, %v677_v18  ;;  %v7522_v31 = vpack.i.bf16 %v672_v23, %v656_v22  ;;  %v581_v18 = vld [vmem:[%s8309_s7 + $0x218] sm:$0xff]  ;;  %v307_v19 = vld [vmem:[%s8437_s13 + $0x190] sm:$0xff] }
  0x73   : > { %7033 = vmatpush3.bf16.xpose.msk.msra.mxu1 %vm8313_vm1, %v7028_v3  ;;  %6988 = vmatprep.subr.msk.bf16.mxu0 %vm8313_vm1, %v6986_v24  ;;  %v670_v3 = vld [vmem:[%s8369_s10 + $0xe0] sm:$0xff]  ;;  %v434_v5 = vmul.f32 %v8448_v21, %v305_v60  ;;  %v597_v22 = vld [vmem:[%s8309_s7 + $0x298] sm:$0xff]  ;;  %v299_v10 = vld [vmem:[%s8437_s13 + $0x150] sm:$0xff] }
  0x74   : > { %6192 = vmatmul.mubr.msk.f32.gmra.mrb[10].mxu0 %vm770_vm0, %v397_v33  ;;  %7036 = vmatprep.subr.msk.bf16.mxu1 %vm8313_vm1, %v7034_v29  ;;  %v7518_v12 = vpack.i.bf16 %v670_v3, %v654_v2  ;;  %v657_v33 = vld [vmem:[%s8369_s10 + $0x78] sm:$0xff]  ;;  %v578_v60 = vld [vmem:[%s8309_s7 + $0x200] sm:$0xff]  ;;  %v584_v11 = vld [vmem:[%s8309_s7 + $0x230] sm:$0xff] }
  0x75   : > { %6248 = vmatmul.mubr.msk.f32.gmra.mrb[10].mxu1 %vm770_vm0, %v413_v35  ;;  %6194 = vmatprep.mubr.msk.f32.mxu0 %vm770_vm0, %v398_v36  ;;  %v7052_v35 = vpack.c.bf16 %v575_v28, %v574_v26  ;;  %v7524_v39 = vpack.i.bf16 %v673_v34, %v657_v33  ;;  %v682_v2 = vld [vmem:[%s8369_s10 + $0x140] sm:$0xff]  ;;  %v684_v34 = vld [vmem:[%s8369_s10 + $0x150] sm:$0xff] }
  0x76   : > { %6250 = vmatprep.mubr.msk.f32.mxu1 %vm770_vm0, %v414_v40  ;;  %7534 = vxpose.xlu1.b32.cont [2/16] (narrow) %v7533_v4, 8  ;;  %v706_v40 = vld [vmem:[%s8369_s10 + $0x200] sm:$0xff]  ;;  %v7572_v4 = vpack.i.bf16 %v724_v59, %v708_v58  ;;  %v727_v58 = vld [vmem:[%s8369_s10 + $0x2a8] sm:$0xff] }
  0x77   : > { %7519 = vxpose.xlu0.b32.cont [13/16] (narrow) %v7518_v12, 8  ;;  %v698_v3 = vld [vmem:[%s8369_s10 + $0x1c0] sm:$0xff]  ;;  %v7574_v12 = vpack.i.bf16 %v725_v7, %v709_v6  ;;  %v298_v6 = vld [vmem:[%s8437_s13 + $0x148] sm:$0xff] }
  0x78   : > { %6195 = vmatmul.mubr.msk.f32.gmra.mrb[12].mxu0 %vm770_vm0, %v399_v47  ;;  %v680_v47 = vld [vmem:[%s8369_s10 + $0x130] sm:$0xff]  ;;  %v7547_v9 = vpack.i.bf16 %v698_v3, %v682_v2  ;;  %v314_v7 = vld [vmem:[%s8437_s13 + $0x1c8] sm:$0xff] }
  0x79   : > { %6251 = vmatmul.mubr.msk.f32.gmra.mrb[12].mxu1 %vm770_vm0, %v415_v49  ;;  %6197 = vmatprep.mubr.msk.f32.mxu0 %vm770_vm0, %v400_v50  ;;  %v7568_v49 = vpack.i.bf16 %v722_v41, %v706_v40  ;;  %v7010_v50 = vpack.c.bf16 %v561_v43, %v560_v42  ;;  %v7543_v54 = vpack.i.bf16 %v696_v48, %v680_v47  ;;  %v294_v41 = vld [vmem:[%s8437_s13 + $0x128] sm:$0xff]  ;;  %v311_v48 = vld [vmem:[%s8437_s13 + $0x1b0] sm:$0xff] }
  0x7a   : > { %6253 = vmatprep.mubr.msk.f32.mxu1 %vm770_vm0, %v416_v55  ;;  %6991 = vmatpush3.bf16.xpose.msk.msra.mxu0 %vm8313_vm1, %v6986_v24  ;;  %v558_v24 = vld [vmem:[%s8309_s7 + $0x160] sm:$0xff]  ;;  %v681_v55 = vld [vmem:[%s8369_s10 + $0x138] sm:$0xff]  ;;  %v310_v42 = vld [vmem:[%s8437_s13 + $0x1a8] sm:$0xff]  ;;  %v440_v59 = vmul.f32 %v8448_v21, %v311_v48 }
  0x7b   : > { %7039 = vmatpush3.bf16.xpose.msk.msra.mxu1 %vm8313_vm1, %v7034_v29  ;;  %6994 = vmatprep.subr.msk.bf16.mxu0 %vm8313_vm1, %v6992_v52  ;;  %v678_v29 = vld [vmem:[%s8369_s10 + $0x120] sm:$0xff]  ;;  %v7004_v32 = vpack.c.bf16 %v559_v25, %v558_v24  ;;  %v292_v24 = vld [vmem:[%s8437_s13 + $0x118] sm:$0xff]  ;;  %v435_v25 = vmul.f32 %v8448_v21, %v306_v14  ;;  %v583_v47 = vld [vmem:[%s8309_s7 + $0x228] sm:$0xff] }
  0x7c   : > { %6198 = vmatmul.mubr.msk.f32.gmra.mrb[14].mxu0 %vm770_vm0, %v401_v61  ;;  %7042 = vmatprep.subr.msk.bf16.mxu1 %vm8313_vm1, %v7040_v57  ;;  %v7539_v36 = vpack.i.bf16 %v694_v30, %v678_v29  ;;  %v579_v61 = vld [vmem:[%s8309_s7 + $0x208] sm:$0xff]  ;;  %v710_v29 = vld [vmem:[%s8369_s10 + $0x220] sm:$0xff]  ;;  %v421_v37 = vmul.f32 %v8448_v21, %v292_v24  ;;  %v600_v14 = vld [vmem:[%s8309_s7 + $0x2b0] sm:$0xff] }
  0x7d   : > { %6254 = vmatmul.mubr.msk.f32.gmra.mrb[14].mxu1 %vm770_vm0, %v417_v63  ;;  %6288 = vmatprep.mubr.msk.f32.mxu0 %vm770_vm0, %v418_v1  ;;  %v7545_v63 = vpack.i.bf16 %v697_v56, %v681_v55  ;;  %v595_v1 = vld [vmem:[%s8309_s7 + $0x288] sm:$0xff]  ;;  %v726_v30 = vld [vmem:[%s8369_s10 + $0x2a0] sm:$0xff]  ;;  %v312_v55 = vld [vmem:[%s8437_s13 + $0x1b8] sm:$0xff]  ;;  %v7076_v56 = vpack.c.bf16 %v583_v47, %v582_v46 }
  0x7e   : > { %6344 = vmatprep.mubr.msk.f32.mxu1 %vm770_vm0, %v434_v5  ;;  %7536 = vxpose.xlu1.b32.cont [3/16] (narrow) %v7535_v17, 8  ;;  %v7064_v5 = vpack.c.bf16 %v579_v61, %v578_v60  ;;  %v7112_v8 = vpack.c.bf16 %v595_v1, %v594_v62  ;;  %v580_v17 = vld [vmem:[%s8309_s7 + $0x210] sm:$0xff]  ;;  %v7576_v38 = vpack.i.bf16 %v726_v30, %v710_v29  ;;  %v297_v60 = vld [vmem:[%s8437_s13 + $0x140] sm:$0xff]  ;;  %v685_v62 = vld [vmem:[%s8369_s10 + $0x158] sm:$0xff] }
  0x7f   : > { %7521 = vxpose.xlu0.b32.cont [14/16] (narrow) %v7520_v20, 8  ;;  %v596_v20 = vld [vmem:[%s8309_s7 + $0x290] sm:$0xff]  ;;  %v7070_v28 = vpack.c.bf16 %v581_v18, %v580_v17  ;;  %v313_v1 = vld [vmem:[%s8437_s13 + $0x1c0] sm:$0xff]  ;;  %v300_v17 = vld [vmem:[%s8437_s13 + $0x158] sm:$0xff]  ;;  %v443_v18 = vmul.f32 %v8448_v21, %v314_v7 }
  0x80   : > { %v7118_v33 = vpack.c.bf16 %v597_v22, %v596_v20  ;;  %v316_v20 = vld [vmem:[%s8437_s13 + $0x1d8] sm:$0xff]  ;;  %v728_v24 = vld [vmem:[%s8369_s10 + $0x2b0] sm:$0xff]  ;;  %v702_v29 = vld [vmem:[%s8369_s10 + $0x1e0] sm:$0xff] }
  0x81   : > { %v317_v30 = vld [vmem:[%s8437_s13 + $0x1e0] sm:$0xff]  ;;  %v304_v46 = vld [vmem:[%s8437_s13 + $0x178] sm:$0xff] }
  0x82   : > { %6997 = vmatpush3.bf16.xpose.msk.msra.mxu0 %vm8313_vm1, %v6992_v52  ;;  %7538 = vxpose.xlu1.b32.cont [4/16] (narrow) %v7537_v27, 8  ;;  %v723_v52 = vld [vmem:[%s8369_s10 + $0x288] sm:$0xff]  ;;  %v308_v27 = vld [vmem:[%s8437_s13 + $0x198] sm:$0xff] }
  0x83   : > { %7045 = vmatpush3.bf16.xpose.msk.msra.mxu1 %vm8313_vm1, %v7040_v57  ;;  %7000 = vmatprep.subr.msk.bf16.mxu0 %vm8313_vm1, %v6998_v13  ;;  %v7570_v57 = vpack.i.bf16 %v723_v52, %v707_v51  ;;  %v423_v51 = vmul.f32 %v8448_v21, %v294_v41  ;;  %v296_v52 = vld [vmem:[%s8437_s13 + $0x138] sm:$0xff]  ;;  %v587_v41 = vld [vmem:[%s8309_s7 + $0x248] sm:$0xff] }
  0x84   : > { %7048 = vmatprep.subr.msk.bf16.mxu1 %vm8313_vm1, %v7046_v16  ;;  %7523 = vxpose.xlu0.b32.cont [15/16] (narrow) %v7522_v31, 8  ;;  %v436_v31 = vmul.f32 %v8448_v21, %v307_v19  ;;  %v425_v2 = vmul.f32 %v8448_v21, %v296_v52  ;;  %v428_v19 = vmul.f32 %v8448_v21, %v299_v10  ;;  %v729_v52 = vld [vmem:[%s8369_s10 + $0x2b8] sm:$0xff] }
  0x85   : > { %v605_v7 = vld [vmem:[%s8309_s7 + $0x2d8] sm:$0xff] }
  0x86   : > { %7540 = vxpose.xlu1.b32.cont [5/16] (narrow) %v7539_v36, 8  ;;  %v309_v36 = vld [vmem:[%s8437_s13 + $0x1a0] sm:$0xff] }
  0x87   : > { %v438_v44 = vmul.f32 %v8448_v21, %v309_v36  ;;  %v318_v36 = vld [vmem:[%s8437_s13 + $0x1e8] sm:$0xff] }
  0x88   : > { %7525 = vxpose.xlu0.b32.end [16/16] (narrow) %v7524_v39, 8  ;;  %v437_v39 = vmul.f32 %v8448_v21, %v308_v27  ;;  %v447_v47 = vmul.f32 %v8448_v21, %v318_v36  ;;  %v593_v36 = vld [vmem:[%s8309_s7 + $0x278] sm:$0xff] }
  0x8a   : > { %7003 = vmatpush3.bf16.xpose.msk.msra.mxu0 %vm8313_vm1, %v6998_v13  ;;  %7542 = vxpose.xlu1.b32.cont [6/16] (narrow) %v7541_v45, 8  ;;  %v290_v13 = vld [vmem:[%s8437_s13 + $0x108] sm:$0xff]  ;;  %v295_v45 = vld [vmem:[%s8437_s13 + $0x130] sm:$0xff] }
  0x8b   : > { %7051 = vmatpush3.bf16.xpose.msk.msra.mxu1 %vm8313_vm1, %v7046_v16  ;;  %7006 = vmatprep.subr.msk.bf16.mxu0 %vm8313_vm1, %v7004_v32  ;;  %v291_v16 = vld [vmem:[%s8437_s13 + $0x110] sm:$0xff]  ;;  %v419_v23 = vmul.f32 %v8448_v21, %v290_v13 }
  0x8c   : > { %7054 = vmatprep.subr.msk.bf16.mxu1 %vm8313_vm1, %v7052_v35  ;;  %7569 = vxpose.xlu0.b32.start [1/16] (narrow) %v7568_v49, 8  ;;  %v420_v26 = vmul.f32 %v8448_v21, %v291_v16  ;;  %v598_v49 = vld [vmem:[%s8309_s7 + $0x2a0] sm:$0xff]  ;;  %v315_v13 = vld [vmem:[%s8437_s13 + $0x1d0] sm:$0xff]  ;;  %v427_v16 = vmul.f32 %v8448_v21, %v298_v6 }
  0x8d   : > { %v604_v6 = vld [vmem:[%s8309_s7 + $0x2d0] sm:$0xff] }
  0x8e   : > { %7544 = vxpose.xlu1.b32.cont [7/16] (narrow) %v7543_v54, 8  ;;  %v424_v54 = vmul.f32 %v8448_v21, %v295_v45 }
  0x90   : > { %7571 = vxpose.xlu0.b32.cont [2/16] (narrow) %v7570_v57, 8  ;;  %v711_v57 = vld [vmem:[%s8369_s10 + $0x228] sm:$0xff] }
  0x91   : > { %v7578_v3 = vpack.i.bf16 %v727_v58, %v711_v57  ;;  %v703_v57 = vld [vmem:[%s8369_s10 + $0x1e8] sm:$0xff]  ;;  %v337_v58 = vld [vmem:[%s8437_s13 + $0x280] sm:$0xff] }
  0x92   : > { %7009 = vmatpush3.bf16.xpose.msk.msra.mxu0 %vm8313_vm1, %v7004_v32  ;;  %7546 = vxpose.xlu1.b32.cont [8/16] (narrow) %v7545_v63, 8  ;;  %v293_v32 = vld [vmem:[%s8437_s13 + $0x120] sm:$0xff]  ;;  %v701_v63 = vld [vmem:[%s8369_s10 + $0x1d8] sm:$0xff] }
  0x93   : > { %7057 = vmatpush3.bf16.xpose.msk.msra.mxu1 %vm8313_vm1, %v7052_v35  ;;  %7012 = vmatprep.subr.msk.bf16.mxu0 %vm8313_vm1, %v7010_v50  ;;  %v700_v35 = vld [vmem:[%s8369_s10 + $0x1d0] sm:$0xff]  ;;  %v422_v40 = vmul.f32 %v8448_v21, %v293_v32 }
  0x94   : > { %7060 = vmatprep.subr.msk.bf16.mxu1 %vm8313_vm1, %v7058_v53  ;;  %7573 = vxpose.xlu0.b32.cont [3/16] (narrow) %v7572_v4, 8  ;;  %v7551_v43 = vpack.i.bf16 %v700_v35, %v684_v34  ;;  %v441_v4 = vmul.f32 %v8448_v21, %v312_v55  ;;  %v302_v35 = vld [vmem:[%s8437_s13 + $0x168] sm:$0xff] }
  0x95   : > { %v431_v45 = vmul.f32 %v8448_v21, %v302_v35  ;;  %v592_v35 = vld [vmem:[%s8309_s7 + $0x270] sm:$0xff] }
  0x96   : > { %7548 = vxpose.xlu1.b32.cont [9/16] (narrow) %v7547_v9, 8  ;;  %v442_v9 = vmul.f32 %v8448_v21, %v313_v1  ;;  %v730_v1 = vld [vmem:[%s8369_s10 + $0x2c0] sm:$0xff] }
  0x98   : > { %7575 = vxpose.xlu0.b32.cont [4/16] (narrow) %v7574_v12, 8  ;;  %v585_v12 = vld [vmem:[%s8309_s7 + $0x238] sm:$0xff] }
  0x99   : > { %v7082_v22 = vpack.c.bf16 %v585_v12, %v584_v11  ;;  %v715_v12 = vld [vmem:[%s8369_s10 + $0x248] sm:$0xff] }
  0x9a   : > { %7015 = vmatpush3.bf16.xpose.msk.msra.mxu0 %vm8313_vm1, %v7010_v50  ;;  %7550 = vxpose.xlu1.b32.cont [10/16] (narrow) %v7549_v15, 8  ;;  %v599_v50 = vld [vmem:[%s8309_s7 + $0x2a8] sm:$0xff]  ;;  %v601_v15 = vld [vmem:[%s8309_s7 + $0x2b8] sm:$0xff] }
  0x9b   : > { %7063 = vmatpush3.bf16.xpose.msk.msra.mxu1 %vm8313_vm1, %v7058_v53  ;;  %7066 = vmatprep.subr.msk.bf16.mxu0 %vm8313_vm1, %v7064_v5  ;;  %v439_v53 = vmul.f32 %v8448_v21, %v310_v42  ;;  %v7124_v61 = vpack.c.bf16 %v599_v50, %v598_v49  ;;  %v7130_v27 = vpack.c.bf16 %v601_v15, %v600_v14  ;;  %v319_v42 = vld [vmem:[%s8437_s13 + $0x1f0] sm:$0xff]  ;;  %v320_v49 = vld [vmem:[%s8437_s13 + $0x1f8] sm:$0xff] }
  0x9c   : > { %7114 = vmatprep.subr.msk.bf16.mxu1 %vm8313_vm1, %v7112_v8  ;;  %7577 = vxpose.xlu0.b32.cont [5/16] (narrow) %v7576_v38, 8  ;;  %v446_v38 = vmul.f32 %v8448_v21, %v317_v30  ;;  %v7142_v14 = vpack.c.bf16 %v605_v7, %v604_v6  ;;  %v733_v30 = vld [vmem:[%s8369_s10 + $0x2d8] sm:$0xff] }
  0x9e   : > { %7552 = vxpose.xlu1.b32.cont [11/16] (narrow) %v7551_v43, 8  ;;  %v602_v43 = vld [vmem:[%s8309_s7 + $0x2c0] sm:$0xff] }
  0xa0   : > { %7579 = vxpose.xlu0.b32.cont [6/16] (narrow) %v7578_v3, 8  ;;  %v466_v3 = vmul.f32 %v8448_v21, %v337_v58  ;;  %v338_v58 = vld [vmem:[%s8437_s13 + $0x288] sm:$0xff] }
  0xa1   : > { %6289 = vmatmul.mubr.msk.f32.vlgmr.msra.gmra.mrb[16].mxu0 %vm770_vm0, %v419_v23  ;;  %v712_v23 = vld [vmem:[%s8369_s10 + $0x230] sm:$0xff] }
  0xa2   : > { %6345 = vmatmul.mubr.msk.f32.vlgmr.msra.gmra.mrb[16].mxu1 %vm770_vm0, %v435_v25  ;;  %6291 = vmatprep.mubr.msk.f32.mxu0 %vm770_vm0, %v420_v26  ;;  %v444_v25 = vmul.f32 %v8448_v21, %v315_v13  ;;  %v301_v26 = vld [vmem:[%s8437_s13 + $0x160] sm:$0xff]  ;;  %v7580_v32 = vpack.i.bf16 %v728_v24, %v712_v23  ;;  %v731_v13 = vld [vmem:[%s8369_s10 + $0x2c8] sm:$0xff] }
  0xa3   : > { %6347 = vmatprep.mubr.msk.f32.mxu1 %vm770_vm0, %v436_v31  ;;  %7069 = vmatpush3.bf16.xpose.msk.msra.mxu0 %vm8313_vm1, %v7064_v5  ;;  %v426_v5 = vmul.f32 %v8448_v21, %v297_v60  ;;  %v429_v31 = vmul.f32 %v8448_v21, %v300_v17  ;;  %v430_v34 = vmul.f32 %v8448_v21, %v301_v26  ;;  %v705_v17 = vld [vmem:[%s8369_s10 + $0x1f8] sm:$0xff]  ;;  %v591_v23 = vld [vmem:[%s8309_s7 + $0x268] sm:$0xff] }
  0xa4   : > { %7117 = vmatpush3.bf16.xpose.msk.msra.mxu1 %vm8313_vm1, %v7112_v8  ;;  %7072 = vmatprep.subr.msk.bf16.mxu0 %vm8313_vm1, %v7070_v28  ;;  %v7553_v8 = vpack.i.bf16 %v701_v63, %v685_v62  ;;  %v714_v63 = vld [vmem:[%s8369_s10 + $0x240] sm:$0xff]  ;;  %v607_v26 = vld [vmem:[%s8309_s7 + $0x2e8] sm:$0xff] }
  0xa5   : > { %6292 = vmatmul.mubr.msk.f32.gmra.mrb[18].mxu0 %vm770_vm0, %v421_v37  ;;  %7120 = vmatprep.subr.msk.bf16.mxu1 %vm8313_vm1, %v7118_v33  ;;  %v7584_v10 = vpack.i.bf16 %v730_v1, %v714_v63  ;;  %v628_v63 = vld [vmem:[%s8309_s7 + $0x390] sm:$0xff]  ;;  %v629_v1 = vld [vmem:[%s8309_s7 + $0x398] sm:$0xff] }
  0xa6   : > { %6348 = vmatmul.mubr.msk.f32.gmra.mrb[18].mxu1 %vm770_vm0, %v437_v39  ;;  %6294 = vmatprep.mubr.msk.f32.mxu0 %vm770_vm0, %v422_v40  ;;  %v303_v39 = vld [vmem:[%s8437_s13 + $0x170] sm:$0xff]  ;;  %v586_v40 = vld [vmem:[%s8309_s7 + $0x240] sm:$0xff] }
  0xa7   : > { %6350 = vmatprep.mubr.msk.f32.mxu1 %vm770_vm0, %v438_v44  ;;  %7554 = vxpose.xlu1.b32.cont [12/16] (narrow) %v7553_v8, 8  ;;  %v603_v44 = vld [vmem:[%s8309_s7 + $0x2c8] sm:$0xff]  ;;  %v432_v48 = vmul.f32 %v8448_v21, %v303_v39  ;;  %v7088_v50 = vpack.c.bf16 %v587_v41, %v586_v40  ;;  %v688_v8 = vld [vmem:[%s8369_s10 + $0x170] sm:$0xff]  ;;  %v7106_v40 = vpack.c.bf16 %v593_v36, %v592_v35 }
  0xa8   : > { %7581 = vxpose.xlu0.b32.cont [7/16] (narrow) %v7580_v32, 8  ;;  %v7136_v55 = vpack.c.bf16 %v603_v44, %v602_v43  ;;  %v719_v41 = vld [vmem:[%s8369_s10 + $0x268] sm:$0xff] }
  0xa9   : > { %6295 = vmatmul.mubr.msk.f32.gmra.mrb[20].mxu0 %vm770_vm0, %v423_v51  ;;  %v713_v51 = vld [vmem:[%s8369_s10 + $0x238] sm:$0xff] }
  0xaa   : > { %6351 = vmatmul.mubr.msk.f32.gmra.mrb[20].mxu1 %vm770_vm0, %v439_v53  ;;  %6297 = vmatprep.mubr.msk.f32.mxu0 %vm770_vm0, %v424_v54  ;;  %v448_v53 = vmul.f32 %v8448_v21, %v319_v42  ;;  %v321_v54 = vld [vmem:[%s8437_s13 + $0x200] sm:$0xff]  ;;  %v7582_v60 = vpack.i.bf16 %v729_v52, %v713_v51  ;;  %v735_v42 = vld [vmem:[%s8369_s10 + $0x2e8] sm:$0xff] }
  0xab   : > { %6353 = vmatprep.mubr.msk.f32.mxu1 %vm770_vm0, %v440_v59  ;;  %7075 = vmatpush3.bf16.xpose.msk.msra.mxu0 %vm8313_vm1, %v7070_v28  ;;  %v686_v28 = vld [vmem:[%s8369_s10 + $0x160] sm:$0xff]  ;;  %v433_v59 = vmul.f32 %v8448_v21, %v304_v46  ;;  %v450_v62 = vmul.f32 %v8448_v21, %v321_v54  ;;  %v7594_v44 = vpack.i.bf16 %v735_v42, %v719_v41  ;;  %v736_v46 = vld [vmem:[%s8369_s10 + $0x2f0] sm:$0xff]  ;;  %v737_v54 = vld [vmem:[%s8369_s10 + $0x2f8] sm:$0xff] }
  0xac   : > { %7123 = vmatpush3.bf16.xpose.msk.msra.mxu1 %vm8313_vm1, %v7118_v33  ;;  %7078 = vmatprep.subr.msk.bf16.mxu0 %vm8313_vm1, %v7076_v56  ;;  %v445_v33 = vmul.f32 %v8448_v21, %v316_v20  ;;  %v7555_v37 = vpack.i.bf16 %v702_v29, %v686_v28  ;;  %v732_v20 = vld [vmem:[%s8369_s10 + $0x2d0] sm:$0xff]  ;;  %v717_v29 = vld [vmem:[%s8369_s10 + $0x258] sm:$0xff] }
  0xad   : > { %6298 = vmatmul.mubr.msk.f32.gmra.mrb[22].mxu0 %vm770_vm0, %v425_v2  ;;  %7126 = vmatprep.subr.msk.bf16.mxu1 %vm8313_vm1, %v7124_v61  ;;  %v7590_v32 = vpack.i.bf16 %v733_v30, %v717_v29  ;;  %v331_v41 = vld [vmem:[%s8437_s13 + $0x250] sm:$0xff] }
  0xae   : > { %6354 = vmatmul.mubr.msk.f32.gmra.mrb[22].mxu1 %vm770_vm0, %v441_v4  ;;  %6300 = vmatprep.mubr.msk.f32.mxu0 %vm770_vm0, %v426_v5  ;;  %v588_v4 = vld [vmem:[%s8309_s7 + $0x250] sm:$0xff]  ;;  %v589_v5 = vld [vmem:[%s8309_s7 + $0x258] sm:$0xff] }
  0xaf   : > { %6356 = vmatprep.mubr.msk.f32.mxu1 %vm770_vm0, %v442_v9  ;;  %7556 = vxpose.xlu1.b32.cont [13/16] (narrow) %v7555_v37, 8  ;;  %v704_v9 = vld [vmem:[%s8369_s10 + $0x1f0] sm:$0xff]  ;;  %v7094_v11 = vpack.c.bf16 %v589_v5, %v588_v4  ;;  %v324_v5 = vld [vmem:[%s8437_s13 + $0x218] sm:$0xff] }
  0xb0   : > { %7583 = vxpose.xlu0.b32.cont [8/16] (narrow) %v7582_v60, 8  ;;  %v7559_v15 = vpack.i.bf16 %v704_v9, %v688_v8  ;;  %v608_v37 = vld [vmem:[%s8309_s7 + $0x2f0] sm:$0xff]  ;;  %v340_v8 = vld [vmem:[%s8437_s13 + $0x298] sm:$0xff]  ;;  %v325_v9 = vld [vmem:[%s8437_s13 + $0x220] sm:$0xff] }
  0xb1   : > { %6301 = vmatmul.mubr.msk.f32.gmra.mrb[24].mxu0 %vm770_vm0, %v427_v16  ;;  %v689_v16 = vld [vmem:[%s8369_s10 + $0x178] sm:$0xff]  ;;  %v612_v60 = vld [vmem:[%s8309_s7 + $0x310] sm:$0xff] }
  0xb2   : > { %6357 = vmatmul.mubr.msk.f32.gmra.mrb[24].mxu1 %vm770_vm0, %v443_v18  ;;  %6303 = vmatprep.mubr.msk.f32.mxu0 %vm770_vm0, %v428_v19  ;;  %v7586_v18 = vpack.i.bf16 %v731_v13, %v715_v12  ;;  %v716_v19 = vld [vmem:[%s8369_s10 + $0x250] sm:$0xff]  ;;  %v7561_v24 = vpack.i.bf16 %v705_v17, %v689_v16  ;;  %v453_v12 = vmul.f32 %v8448_v21, %v324_v5  ;;  %v342_v16 = vld [vmem:[%s8437_s13 + $0x2a8] sm:$0xff] }
  0xb3   : > { %6359 = vmatprep.mubr.msk.f32.mxu1 %vm770_vm0, %v444_v25  ;;  %7081 = vmatpush3.bf16.xpose.msk.msra.mxu0 %vm8313_vm1, %v7076_v56  ;;  %v687_v56 = vld [vmem:[%s8369_s10 + $0x168] sm:$0xff]  ;;  %v606_v25 = vld [vmem:[%s8309_s7 + $0x2e0] sm:$0xff]  ;;  %v469_v13 = vmul.f32 %v8448_v21, %v340_v8  ;;  %v616_v42 = vld [vmem:[%s8309_s7 + $0x330] sm:$0xff] }
  0xb4   : > { %7129 = vmatpush3.bf16.xpose.msk.msra.mxu1 %vm8313_vm1, %v7124_v61  ;;  %7084 = vmatprep.subr.msk.bf16.mxu0 %vm8313_vm1, %v7082_v22  ;;  %v449_v61 = vmul.f32 %v8448_v21, %v320_v49  ;;  %v7557_v2 = vpack.i.bf16 %v703_v57, %v687_v56  ;;  %v626_v49 = vld [vmem:[%s8309_s7 + $0x380] sm:$0xff]  ;;  %v322_v57 = vld [vmem:[%s8437_s13 + $0x208] sm:$0xff] }
  0xb5   : > { %6304 = vmatmul.mubr.msk.f32.gmra.mrb[26].mxu0 %vm770_vm0, %v429_v31  ;;  %7132 = vmatprep.subr.msk.bf16.mxu1 %vm8313_vm1, %v7130_v27  ;;  %v7148_v31 = vpack.c.bf16 %v607_v26, %v606_v25  ;;  %v471_v26 = vmul.f32 %v8448_v21, %v342_v16  ;;  %v635_v5 = vld [vmem:[%s8309_s7 + $0x3c8] sm:$0xff] }
  0xb6   : > { %6360 = vmatmul.mubr.msk.f32.gmra.mrb[26].mxu1 %vm770_vm0, %v445_v33  ;;  %6306 = vmatprep.mubr.msk.f32.mxu0 %vm770_vm0, %v430_v34  ;;  %v718_v33 = vld [vmem:[%s8369_s10 + $0x260] sm:$0xff] }
  0xb7   : > { %6362 = vmatprep.mubr.msk.f32.mxu1 %vm770_vm0, %v446_v38  ;;  %7558 = vxpose.xlu1.b32.cont [14/16] (narrow) %v7557_v2, 8  ;;  %v734_v34 = vld [vmem:[%s8369_s10 + $0x2e0] sm:$0xff]  ;;  %v609_v38 = vld [vmem:[%s8309_s7 + $0x2f8] sm:$0xff]  ;;  %v451_v2 = vmul.f32 %v8448_v21, %v322_v57 }
  0xb8   : > { %7585 = vxpose.xlu0.b32.cont [9/16] (narrow) %v7584_v10, 8  ;;  %v7592_v39 = vpack.i.bf16 %v734_v34, %v718_v33  ;;  %v7154_v43 = vpack.c.bf16 %v609_v38, %v608_v37  ;;  %v7214_v10 = vpack.c.bf16 %v629_v1, %v628_v63  ;;  %v345_v34 = vld [vmem:[%s8437_s13 + $0x2c0] sm:$0xff]  ;;  %v330_v38 = vld [vmem:[%s8437_s13 + $0x248] sm:$0xff]  ;;  %v335_v63 = vld [vmem:[%s8437_s13 + $0x270] sm:$0xff] }
  0xb9   : > { %6307 = vmatmul.mubr.msk.f32.gmra.mrb[28].mxu0 %vm770_vm0, %v431_v45  ;;  %v720_v45 = vld [vmem:[%s8369_s10 + $0x270] sm:$0xff]  ;;  %v618_v1 = vld [vmem:[%s8309_s7 + $0x340] sm:$0xff]  ;;  %v464_v8 = vmul.f32 %v8448_v21, %v335_v63  ;;  %v376_v63 = vld [vmem:[%s8437_s13 + $0x3b8] sm:$0xff] }
  0xba   : > { %6363 = vmatmul.mubr.msk.f32.gmra.mrb[28].mxu1 %vm770_vm0, %v447_v47  ;;  %6309 = vmatprep.mubr.msk.f32.mxu0 %vm770_vm0, %v432_v48  ;;  %v610_v47 = vld [vmem:[%s8309_s7 + $0x300] sm:$0xff]  ;;  %v611_v48 = vld [vmem:[%s8309_s7 + $0x308] sm:$0xff]  ;;  %v7596_v51 = vpack.i.bf16 %v736_v46, %v720_v45  ;;  %v632_v45 = vld [vmem:[%s8309_s7 + $0x3b0] sm:$0xff] }
  0xbb   : > { %6365 = vmatprep.mubr.msk.f32.mxu1 %vm770_vm0, %v448_v53  ;;  %7087 = vmatpush3.bf16.xpose.msk.msra.mxu0 %vm8313_vm1, %v7082_v22  ;;  %v590_v22 = vld [vmem:[%s8309_s7 + $0x260] sm:$0xff]  ;;  %v7160_v52 = vpack.c.bf16 %v611_v48, %v610_v47  ;;  %v721_v53 = vld [vmem:[%s8369_s10 + $0x278] sm:$0xff]  ;;  %v459_v47 = vmul.f32 %v8448_v21, %v330_v38 }
  0xbc   : > { %7135 = vmatpush3.bf16.xpose.msk.msra.mxu1 %vm8313_vm1, %v7130_v27  ;;  %7090 = vmatprep.subr.msk.bf16.mxu0 %vm8313_vm1, %v7088_v50  ;;  %v7588_v27 = vpack.i.bf16 %v732_v20, %v716_v19  ;;  %v7100_v28 = vpack.c.bf16 %v591_v23, %v590_v22  ;;  %v7598_v56 = vpack.i.bf16 %v737_v54, %v721_v53  ;;  %v614_v19 = vld [vmem:[%s8309_s7 + $0x320] sm:$0xff]  ;;  %v615_v20 = vld [vmem:[%s8309_s7 + $0x328] sm:$0xff]  ;;  %v343_v22 = vld [vmem:[%s8437_s13 + $0x2b0] sm:$0xff] }
  0xbd   : > { %6310 = vmatmul.mubr.msk.f32.gmra.mrb[30].mxu0 %vm770_vm0, %v433_v59  ;;  %7138 = vmatprep.subr.msk.bf16.mxu1 %vm8313_vm1, %v7136_v55  ;;  %v323_v59 = vld [vmem:[%s8437_s13 + $0x210] sm:$0xff]  ;;  %v630_v23 = vld [vmem:[%s8309_s7 + $0x3a0] sm:$0xff]  ;;  %v7172_v29 = vpack.c.bf16 %v615_v20, %v614_v19  ;;  %v472_v30 = vmul.f32 %v8448_v21, %v343_v22  ;;  %v633_v46 = vld [vmem:[%s8309_s7 + $0x3b8] sm:$0xff] }
  0xbe   : > { %6366 = vmatmul.mubr.msk.f32.gmra.mrb[30].mxu1 %vm770_vm0, %v449_v61  ;;  %6400 = vmatprep.mubr.msk.f32.mxu0 %vm770_vm0, %v450_v62  ;;  %v613_v61 = vld [vmem:[%s8309_s7 + $0x318] sm:$0xff]  ;;  %v339_v62 = vld [vmem:[%s8437_s13 + $0x290] sm:$0xff]  ;;  %v452_v4 = vmul.f32 %v8448_v21, %v323_v59  ;;  %v333_v54 = vld [vmem:[%s8437_s13 + $0x260] sm:$0xff] }
  0xbf   : > { %6456 = vmatprep.mubr.msk.f32.mxu1 %vm770_vm0, %v466_v3  ;;  %7560 = vxpose.xlu1.b32.cont [15/16] (narrow) %v7559_v15, 8  ;;  %v467_v3 = vmul.f32 %v8448_v21, %v338_v58  ;;  %v7166_v6 = vpack.c.bf16 %v613_v61, %v612_v60  ;;  %v468_v7 = vmul.f32 %v8448_v21, %v339_v62  ;;  %v326_v15 = vld [vmem:[%s8437_s13 + $0x228] sm:$0xff]  ;;  %v348_v53 = vld [vmem:[%s8437_s13 + $0x2d8] sm:$0xff]  ;;  %v620_v20 = vld [vmem:[%s8309_s7 + $0x350] sm:$0xff] }
  0xc0   : > { %7587 = vxpose.xlu0.b32.cont [10/16] (narrow) %v7586_v18, 8  ;;  %v327_v18 = vld [vmem:[%s8437_s13 + $0x230] sm:$0xff]  ;;  %v455_v25 = vmul.f32 %v8448_v21, %v326_v15  ;;  %v477_v58 = vmul.f32 %v8448_v21, %v348_v53  ;;  %v462_v59 = vmul.f32 %v8448_v21, %v333_v54  ;;  %v334_v60 = vld [vmem:[%s8437_s13 + $0x268] sm:$0xff]  ;;  %v369_v15 = vld [vmem:[%s8437_s13 + $0x380] sm:$0xff] }
  0xc1   : > { %v350_v61 = vld [vmem:[%s8437_s13 + $0x2e8] sm:$0xff]  ;;  %v498_v19 = vmul.f32 %v8448_v21, %v369_v15  ;;  %v621_v22 = vld [vmem:[%s8309_s7 + $0x358] sm:$0xff] }
  0xc2   : > { %v358_v53 = vld [vmem:[%s8437_s13 + $0x328] sm:$0xff] }
  0xc3   : > { %7093 = vmatpush3.bf16.xpose.msk.msra.mxu0 %vm8313_vm1, %v7088_v50  ;;  %7562 = vxpose.xlu1.b32.end [16/16] (narrow) %v7561_v24, 8  ;;  %v627_v50 = vld [vmem:[%s8309_s7 + $0x388] sm:$0xff] }
  0xc4   : > { %7141 = vmatpush3.bf16.xpose.msk.msra.mxu1 %vm8313_vm1, %v7136_v55  ;;  %7096 = vmatprep.subr.msk.bf16.mxu0 %vm8313_vm1, %v7094_v11  ;;  %v7208_v55 = vpack.c.bf16 %v627_v50, %v626_v49  ;;  %v631_v24 = vld [vmem:[%s8309_s7 + $0x3a8] sm:$0xff]  ;;  %v460_v49 = vmul.f32 %v8448_v21, %v331_v41  ;;  %v332_v50 = vld [vmem:[%s8437_s13 + $0x258] sm:$0xff]  ;;  %v355_v41 = vld [vmem:[%s8437_s13 + $0x310] sm:$0xff] }
  0xc5   : > { %7144 = vmatprep.subr.msk.bf16.mxu1 %vm8313_vm1, %v7142_v14  ;;  %7589 = vxpose.xlu0.b32.cont [11/16] (narrow) %v7588_v27, 8  ;;  %v456_v27 = vmul.f32 %v8448_v21, %v327_v18  ;;  %v7220_v33 = vpack.c.bf16 %v631_v24, %v630_v23  ;;  %v461_v57 = vmul.f32 %v8448_v21, %v332_v50  ;;  %v636_v23 = vld [vmem:[%s8309_s7 + $0x3d0] sm:$0xff]  ;;  %v637_v24 = vld [vmem:[%s8309_s7 + $0x3d8] sm:$0xff] }
  0xc9   : > { %7591 = vxpose.xlu0.b32.cont [12/16] (narrow) %v7590_v32, 8  ;;  %v329_v32 = vld [vmem:[%s8437_s13 + $0x240] sm:$0xff] }
  0xca   : > { %v458_v37 = vmul.f32 %v8448_v21, %v329_v32 }
  0xcb   : > { %7099 = vmatpush3.bf16.xpose.msk.msra.mxu0 %vm8313_vm1, %v7094_v11  ;;  %v341_v11 = vld [vmem:[%s8437_s13 + $0x2a0] sm:$0xff] }
  0xcc   : > { %7147 = vmatpush3.bf16.xpose.msk.msra.mxu1 %vm8313_vm1, %v7142_v14  ;;  %7102 = vmatprep.subr.msk.bf16.mxu0 %vm8313_vm1, %v7100_v28  ;;  %v454_v14 = vmul.f32 %v8448_v21, %v325_v9  ;;  %v470_v17 = vmul.f32 %v8448_v21, %v341_v11  ;;  %v336_v9 = vld [vmem:[%s8437_s13 + $0x278] sm:$0xff] }
  0xcd   : > { %7150 = vmatprep.subr.msk.bf16.mxu1 %vm8313_vm1, %v7148_v31  ;;  %7593 = vxpose.xlu0.b32.cont [13/16] (narrow) %v7592_v39, 8  ;;  %v346_v39 = vld [vmem:[%s8437_s13 + $0x2c8] sm:$0xff]  ;;  %v465_v16 = vmul.f32 %v8448_v21, %v336_v9  ;;  %v363_v9 = vld [vmem:[%s8437_s13 + $0x350] sm:$0xff] }
  0xce   : > { %v475_v48 = vmul.f32 %v8448_v21, %v346_v39  ;;  %v354_v39 = vld [vmem:[%s8437_s13 + $0x308] sm:$0xff] }
  0xd1   : > { %7595 = vxpose.xlu0.b32.cont [14/16] (narrow) %v7594_v44, 8  ;;  %v347_v44 = vld [vmem:[%s8437_s13 + $0x2d0] sm:$0xff] }
  0xd3   : > { %7105 = vmatpush3.bf16.xpose.msk.msra.mxu0 %vm8313_vm1, %v7100_v28  ;;  %v328_v28 = vld [vmem:[%s8437_s13 + $0x238] sm:$0xff] }
  0xd4   : > { %7153 = vmatpush3.bf16.xpose.msk.msra.mxu1 %vm8313_vm1, %v7148_v31  ;;  %7108 = vmatprep.subr.msk.bf16.mxu0 %vm8313_vm1, %v7106_v40  ;;  %v344_v31 = vld [vmem:[%s8437_s13 + $0x2b8] sm:$0xff]  ;;  %v457_v35 = vmul.f32 %v8448_v21, %v328_v28  ;;  %v623_v28 = vld [vmem:[%s8309_s7 + $0x368] sm:$0xff] }
  0xd5   : > { %7156 = vmatprep.subr.msk.bf16.mxu1 %vm8313_vm1, %v7154_v43  ;;  %7597 = vxpose.xlu0.b32.cont [15/16] (narrow) %v7596_v51, 8  ;;  %v473_v36 = vmul.f32 %v8448_v21, %v344_v31 }
  0xd9   : > { %7599 = vxpose.xlu0.b32.end [16/16] (narrow) %v7598_v56, 8  ;;  %v349_v56 = vld [vmem:[%s8437_s13 + $0x2e0] sm:$0xff] }
  0xda   : > { %v478_v62 = vmul.f32 %v8448_v21, %v349_v56  ;;  %v359_v56 = vld [vmem:[%s8437_s13 + $0x330] sm:$0xff] }
  0xdb   : > { %7111 = vmatpush3.bf16.xpose.msk.msra.mxu0 %vm8313_vm1, %v7106_v40  ;;  %v474_v40 = vmul.f32 %v8448_v21, %v345_v34  ;;  %v625_v34 = vld [vmem:[%s8309_s7 + $0x378] sm:$0xff] }
  0xdc   : > { %7159 = vmatpush3.bf16.xpose.msk.msra.mxu1 %vm8313_vm1, %v7154_v43  ;;  %7162 = vmatprep.subr.msk.bf16.mxu0 %vm8313_vm1, %v7160_v52  ;;  %v617_v43 = vld [vmem:[%s8309_s7 + $0x338] sm:$0xff] }
  0xdd   : > { %7210 = vmatprep.subr.msk.bf16.mxu1 %vm8313_vm1, %v7208_v55  ;;  %v7178_v51 = vpack.c.bf16 %v617_v43, %v616_v42  ;;  %v371_v42 = vld [vmem:[%s8437_s13 + $0x390] sm:$0xff]  ;;  %v483_v43 = vmul.f32 %v8448_v21, %v354_v39  ;;  %v368_v39 = vld [vmem:[%s8437_s13 + $0x378] sm:$0xff] }
  0xde   : > { %v500_v0 = vmul.f32 %v8448_v21, %v371_v42  ;;  %v384_v42 = vld [vmem:[%s8437_s13 + $0x3f8] sm:$0xff] }
  0xe2   : > { %6401 = vmatmul.mubr.msk.f32.vlgmr.msra.gmra.mrb[32].mxu0 %vm770_vm0, %v451_v2  ;;  %v619_v2 = vld [vmem:[%s8309_s7 + $0x348] sm:$0xff] }
  0xe3   : > { %6457 = vmatmul.mubr.msk.f32.vlgmr.msra.gmra.mrb[32].mxu1 %vm770_vm0, %v467_v3  ;;  %6403 = vmatprep.mubr.msk.f32.mxu0 %vm770_vm0, %v452_v4  ;;  %v351_v3 = vld [vmem:[%s8437_s13 + $0x2f0] sm:$0xff]  ;;  %v634_v4 = vld [vmem:[%s8309_s7 + $0x3c0] sm:$0xff] }
  0xe4   : > { %6459 = vmatprep.mubr.msk.f32.mxu1 %vm770_vm0, %v468_v7  ;;  %7165 = vmatpush3.bf16.xpose.msk.msra.mxu0 %vm8313_vm1, %v7160_v52  ;;  %v476_v52 = vmul.f32 %v8448_v21, %v347_v44  ;;  %v479_v7 = vmul.f32 %v8448_v21, %v350_v61  ;;  %v480_v11 = vmul.f32 %v8448_v21, %v351_v3  ;;  %v360_v61 = vld [vmem:[%s8437_s13 + $0x338] sm:$0xff] }
  0xe5   : > { %7213 = vmatpush3.bf16.xpose.msk.msra.mxu1 %vm8313_vm1, %v7208_v55  ;;  %7168 = vmatprep.subr.msk.bf16.mxu0 %vm8313_vm1, %v7166_v6  ;;  %v7226_v55 = vpack.c.bf16 %v633_v46, %v632_v45  ;;  %v484_v45 = vmul.f32 %v8448_v21, %v355_v41  ;;  %v356_v46 = vld [vmem:[%s8437_s13 + $0x318] sm:$0xff]  ;;  %v489_v3 = vmul.f32 %v8448_v21, %v360_v61 }
  0xe6   : > { %6404 = vmatmul.mubr.msk.f32.gmra.mrb[34].mxu0 %vm770_vm0, %v453_v12  ;;  %7216 = vmatprep.subr.msk.bf16.mxu1 %vm8313_vm1, %v7214_v10  ;;  %v352_v12 = vld [vmem:[%s8437_s13 + $0x2f8] sm:$0xff]  ;;  %v485_v50 = vmul.f32 %v8448_v21, %v356_v46 }
  0xe7   : > { %6460 = vmatmul.mubr.msk.f32.gmra.mrb[34].mxu1 %vm770_vm0, %v469_v13  ;;  %6406 = vmatprep.mubr.msk.f32.mxu0 %vm770_vm0, %v454_v14  ;;  %v353_v13 = vld [vmem:[%s8437_s13 + $0x300] sm:$0xff]  ;;  %v7232_v14 = vpack.c.bf16 %v635_v5, %v634_v4  ;;  %v505_v4 = vmul.f32 %v8448_v21, %v376_v63 }
  0xe8   : > { %6462 = vmatprep.mubr.msk.f32.mxu1 %vm770_vm0, %v470_v17  ;;  %v481_v17 = vmul.f32 %v8448_v21, %v352_v12  ;;  %v482_v18 = vmul.f32 %v8448_v21, %v353_v13  ;;  %v492_v13 = vmul.f32 %v8448_v21, %v363_v9 }
  0xea   : > { %6407 = vmatmul.mubr.msk.f32.gmra.mrb[36].mxu0 %vm770_vm0, %v455_v25  ;;  %v7190_v25 = vpack.c.bf16 %v621_v22, %v620_v20  ;;  %v381_v22 = vld [vmem:[%s8437_s13 + $0x3e0] sm:$0xff] }
  0xeb   : > { %6463 = vmatmul.mubr.msk.f32.gmra.mrb[36].mxu1 %vm770_vm0, %v471_v26  ;;  %6409 = vmatprep.mubr.msk.f32.mxu0 %vm770_vm0, %v456_v27  ;;  %v7238_v26 = vpack.c.bf16 %v637_v24, %v636_v23  ;;  %v622_v27 = vld [vmem:[%s8309_s7 + $0x360] sm:$0xff] }
  0xec   : > { %6465 = vmatprep.mubr.msk.f32.mxu1 %vm770_vm0, %v472_v30  ;;  %7171 = vmatpush3.bf16.xpose.msk.msra.mxu0 %vm8313_vm1, %v7166_v6  ;;  %v463_v6 = vmul.f32 %v8448_v21, %v334_v60  ;;  %v639_v30 = vld [vmem:[%s8309_s7 + $0x3e8] sm:$0xff]  ;;  %v7196_v31 = vpack.c.bf16 %v623_v28, %v622_v27  ;;  %v488_v60 = vmul.f32 %v8448_v21, %v359_v56 }
  0xed   : > { %7219 = vmatpush3.bf16.xpose.msk.msra.mxu1 %vm8313_vm1, %v7214_v10  ;;  %7174 = vmatprep.subr.msk.bf16.mxu0 %vm8313_vm1, %v7172_v29  ;;  %v7184_v10 = vpack.c.bf16 %v619_v2, %v618_v1  ;;  %v361_v1 = vld [vmem:[%s8437_s13 + $0x340] sm:$0xff]  ;;  %v366_v27 = vld [vmem:[%s8437_s13 + $0x368] sm:$0xff]  ;;  %v510_v28 = vmul.f32 %v8448_v21, %v381_v22 }
  0xee   : > { %6410 = vmatmul.mubr.msk.f32.gmra.mrb[38].mxu0 %vm770_vm0, %v457_v35  ;;  %7222 = vmatprep.subr.msk.bf16.mxu1 %vm8313_vm1, %v7220_v33  ;;  %v640_v35 = vld [vmem:[%s8309_s7 + $0x3f0] sm:$0xff]  ;;  %v377_v2 = vld [vmem:[%s8437_s13 + $0x3c0] sm:$0xff]  ;;  %v490_v5 = vmul.f32 %v8448_v21, %v361_v1 }
  0xef   : > { %6466 = vmatmul.mubr.msk.f32.gmra.mrb[38].mxu1 %vm770_vm0, %v473_v36  ;;  %6412 = vmatprep.mubr.msk.f32.mxu0 %vm770_vm0, %v458_v37  ;;  %v641_v36 = vld [vmem:[%s8309_s7 + $0x3f8] sm:$0xff] }
  0xf0   : > { %6468 = vmatprep.mubr.msk.f32.mxu1 %vm770_vm0, %v474_v40  ;;  %v7250_v38 = vpack.c.bf16 %v641_v36, %v640_v35  ;;  %v370_v40 = vld [vmem:[%s8437_s13 + $0x388] sm:$0xff]  ;;  %v495_v36 = vmul.f32 %v8448_v21, %v366_v27 }
  0xf1   : > { %v499_v44 = vmul.f32 %v8448_v21, %v370_v40 }
  0xf2   : > { %6413 = vmatmul.mubr.msk.f32.gmra.mrb[40].mxu0 %vm770_vm0, %v459_v47  ;;  %v372_v47 = vld [vmem:[%s8437_s13 + $0x398] sm:$0xff] }
  0xf3   : > { %6469 = vmatmul.mubr.msk.f32.gmra.mrb[40].mxu1 %vm770_vm0, %v475_v48  ;;  %6415 = vmatprep.mubr.msk.f32.mxu0 %vm770_vm0, %v460_v49  ;;  %v357_v48 = vld [vmem:[%s8437_s13 + $0x320] sm:$0xff] }
  0xf4   : > { %6471 = vmatprep.mubr.msk.f32.mxu1 %vm770_vm0, %v476_v52  ;;  %7177 = vmatpush3.bf16.xpose.msk.msra.mxu0 %vm8313_vm1, %v7172_v29  ;;  %v638_v29 = vld [vmem:[%s8309_s7 + $0x3e0] sm:$0xff]  ;;  %v486_v52 = vmul.f32 %v8448_v21, %v357_v48 }
  0xf5   : > { %7225 = vmatpush3.bf16.xpose.msk.msra.mxu1 %vm8313_vm1, %v7220_v33  ;;  %7180 = vmatprep.subr.msk.bf16.mxu0 %vm8313_vm1, %v7178_v51  ;;  %v7244_v32 = vpack.c.bf16 %v639_v30, %v638_v29  ;;  %v624_v33 = vld [vmem:[%s8309_s7 + $0x370] sm:$0xff]  ;;  %v373_v49 = vld [vmem:[%s8437_s13 + $0x3a0] sm:$0xff]  ;;  %v382_v30 = vld [vmem:[%s8437_s13 + $0x3e8] sm:$0xff]  ;;  %s8160_s7 = sshll.u32 %s8223_s6, 4  ;;  %s8161_s7 = int_to_ptr.vmem [resolvable:$false] %s8160_s7 }
  0xf6   : > { %6416 = vmatmul.mubr.msk.f32.gmra.mrb[42].mxu0 %vm770_vm0, %v461_v57  ;;  %7228 = vmatprep.subr.msk.bf16.mxu1 %vm8313_vm1, %v7226_v55  ;;  %v7202_v37 = vpack.c.bf16 %v625_v34, %v624_v33  ;;  %v502_v54 = vmul.f32 %v8448_v21, %v373_v49  ;;  %v375_v57 = vld [vmem:[%s8437_s13 + $0x3b0] sm:$0xff]  ;;  %s8162_s8 = scalar_lea.vmem %s8161_s7, 1024  ;;  %p8163_p0 = scmp.lt.s32.totalorder %s11135_s24, %s8161_s7 }
  0xf7   : > { %6472 = vmatmul.mubr.msk.f32.gmra.mrb[42].mxu1 %vm770_vm0, %v477_v58  ;;  %6418 = vmatprep.mubr.msk.f32.mxu0 %vm770_vm0, %v462_v59  ;;  %v487_v58 = vmul.f32 %v8448_v21, %v358_v53  ;;  %v383_v34 = vld [vmem:[%s8437_s13 + $0x3f0] sm:$0xff]  ;;  %p8164_p1 = scmp.lt.s32.totalorder %s8162_s8, %s8156_s5 }
  0xf8   : > { %6474 = vmatprep.mubr.msk.f32.mxu1 %vm770_vm0, %v478_v62  ;;  %v504_v62 = vmul.f32 %v8448_v21, %v375_v57  ;;  %v512_v40 = vmul.f32 %v8448_v21, %v383_v34 }
  0xf9   : > { %p8165_p2 = por %p8164_p1, %p8163_p0 }
  0xfa   : > { %6419 = vmatmul.mubr.msk.f32.gmra.mrb[44].mxu0 %vm770_vm0, %v463_v6  ;;  %v362_v6 = vld [vmem:[%s8437_s13 + $0x348] sm:$0xff] }
  0xfb   : > { %6475 = vmatmul.mubr.msk.f32.gmra.mrb[44].mxu1 %vm770_vm0, %v479_v7  ;;  %6421 = vmatprep.mubr.msk.f32.mxu0 %vm770_vm0, %v464_v8  ;;  %v506_v7 = vmul.f32 %v8448_v21, %v377_v2  ;;  %v378_v8 = vld [vmem:[%s8437_s13 + $0x3c8] sm:$0xff]  ;;  %p8166_p3 = pnand %p8165_p2, %p8159_p13 }
  0xfc   : > { %6477 = vmatprep.mubr.msk.f32.mxu1 %vm770_vm0, %v480_v11  ;;  %7183 = vmatpush3.bf16.xpose.msk.msra.mxu0 %vm8313_vm1, %v7178_v51  ;;  %v501_v51 = vmul.f32 %v8448_v21, %v372_v47  ;;  %v491_v11 = vmul.f32 %v8448_v21, %v362_v6  ;;  %v507_v12 = vmul.f32 %v8448_v21, %v378_v8  ;;  %v11186_v6 = vmov 0.0|0.0   ;;  %v754_v8 = vld [vmem:[%s8369_s10 + $0x380] sm:$0xff] }
  0xfd   : > { %7231 = vmatpush3.bf16.xpose.msk.msra.mxu1 %vm8313_vm1, %v7226_v55  ;;  %7186 = vmatprep.subr.msk.bf16.mxu0 %vm8313_vm1, %v7184_v10  ;;  %v374_v55 = vld [vmem:[%s8437_s13 + $0x3a8] sm:$0xff]  ;;  %v513_v47 = vmul.f32 %v8448_v21, %v384_v42 }
  0xfe   : > { %6422 = vmatmul.mubr.msk.f32.gmra.mrb[46].mxu0 %vm770_vm0, %v465_v16  ;;  %7234 = vmatprep.subr.msk.bf16.mxu1 %vm8313_vm1, %v7232_v14  ;;  %v503_v59 = vmul.f32 %v8448_v21, %v374_v55 }
  0xff   : > { %6478 = vmatmul.mubr.msk.f32.gmra.mrb[46].mxu1 %vm770_vm0, %v481_v17  ;;  %6512 = vmatprep.mubr.msk.f32.mxu0 %vm770_vm0, %v482_v18  ;;  %v380_v17 = vld [vmem:[%s8437_s13 + $0x3d8] sm:$0xff]  ;;  %v365_v18 = vld [vmem:[%s8437_s13 + $0x360] sm:$0xff] }
 0x100   : > { %6568 = vmatprep.mubr.msk.f32.mxu1 %vm770_vm0, %v498_v19 }
 0x104   : > { %7189 = vmatpush3.bf16.xpose.msk.msra.mxu0 %vm8313_vm1, %v7184_v10  ;;  %v379_v10 = vld [vmem:[%s8437_s13 + $0x3d0] sm:$0xff] }
 0x105   : > { %7237 = vmatpush3.bf16.xpose.msk.msra.mxu1 %vm8313_vm1, %v7232_v14  ;;  %7192 = vmatprep.subr.msk.bf16.mxu0 %vm8313_vm1, %v7190_v25  ;;  %v364_v14 = vld [vmem:[%s8437_s13 + $0x358] sm:$0xff]  ;;  %v508_v15 = vmul.f32 %v8448_v21, %v379_v10  ;;  %v739_v10 = vld [vmem:[%s8369_s10 + $0x308] sm:$0xff] }
 0x106   : > { %7240 = vmatprep.subr.msk.bf16.mxu1 %vm8313_vm1, %v7238_v26  ;;  %v493_v24 = vmul.f32 %v8448_v21, %v364_v14  ;;  %v756_v14 = vld [vmem:[%s8369_s10 + $0x390] sm:$0xff] }
 0x10c   : > { %7195 = vmatpush3.bf16.xpose.msk.msra.mxu0 %vm8313_vm1, %v7190_v25  ;;  %v509_v25 = vmul.f32 %v8448_v21, %v380_v17  ;;  %v741_v17 = vld [vmem:[%s8369_s10 + $0x318] sm:$0xff] }
 0x10d   : > { %7243 = vmatpush3.bf16.xpose.msk.msra.mxu1 %vm8313_vm1, %v7238_v26  ;;  %7198 = vmatprep.subr.msk.bf16.mxu0 %vm8313_vm1, %v7196_v31  ;;  %v494_v26 = vmul.f32 %v8448_v21, %v365_v18  ;;  %v757_v18 = vld [vmem:[%s8369_s10 + $0x398] sm:$0xff] }
 0x10e   : > { %7246 = vmatprep.subr.msk.bf16.mxu1 %vm8313_vm1, %v7244_v32 }
 0x114   : > { %7201 = vmatpush3.bf16.xpose.msk.msra.mxu0 %vm8313_vm1, %v7196_v31  ;;  %v367_v31 = vld [vmem:[%s8437_s13 + $0x370] sm:$0xff] }
 0x115   : > { %7249 = vmatpush3.bf16.xpose.msk.msra.mxu1 %vm8313_vm1, %v7244_v32  ;;  %7204 = vmatprep.subr.msk.bf16.mxu0 %vm8313_vm1, %v7202_v37 }
 0x116   : > { %7252 = vmatprep.subr.msk.bf16.mxu1 %vm8313_vm1, %v7250_v38 }
 0x11c   : > { %7207 = vmatpush3.bf16.xpose.msk.msra.mxu0 %vm8313_vm1, %v7202_v37  ;;  %v511_v37 = vmul.f32 %v8448_v21, %v382_v30  ;;  %v758_v30 = vld [vmem:[%s8369_s10 + $0x3a0] sm:$0xff] }
 0x11d   : > { %7255 = vmatpush3.bf16.xpose.msk.msra.mxu1 %vm8313_vm1, %v7250_v38  ;;  %v496_v38 = vmul.f32 %v8448_v21, %v367_v31  ;;  %7256 = vmatprep.subr.bf16.mxu0 %v11186_v6  ;;  %vm4776_vm1 = vcmask 1048512  }
 0x11e   : > { %7280 = vmatprep.subr.bf16.mxu1 %v11186_v6 }
 0x123   : > { %6513 = vmatmul.mubr.msk.f32.vlgmr.msra.gmra.mrb[48].mxu0 %vm770_vm0, %v483_v43  ;;  %v9209_v43 = vpop.trf.xlu0 }
 0x124   : > { %6569 = vmatmul.mubr.msk.f32.vlgmr.msra.gmra.mrb[48].mxu1 %vm770_vm0, %v499_v44  ;;  %6515 = vmatprep.mubr.msk.f32.mxu0 %vm770_vm0, %v484_v45  ;;  %11331 = vst [vmem:[#allocation8_spill] sm:$0xff] %v9209_v43 }
 0x125   : > { %6571 = vmatprep.mubr.msk.f32.mxu1 %vm770_vm0, %v500_v0  ;;  %v497_v0 = vmul.f32 %v8448_v21, %v368_v39  ;;  %v743_v39 = vld [vmem:[%s8369_s10 + $0x328] sm:$0xff] }
 0x127   : > { %6516 = vmatmul.mubr.msk.f32.gmra.mrb[50].mxu0 %vm770_vm0, %v485_v50  ;;  %v9226_v49 = vpop.trf.xlu0 }
 0x128   : > { %6572 = vmatmul.mubr.msk.f32.gmra.mrb[50].mxu1 %vm770_vm0, %v501_v51  ;;  %6518 = vmatprep.mubr.msk.f32.mxu0 %vm770_vm0, %v486_v52  ;;  %11333 = vst [vmem:[#allocation10_spill] sm:$0xff] %v9226_v49 }
 0x129   : > { %6574 = vmatprep.mubr.msk.f32.mxu1 %vm770_vm0, %v502_v54 }
 0x12b   : > { %6519 = vmatmul.mubr.msk.f32.gmra.mrb[52].mxu0 %vm770_vm0, %v487_v58 }
 0x12c   : > { %6575 = vmatmul.mubr.msk.f32.gmra.mrb[52].mxu1 %vm770_vm0, %v503_v59  ;;  %6521 = vmatprep.mubr.msk.f32.mxu0 %vm770_vm0, %v488_v60  ;;  %v9254_v60 = vpop.trf.xlu1 }
 0x12d   : > { %6577 = vmatprep.mubr.msk.f32.mxu1 %vm770_vm0, %v504_v62  ;;  %11339 = vst [vmem:[#allocation16_spill] sm:$0xff] %v9254_v60 }
 0x12f   : > { %6522 = vmatmul.mubr.msk.f32.gmra.mrb[54].mxu0 %vm770_vm0, %v489_v3 }
 0x130   : > { %6578 = vmatmul.mubr.msk.f32.gmra.mrb[54].mxu1 %vm770_vm0, %v505_v4  ;;  %6524 = vmatprep.mubr.msk.f32.mxu0 %vm770_vm0, %v490_v5 }
 0x131   : > { %6580 = vmatprep.mubr.msk.f32.mxu1 %vm770_vm0, %v506_v7  ;;  %v738_v7 = vld [vmem:[%s8369_s10 + $0x300] sm:$0xff] }
 0x132   : > { %v7605_v9 = vpack.i.bf16 %v754_v8, %v738_v7 }
 0x133   : > { %6525 = vmatmul.mubr.msk.f32.gmra.mrb[56].mxu0 %vm770_vm0, %v491_v11  ;;  %v9163_v16 = vpop.f32.mrb[0].mxu0  ;;  %v755_v11 = vld [vmem:[%s8369_s10 + $0x388] sm:$0xff] }
 0x134   : > { %6581 = vmatmul.mubr.msk.f32.gmra.mrb[56].mxu1 %vm770_vm0, %v507_v12  ;;  %6527 = vmatprep.mubr.msk.f32.mxu0 %vm770_vm0, %v492_v13  ;;  %v9169_v19 = vpop.f32.mrb[0].mxu1  ;;  %v9171_v20 = vpop.f32.mrb[1].mxu0  ;;  %v7607_v12 = vpack.i.bf16 %v755_v11, %v739_v10  ;;  %v740_v13 = vld [vmem:[%s8369_s10 + $0x310] sm:$0xff] }
 0x135   : > { %6583 = vmatprep.mubr.msk.f32.mxu1 %vm770_vm0, %v508_v15  ;;  %v9175_v23 = vpop.f32.mrb[1].mxu1  ;;  %2701 = vmax.xlane.f32.xlu0 %v9163_v16  ;;  %v7609_v15 = vpack.i.bf16 %v756_v14, %v740_v13  ;;  %v760_v10 = vld [vmem:[%s8369_s10 + $0x3b0] sm:$0xff] }
 0x137   : > { %6528 = vmatmul.mubr.msk.f32.gmra.mrb[58].mxu0 %vm770_vm0, %v493_v24  ;;  %v9184_v29 = vpop.f32.mrb[2].mxu0 }
 0x138   : > { %6584 = vmatmul.mubr.msk.f32.gmra.mrb[58].mxu1 %vm770_vm0, %v509_v25  ;;  %6530 = vmatprep.mubr.msk.f32.mxu0 %vm770_vm0, %v494_v26  ;;  %v9190_v32 = vpop.f32.mrb[2].mxu1  ;;  %v9192_v33 = vpop.f32.mrb[3].mxu0  ;;  %v7611_v26 = vpack.i.bf16 %v757_v18, %v741_v17  ;;  %v745_v17 = vld [vmem:[%s8369_s10 + $0x338] sm:$0xff] }
 0x139   : > { %11329 = vst [vmem:[#allocation6_spill] sm:$0xff] %v9190_v32  ;;  %6586 = vmatprep.mubr.msk.f32.mxu1 %vm770_vm0, %v510_v28  ;;  %v9196_v35 = vpop.f32.mrb[3].mxu1  ;;  %2699 = vmax.xlane.f32.xlu0 %v9171_v20  ;;  %v742_v28 = vld [vmem:[%s8369_s10 + $0x320] sm:$0xff]  ;;  %v761_v18 = vld [vmem:[%s8369_s10 + $0x3b8] sm:$0xff] }
 0x13a   : > { %2703 = vmax.xlane.f32.xlu1 %v9192_v33 }
 0x13b   : > { %6531 = vmatmul.mubr.msk.f32.gmra.mrb[60].mxu0 %vm770_vm0, %v495_v36  ;;  %v9206_v41 = vpop.f32.mrb[4].mxu0 }
 0x13c   : > { %11330 = vst [vmem:[#allocation7_spill] sm:$0xff] %v9206_v41  ;;  %6587 = vmatmul.mubr.msk.f32.gmra.mrb[60].mxu1 %vm770_vm0, %v511_v37  ;;  %6533 = vmatprep.mubr.msk.f32.mxu0 %vm770_vm0, %v496_v38  ;;  %v9213_v44 = vpop.f32.mrb[4].mxu1  ;;  %v9215_v45 = vpop.f32.mrb[5].mxu0  ;;  %v7613_v37 = vpack.i.bf16 %v758_v30, %v742_v28 }
 0x13d   : > { %11332 = vst [vmem:[#allocation9_spill] sm:$0xff] %v9213_v44  ;;  %6589 = vmatprep.mubr.msk.f32.mxu1 %vm770_vm0, %v512_v40  ;;  %v9218_v46 = vpop.f32.mrb[5].mxu1  ;;  %2731 = vmax.xlane.f32.xlu0 %v9175_v23  ;;  %v759_v40 = vld [vmem:[%s8369_s10 + $0x3a8] sm:$0xff] }
 0x13e   : > { %v7615_v7 = vpack.i.bf16 %v759_v40, %v743_v39  ;;  %v746_v40 = vld [vmem:[%s8369_s10 + $0x340] sm:$0xff] }
 0x13f   : > { %6534 = vmatmul.mubr.msk.f32.gmra.mrb[62].mxu0 %vm770_vm0, %v497_v0  ;;  %v9224_v48 = vpop.f32.mrb[6].mxu0 }
 0x140   : > { %6590 = vmatmul.mubr.msk.f32.gmra.mrb[62].mxu1 %vm770_vm0, %v513_v47  ;;  %v9229_v50 = vpop.f32.mrb[6].mxu1  ;;  %v9231_v51 = vpop.f32.mrb[7].mxu0  ;;  %vm4769_vm0 = vcmask 982912  }
 0x141   : > { %11334 = vst [vmem:[#allocation11_spill] sm:$0xff] %v9229_v50  ;;  %v9233_v52 = vpop.f32.mrb[7].mxu1  ;;  %2735 = vmax.xlane.f32.xlu0 %v9196_v35 }
 0x143   : > { %v9236_v53 = vpop.f32.mrb[8].mxu0 }
 0x144   : > { %11335 = vst [vmem:[#allocation12_spill] sm:$0xff] %v9236_v53  ;;  %v9238_v54 = vpop.f32.mrb[8].mxu1  ;;  %v9240_v21 = vpop.f32.mrb[9].mxu0 }
 0x145   : > { %11336 = vst [vmem:[#allocation13_spill] sm:$0xff] %v9238_v54  ;;  %v9242_v55 = vpop.f32.mrb[9].mxu1  ;;  %2707 = vmax.xlane.f32.xlu0 %v9215_v45 }
 0x147   : > { %v9245_v56 = vpop.f32.mrb[10].mxu0 }
 0x148   : > { %11337 = vst [vmem:[#allocation14_spill] sm:$0xff] %v9245_v56  ;;  %v9247_v57 = vpop.f32.mrb[10].mxu1  ;;  %v9249_v58 = vpop.f32.mrb[11].mxu0 }
 0x149   : > { %11338 = vst [vmem:[#allocation15_spill] sm:$0xff] %v9247_v57  ;;  %v9251_v59 = vpop.f32.mrb[11].mxu1  ;;  %2739 = vmax.xlane.f32.xlu0 %v9218_v46 }
 0x14b   : > { %v9256_v61 = vpop.f32.mrb[12].mxu0 }
 0x14c   : > { %11340 = vst [vmem:[#allocation17_spill] sm:$0xff] %v9256_v61  ;;  %v9258_v62 = vpop.f32.mrb[12].mxu1  ;;  %v9260_v63 = vpop.f32.mrb[13].mxu0 }
 0x14d   : > { %11341 = vst [vmem:[#allocation18_spill] sm:$0xff] %v9258_v62  ;;  %v9262_v1 = vpop.f32.mrb[13].mxu1  ;;  %2711 = vmax.xlane.f32.xlu0 %v9231_v51 }
 0x14f   : > { %v9265_v2 = vpop.f32.mrb[14].mxu0 }
 0x150   : > { %11342 = vst [vmem:[#allocation19_spill] sm:$0xff] %v9265_v2  ;;  %v9267_v3 = vpop.f32.mrb[14].mxu1  ;;  %v9269_v4 = vpop.f32.mrb[15].mxu0 }
 0x151   : > { %11343 = vst [vmem:[#allocation20_spill] sm:$0xff] %v9267_v3  ;;  %v9271_v5 = vpop.f32.mrb[15].mxu1  ;;  %2743 = vmax.xlane.f32.xlu0 %v9233_v52 }
 0x152   : > { %11344 = vst [vmem:[#allocation21_spill] sm:$0xff] %v9271_v5 }
 0x155   : > { %2715 = vmax.xlane.f32.xlu0 %v9240_v21 }
 0x159   : > { %2747 = vmax.xlane.f32.xlu0 %v9242_v55 }
 0x15d   : > { %2719 = vmax.xlane.f32.xlu0 %v9249_v58 }
 0x161   : > { %2751 = vmax.xlane.f32.xlu0 %v9251_v59 }
 0x165   : > { %2723 = vmax.xlane.f32.xlu0 %v9260_v63 }
 0x169   : > { %2755 = vmax.xlane.f32.xlu0 %v9262_v1 }
 0x16d   : > { %7606 = vxpose.xlu1.b32.start [1/16] (narrow) %v7605_v9, 8  ;;  %2727 = vmax.xlane.f32.xlu0 %v9269_v4  ;;  %v744_v9 = vld [vmem:[%s8369_s10 + $0x330] sm:$0xff] }
 0x16e   : > { %v7617_v14 = vpack.i.bf16 %v760_v10, %v744_v9 }
 0x171   : > { %7608 = vxpose.xlu1.b32.cont [2/16] (narrow) %v7607_v12, 8  ;;  %2759 = vmax.xlane.f32.xlu0 %v9271_v5 }
 0x174   : > { %v9292_v22 = vpop.f32.mrb[16].mxu0 }
 0x175   : > { %11345 = vst [vmem:[#allocation22_spill] sm:$0xff] %v9292_v22  ;;  %v9294_v24 = vpop.f32.mrb[16].mxu1  ;;  %7610 = vxpose.xlu1.b32.cont [3/16] (narrow) %v7609_v15, 8  ;;  %v9296_v25 = vpop.f32.mrb[17].mxu0 }
 0x176   : > { %11346 = vst [vmem:[#allocation23_spill] sm:$0xff] %v9296_v25  ;;  %v9298_v27 = vpop.f32.mrb[17].mxu1  ;;  %2763 = vmax.xlane.f32.xlu0 %v9296_v25 }
 0x177   : > { %11347 = vst [vmem:[#allocation24_spill] sm:$0xff] %v9298_v27 }
 0x178   : > { %v9303_v31 = vpop.f32.mrb[18].mxu0 }
 0x179   : > { %11348 = vst [vmem:[#allocation25_spill] sm:$0xff] %v9303_v31  ;;  %v9305_v34 = vpop.f32.mrb[18].mxu1  ;;  %7612 = vxpose.xlu1.b32.cont [4/16] (narrow) %v7611_v26, 8  ;;  %v9307_v36 = vpop.f32.mrb[19].mxu0 }
 0x17a   : > { %11349 = vst [vmem:[#allocation26_spill] sm:$0xff] %v9305_v34  ;;  %11350 = vst [vmem:[#allocation27_spill] sm:$0xff] %v9307_v36  ;;  %v9309_v38 = vpop.f32.mrb[19].mxu1  ;;  %2795 = vmax.xlane.f32.xlu0 %v9298_v27 }
 0x17c   : > { %v9314_v42 = vpop.f32.mrb[20].mxu0 }
 0x17d   : > { %v9316_v0 = vpop.f32.mrb[20].mxu1  ;;  %7614 = vxpose.xlu1.b32.cont [5/16] (narrow) %v7613_v37, 8  ;;  %v9318_v47 = vpop.f32.mrb[21].mxu0  ;;  %v7619_v37 = vpack.i.bf16 %v761_v18, %v745_v17  ;;  %v747_v17 = vld [vmem:[%s8369_s10 + $0x348] sm:$0xff] }
 0x17e   : > { %11351 = vst [vmem:[#allocation28_spill] sm:$0xff] %v9316_v0  ;;  %11352 = vst [vmem:[#allocation29_spill] sm:$0xff] %v9318_v47  ;;  %v9320_v8 = vpop.f32.mrb[21].mxu1  ;;  %2767 = vmax.xlane.f32.xlu0 %v9307_v36  ;;  %v763_v18 = vld [vmem:[%s8369_s10 + $0x3c8] sm:$0xff]  ;;  %v768_v0 = vld [vmem:[%s8369_s10 + $0x3f0] sm:$0xff] }
 0x17f   : > { %v7623_v36 = vpack.i.bf16 %v763_v18, %v747_v17  ;;  %v749_v17 = vld [vmem:[%s8369_s10 + $0x358] sm:$0xff] }
 0x180   : > { %v9325_v11 = vpop.f32.mrb[22].mxu0  ;;  %v765_v18 = vld [vmem:[%s8369_s10 + $0x3d8] sm:$0xff] }
 0x181   : > { %v9327_v12 = vpop.f32.mrb[22].mxu1  ;;  %7616 = vxpose.xlu1.b32.cont [6/16] (narrow) %v7615_v7, 8  ;;  %v9329_v13 = vpop.f32.mrb[23].mxu0  ;;  %v762_v7 = vld [vmem:[%s8369_s10 + $0x3c0] sm:$0xff] }
 0x182   : > { %11353 = vst [vmem:[#allocation30_spill] sm:$0xff] %v9327_v12  ;;  %11354 = vst [vmem:[#allocation31_spill] sm:$0xff] %v9329_v13  ;;  %v9331_v15 = vpop.f32.mrb[23].mxu1  ;;  %2799 = vmax.xlane.f32.xlu0 %v9309_v38  ;;  %v7621_v49 = vpack.i.bf16 %v762_v7, %v746_v40  ;;  %v748_v40 = vld [vmem:[%s8369_s10 + $0x350] sm:$0xff] }
 0x183   : > { %11355 = vst [vmem:[#allocation32_spill] sm:$0xff] %v9331_v15  ;;  %v764_v7 = vld [vmem:[%s8369_s10 + $0x3d0] sm:$0xff] }
 0x184   : > { %v9336_v26 = vpop.f32.mrb[24].mxu0  ;;  %v752_v12 = vld [vmem:[%s8369_s10 + $0x370] sm:$0xff] }
 0x185   : > { %v9338_v28 = vpop.f32.mrb[24].mxu1  ;;  %7618 = vxpose.xlu1.b32.cont [7/16] (narrow) %v7617_v14, 8  ;;  %v9340_v30 = vpop.f32.mrb[25].mxu0 }
 0x186   : > { %11356 = vst [vmem:[#allocation33_spill] sm:$0xff] %v9338_v28  ;;  %11357 = vst [vmem:[#allocation34_spill] sm:$0xff] %v9340_v30  ;;  %v9342_v39 = vpop.f32.mrb[25].mxu1  ;;  %2771 = vmax.xlane.f32.xlu0 %v9318_v47 }
 0x187   : > { %11358 = vst [vmem:[#allocation35_spill] sm:$0xff] %v9342_v39 }
 0x188   : > { %v9347_v9 = vpop.f32.mrb[26].mxu0 }
 0x189   : > { %11359 = vst [vmem:[#allocation36_spill] sm:$0xff] %v9347_v9  ;;  %v9349_v10 = vpop.f32.mrb[26].mxu1  ;;  %7620 = vxpose.xlu1.b32.cont [8/16] (narrow) %v7619_v37, 8  ;;  %v9351_v6 = vpop.f32.mrb[27].mxu0 }
 0x18a   : > { %11360 = vst [vmem:[#allocation37_spill] sm:$0xff] %v9349_v10  ;;  %11361 = vst [vmem:[#allocation38_spill] sm:$0xff] %v9351_v6  ;;  %v9353_v14 = vpop.f32.mrb[27].mxu1  ;;  %2803 = vmax.xlane.f32.xlu0 %v9320_v8 }
 0x18b   : > { %11362 = vst [vmem:[#allocation39_spill] sm:$0xff] %v9353_v14 }
 0x18c   : > { %v9358_v60 = vpop.f32.mrb[28].mxu0 }
 0x18d   : > { %11363 = vst [vmem:[#allocation40_spill] sm:$0xff] %v9358_v60  ;;  %v9360_v43 = vpop.f32.mrb[28].mxu1  ;;  %7622 = vxpose.xlu1.b32.cont [9/16] (narrow) %v7621_v49, 8  ;;  %v9362_v47 = vpop.f32.mrb[29].mxu0  ;;  %v7625_v49 = vpack.i.bf16 %v764_v7, %v748_v40  ;;  %v751_v40 = vld [vmem:[%s8369_s10 + $0x368] sm:$0xff] }
 0x18e   : > { %11364 = vst [vmem:[#allocation41_spill] sm:$0xff] %v9360_v43  ;;  %11365 = vst [vmem:[#allocation42_spill] sm:$0xff] %v9362_v47  ;;  %v9364_v37 = vpop.f32.mrb[29].mxu1  ;;  %2775 = vmax.xlane.f32.xlu0 %v9329_v13  ;;  %v7627_v13 = vpack.i.bf16 %v765_v18, %v749_v17  ;;  %v767_v7 = vld [vmem:[%s8369_s10 + $0x3e8] sm:$0xff]  ;;  %v753_v17 = vld [vmem:[%s8369_s10 + $0x378] sm:$0xff] }
 0x18f   : > { %11366 = vst [vmem:[#allocation43_spill] sm:$0xff] %v9364_v37  ;;  %v769_v18 = vld [vmem:[%s8369_s10 + $0x3f8] sm:$0xff] }
 0x190   : > { %v9369_v25 = vpop.f32.mrb[30].mxu0 }
 0x191   : > { %11367 = vst [vmem:[#allocation44_spill] sm:$0xff] %v9369_v25  ;;  %v9371_v5 = vpop.f32.mrb[30].mxu1  ;;  %7624 = vxpose.xlu1.b32.cont [10/16] (narrow) %v7623_v36, 8  ;;  %v9373_v43 = vpop.f32.mrb[31].mxu0  ;;  %v766_v36 = vld [vmem:[%s8369_s10 + $0x3e0] sm:$0xff] }
 0x192   : > { %11368 = vst [vmem:[#allocation45_spill] sm:$0xff] %v9371_v5  ;;  %11369 = vst [vmem:[#allocation46_spill] sm:$0xff] %v9373_v43  ;;  %v9375_v10 = vpop.f32.mrb[31].mxu1  ;;  %2807 = vmax.xlane.f32.xlu0 %v9331_v15  ;;  %v750_v5 = vld [vmem:[%s8369_s10 + $0x360] sm:$0xff]  ;;  %v7631_v15 = vpack.i.bf16 %v767_v7, %v751_v40 }
 0x193   : > { %11370 = vst [vmem:[#allocation47_spill] sm:$0xff] %v9375_v10  ;;  %v7629_v28 = vpack.i.bf16 %v766_v36, %v750_v5 }
 0x195   : > { %7626 = vxpose.xlu1.b32.cont [11/16] (narrow) %v7625_v49, 8  ;;  %v7633_v49 = vpack.i.bf16 %v768_v0, %v752_v12 }
 0x196   : > { %2779 = vmax.xlane.f32.xlu0 %v9340_v30  ;;  %v7635_v30 = vpack.i.bf16 %v769_v18, %v753_v17 }
 0x199   : > { %7628 = vxpose.xlu1.b32.cont [12/16] (narrow) %v7627_v13, 8 }
 0x19a   : > { %2811 = vmax.xlane.f32.xlu0 %v9342_v39 }
 0x19d   : > { %7630 = vxpose.xlu1.b32.cont [13/16] (narrow) %v7629_v28, 8 }
 0x19e   : > { %2783 = vmax.xlane.f32.xlu0 %v9351_v6 }
 0x1a1   : > { %7632 = vxpose.xlu1.b32.cont [14/16] (narrow) %v7631_v15, 8 }
 0x1a2   : > { %2815 = vmax.xlane.f32.xlu0 %v9353_v14 }
 0x1a5   : > { %7634 = vxpose.xlu1.b32.cont [15/16] (narrow) %v7633_v49, 8 }
 0x1a6   : > { %2787 = vmax.xlane.f32.xlu0 %v9362_v47 }
 0x1a9   : > { %7636 = vxpose.xlu1.b32.end [16/16] (narrow) %v7635_v30, 8 }
 0x1aa   : > { %2819 = vmax.xlane.f32.xlu0 %v9364_v37 }
 0x1ae   : > { %2791 = vmax.xlane.f32.xlu0 %v9373_v43 }
 0x1b2   : > { %2823 = vmax.xlane.f32.xlu0 %v9375_v10 }
 0x1b5   : > { %v9396_v5 = vpop.f32.mrb[32].mxu0 }
 0x1b6   : > { %v9398_v13 = vpop.f32.mrb[32].mxu1  ;;  %v9400_v0 = vpop.f32.mrb[33].mxu0 }
 0x1b7   : > { %11371 = vst [vmem:[#allocation48_spill] sm:$0xff] %v9398_v13  ;;  %11372 = vst [vmem:[#allocation49_spill] sm:$0xff] %v9400_v0  ;;  %v9402_v12 = vpop.f32.mrb[33].mxu1  ;;  %2827 = vmax.xlane.f32.xlu0 %v9400_v0 }
 0x1b8   : > { %11373 = vst [vmem:[#allocation50_spill] sm:$0xff] %v9402_v12 }
 0x1b9   : > { %v9405_v15 = vpop.f32.mrb[34].mxu0 }
 0x1ba   : > { %v9407_v28 = vpop.f32.mrb[34].mxu1  ;;  %v9409_v30 = vpop.f32.mrb[35].mxu0 }
 0x1bb   : > { %11374 = vst [vmem:[#allocation51_spill] sm:$0xff] %v9407_v28  ;;  %11375 = vst [vmem:[#allocation52_spill] sm:$0xff] %v9409_v30  ;;  %v9411_v36 = vpop.f32.mrb[35].mxu1  ;;  %2859 = vmax.xlane.f32.xlu0 %v9402_v12 }
 0x1bc   : > { %11376 = vst [vmem:[#allocation53_spill] sm:$0xff] %v9411_v36 }
 0x1bd   : > { %v9414_v40 = vpop.f32.mrb[36].mxu0 }
 0x1be   : > { %v9416_v7 = vpop.f32.mrb[36].mxu1  ;;  %v9418_v49 = vpop.f32.mrb[37].mxu0 }
 0x1bf   : > { %11377 = vst [vmem:[#allocation54_spill] sm:$0xff] %v9416_v7  ;;  %11378 = vst [vmem:[#allocation55_spill] sm:$0xff] %v9418_v49  ;;  %v9420_v17 = vpop.f32.mrb[37].mxu1  ;;  %2831 = vmax.xlane.f32.xlu0 %v9409_v30 }
 0x1c0   : > { %11379 = vst [vmem:[#allocation56_spill] sm:$0xff] %v9420_v17 }
 0x1c1   : > { %v9423_v18 = vpop.f32.mrb[38].mxu0 }
 0x1c2   : > { %11380 = vst [vmem:[#allocation57_spill] sm:$0xff] %v9423_v18  ;;  %v9425_v0 = vpop.f32.mrb[38].mxu1  ;;  %v9427_v10 = vpop.f32.mrb[39].mxu0 }
 0x1c3   : > { %11381 = vst [vmem:[#allocation58_spill] sm:$0xff] %v9425_v0  ;;  %11382 = vst [vmem:[#allocation59_spill] sm:$0xff] %v9427_v10  ;;  %v9429_v37 = vpop.f32.mrb[39].mxu1  ;;  %v2702_v14 = vpop.xlane.xlu0 %2701  ;;  %2863 = vmax.xlane.f32.xlu0 %v9411_v36 }
 0x1c4   : > { %11383 = vst [vmem:[#allocation60_spill] sm:$0xff] %v9429_v37  ;;  %v2956_v12 = vsub.f32 %v9163_v16, %v2702_v14 }
 0x1c5   : > { %v9433_v39 = vpop.f32.mrb[40].mxu0 }
 0x1c6   : > { %11384 = vst [vmem:[#allocation61_spill] sm:$0xff] %v9433_v39  ;;  %v9435_v43 = vpop.f32.mrb[40].mxu1  ;;  %v9437_v47 = vpop.f32.mrb[41].mxu0  ;;  %v3085_v30 = vmul.f32 1.442695, %v2956_v12 }
 0x1c7   : > { %11385 = vst [vmem:[#allocation62_spill] sm:$0xff] %v9435_v43  ;;  %11386 = vst [vmem:[#allocation63_spill] sm:$0xff] %v9437_v47  ;;  %v9439_v6 = vpop.f32.mrb[41].mxu1  ;;  %v2700_v7 = vpop.xlane.xlu0 %2699  ;;  %2835 = vmax.xlane.f32.xlu0 %v9418_v49 }
 0x1c8   : > { %11387 = vst [vmem:[#allocation64_spill] sm:$0xff] %v9439_v6  ;;  %v2955_v0 = vsub.f32 %v9171_v20, %v2700_v7  ;;  %7644 = vpow2.f32 %v3085_v30 }
 0x1c9   : > { %v9443_v28 = vpop.f32.mrb[42].mxu0 }
 0x1ca   : > { %11388 = vst [vmem:[#allocation65_spill] sm:$0xff] %v9443_v28  ;;  %v3083_v13 = vmul.f32 1.442695, %v2955_v0  ;;  %v9445_v18 = vpop.f32.mrb[42].mxu1  ;;  %v9447_v16 = vpop.f32.mrb[43].mxu0 }
 0x1cb   : > { %11389 = vst [vmem:[#allocation66_spill] sm:$0xff] %v9445_v18  ;;  %11390 = vst [vmem:[#allocation67_spill] sm:$0xff] %v9447_v16  ;;  %v9449_v14 = vpop.f32.mrb[43].mxu1  ;;  %v9451_v43 = vpop.xlane.xlu0 %2731  ;;  %2867 = vmax.xlane.f32.xlu0 %v9420_v17 }
 0x1cc   : > { %11391 = vst [vmem:[#allocation68_spill] sm:$0xff] %v9449_v14  ;;  %7646 = vpow2.f32 %v3083_v13 }
 0x1cd   : > { %v9456_v39 = vpop.f32.mrb[44].mxu0 }
 0x1ce   : > { %11392 = vst [vmem:[#allocation69_spill] sm:$0xff] %v9456_v39  ;;  %v9458_v20 = vpop.f32.mrb[44].mxu1  ;;  %v9460_v0 = vpop.f32.mrb[45].mxu0 }
 0x1cf   : > { %11393 = vst [vmem:[#allocation70_spill] sm:$0xff] %v9458_v20  ;;  %11394 = vst [vmem:[#allocation71_spill] sm:$0xff] %v9460_v0  ;;  %v9462_v7 = vpop.f32.mrb[45].mxu1  ;;  %v9464_v18 = vpop.xlane.xlu0 %2735  ;;  %2839 = vmax.xlane.f32.xlu0 %v9427_v10 }
 0x1d0   : > { %11395 = vst [vmem:[#allocation72_spill] sm:$0xff] %v9462_v7  ;;  %2705 = vmax.xlane.f32.xlu1 %v9184_v29 }
 0x1d1   : > { %v9470_v13 = vpop.f32.mrb[46].mxu0 }
 0x1d2   : > { %11396 = vst [vmem:[#allocation73_spill] sm:$0xff] %v9470_v13  ;;  %v9472_v12 = vpop.f32.mrb[46].mxu1  ;;  %v9474_v39 = vpop.f32.mrb[47].mxu0  ;;  %v11401_v13 = vmov 0.0|0.0  }
 0x1d3   : > { %11397 = vst [vmem:[#allocation74_spill] sm:$0xff] %v9472_v12  ;;  %11398 = vst [vmem:[#allocation75_spill] sm:$0xff] %v9474_v39  ;;  %v9476_v20 = vpop.f32.mrb[47].mxu1  ;;  %v2708_v28 = vpop.xlane.xlu0 %2707  ;;  %2871 = vmax.xlane.f32.xlu0 %v9429_v37 }
 0x1d4   : > { %11399 = vst [vmem:[#allocation76_spill] sm:$0xff] %v9476_v20  ;;  %2709 = vmax.xlane.f32.xlu1 %v9206_v41  ;;  %v9480_v17 = vpop.eup %7644 }
 0x1d5   : > { %11400 = vst [vmem:[#allocation77_spill] sm:$0xff] %v9480_v17 }
 0x1d6   : > { %v7647_v10 = vpop.eup %7646 }
 0x1d7   : > { %v9482_v49 = vpop.xlane.xlu0 %2739  ;;  %2843 = vmax.xlane.f32.xlu0 %v9437_v47  ;;  %v7257_v30 = vpack.c.bf16 %v9480_v17, %v7647_v10 }
 0x1d8   : > { %2713 = vmax.xlane.f32.xlu1 %v9224_v48 }
 0x1d9   : > { %7258 = vmatpush3.bf16.xpose.msra.mxu0 %v7257_v30  ;;  %v2704_v30 = vpop.xlane.xlu1 %2703 }
 0x1da   : > { %7259 = vmatprep.subr.bf16.mxu0 %v11401_v13 }
 0x1db   : > { %v2712_v37 = vpop.xlane.xlu0 %2711  ;;  %2875 = vmax.xlane.f32.xlu0 %v9439_v6 }
 0x1dc   : > { %2717 = vmax.xlane.f32.xlu1 %v9236_v53  ;;  %v2957_v53 = vsub.f32 %v9192_v33, %v2704_v30  ;;  %v2961_v30 = vsub.f32 %v9231_v51, %v2712_v37 }
 0x1df   : > { %v9492_v41 = vpop.xlane.xlu0 %2743  ;;  %2847 = vmax.xlane.f32.xlu0 %v9447_v16 }
 0x1e0   : > { %2721 = vmax.xlane.f32.xlu1 %v9245_v56  ;;  %v3087_v56 = vmul.f32 1.442695, %v2957_v53 }
 0x1e2   : > { %7648 = vpow2.f32 %v3087_v56 }
 0x1e3   : > { %v2716_v12 = vpop.xlane.xlu0 %2715  ;;  %2879 = vmax.xlane.f32.xlu0 %v9449_v14  ;;  %v2959_v14 = vsub.f32 %v9215_v45, %v2708_v28  ;;  %v3095_v45 = vmul.f32 1.442695, %v2961_v30 }
 0x1e4   : > { %2725 = vmax.xlane.f32.xlu1 %v9256_v61  ;;  %v2963_v28 = vsub.f32 %v9240_v21, %v2716_v12 }
 0x1e5   : > { %v3091_v33 = vmul.f32 1.442695, %v2959_v14 }
 0x1e6   : > { %v3099_v51 = vmul.f32 1.442695, %v2963_v28 }
 0x1e7   : > { %v9500_v13 = vpop.xlane.xlu0 %2747  ;;  %2851 = vmax.xlane.f32.xlu0 %v9460_v0  ;;  %7650 = vpow2.f32 %v3091_v33  ;;  %v11490_v0 = vld [vmem:[#allocation62_spill] sm:$0xff] }
 0x1e8   : > { %2729 = vmax.xlane.f32.xlu1 %v9265_v2  ;;  %7652 = vpow2.f32 %v3095_v45 }
 0x1e9   : > { %7654 = vpow2.f32 %v3099_v51 }
 0x1eb   : > { %v2720_v17 = vpop.xlane.xlu0 %2719  ;;  %2883 = vmax.xlane.f32.xlu0 %v9462_v7 }
 0x1ec   : > { %2733 = vmax.xlane.f32.xlu1 %v9169_v19  ;;  %v2965_v37 = vsub.f32 %v9249_v58, %v2720_v17  ;;  %v9536_v12 = vpop.eup %7648 }
 0x1ed   : > { %v9510_v61 = vpop.trf.xlu1 }
 0x1ee   : > { %11402 = vst [vmem:[#allocation78_spill] sm:$0xff] %v9510_v61  ;;  %v3103_v58 = vmul.f32 1.442695, %v2965_v37 }
 0x1ef   : > { %v9512_v6 = vpop.xlane.xlu0 %2751  ;;  %2855 = vmax.xlane.f32.xlu0 %v9474_v39 }
 0x1f0   : > { %2737 = vmax.xlane.f32.xlu1 %v9190_v32  ;;  %7656 = vpow2.f32 %v3103_v58 }
 0x1f1   : > { %v9549_v21 = vpop.eup %7650 }
 0x1f3   : > { %v2724_v53 = vpop.xlane.xlu0 %2723  ;;  %2887 = vmax.xlane.f32.xlu0 %v9476_v20 }
 0x1f4   : > { %2741 = vmax.xlane.f32.xlu1 %v9213_v44  ;;  %v2967_v17 = vsub.f32 %v9260_v63, %v2724_v53 }
 0x1f6   : > { %v9522_v61 = vpop.f32.mrb[48].mxu0  ;;  %v3107_v51 = vmul.f32 1.442695, %v2967_v17 }
 0x1f7   : > { %11403 = vst [vmem:[#allocation79_spill] sm:$0xff] %v9522_v61  ;;  %v9524_v56 = vpop.f32.mrb[48].mxu1  ;;  %v9526_v14 = vpop.f32.mrb[49].mxu0  ;;  %3339 = vadd.xlane.f32.xlu0 %v7647_v10 }
 0x1f8   : > { %11404 = vst [vmem:[#allocation80_spill] sm:$0xff] %v9524_v56  ;;  %11405 = vst [vmem:[#allocation81_spill] sm:$0xff] %v9526_v14  ;;  %v9529_v16 = vpop.f32.mrb[49].mxu1  ;;  %v9531_v2 = vpop.xlane.xlu0 %2755  ;;  %2745 = vmax.xlane.f32.xlu1 %v9229_v50  ;;  %7658 = vpow2.f32 %v3107_v51 }
 0x1f9   : > { %11406 = vst [vmem:[#allocation82_spill] sm:$0xff] %v9529_v16 }
 0x1fa   : > { %v9538_v33 = vpop.f32.mrb[50].mxu0 }
 0x1fb   : > { %11407 = vst [vmem:[#allocation83_spill] sm:$0xff] %v9538_v33  ;;  %v9540_v30 = vpop.f32.mrb[50].mxu1  ;;  %v9542_v10 = vpop.f32.mrb[51].mxu0  ;;  %3343 = vadd.xlane.f32.xlu0 %v9536_v12 }
 0x1fc   : > { %11408 = vst [vmem:[#allocation84_spill] sm:$0xff] %v9540_v30  ;;  %11409 = vst [vmem:[#allocation85_spill] sm:$0xff] %v9542_v10  ;;  %v9546_v45 = vpop.f32.mrb[51].mxu1  ;;  %v2728_v28 = vpop.xlane.xlu0 %2727  ;;  %2749 = vmax.xlane.f32.xlu1 %v9238_v54 }
 0x1fd   : > { %11410 = vst [vmem:[#allocation86_spill] sm:$0xff] %v9546_v45  ;;  %v2969_v37 = vsub.f32 %v9269_v4, %v2728_v28  ;;  %v9564_v54 = vpop.eup %7652 }
 0x1fe   : > { %v9551_v56 = vpop.f32.mrb[52].mxu0  ;;  %v9578_v28 = vpop.eup %7654 }
 0x1ff   : > { %11411 = vst [vmem:[#allocation87_spill] sm:$0xff] %v9551_v56  ;;  %v9553_v33 = vpop.f32.mrb[52].mxu1  ;;  %v9555_v30 = vpop.f32.mrb[53].mxu0  ;;  %3347 = vadd.xlane.f32.xlu0 %v9549_v21  ;;  %v3111_v58 = vmul.f32 1.442695, %v2969_v37  ;;  %11419 = vst [vmem:[#allocation95_spill] sm:$0xff] %v9578_v28 }
 0x200   : > { %11412 = vst [vmem:[#allocation88_spill] sm:$0xff] %v9553_v33  ;;  %11413 = vst [vmem:[#allocation89_spill] sm:$0xff] %v9555_v30  ;;  %v9559_v63 = vpop.f32.mrb[53].mxu1  ;;  %v9561_v53 = vpop.xlane.xlu0 %2759  ;;  %2753 = vmax.xlane.f32.xlu1 %v9247_v57 }
 0x201   : > { %11414 = vst [vmem:[#allocation90_spill] sm:$0xff] %v9559_v63  ;;  %7660 = vpow2.f32 %v3111_v58 }
 0x202   : > { %v9566_v61 = vpop.f32.mrb[54].mxu0 }
 0x203   : > { %11415 = vst [vmem:[#allocation91_spill] sm:$0xff] %v9566_v61  ;;  %v9568_v56 = vpop.f32.mrb[54].mxu1  ;;  %v9570_v33 = vpop.f32.mrb[55].mxu0  ;;  %3351 = vadd.xlane.f32.xlu0 %v9564_v54 }
 0x204   : > { %11416 = vst [vmem:[#allocation92_spill] sm:$0xff] %v9568_v56  ;;  %11417 = vst [vmem:[#allocation93_spill] sm:$0xff] %v9570_v33  ;;  %v9573_v17 = vpop.f32.mrb[55].mxu1  ;;  %v9575_v4 = vpop.xlane.xlu0 %2763  ;;  %2757 = vmax.xlane.f32.xlu1 %v9258_v62 }
 0x205   : > { %11418 = vst [vmem:[#allocation94_spill] sm:$0xff] %v9573_v17  ;;  %v9594_v62 = vpop.eup %7656 }
 0x206   : > { %v9580_v57 = vpop.f32.mrb[56].mxu0  ;;  %11425 = vst [vmem:[#allocation101_spill] sm:$0xff] %v9594_v62 }
 0x207   : > { %11420 = vst [vmem:[#allocation96_spill] sm:$0xff] %v9580_v57  ;;  %v9582_v50 = vpop.f32.mrb[56].mxu1  ;;  %v9584_v61 = vpop.f32.mrb[57].mxu0  ;;  %3355 = vadd.xlane.f32.xlu0 %v9578_v28 }
 0x208   : > { %11421 = vst [vmem:[#allocation97_spill] sm:$0xff] %v9582_v50  ;;  %11422 = vst [vmem:[#allocation98_spill] sm:$0xff] %v9584_v61  ;;  %v9587_v56 = vpop.f32.mrb[57].mxu1  ;;  %v9589_v51 = vpop.xlane.xlu0 %2795  ;;  %2761 = vmax.xlane.f32.xlu1 %v9267_v3 }
 0x209   : > { %11423 = vst [vmem:[#allocation99_spill] sm:$0xff] %v9587_v56  ;;  %11424 = vst [vmem:[#allocation100_spill] sm:$0xff] %v9589_v51  ;;  %v9608_v3 = vpop.eup %7658 }
 0x20a   : > { %v9596_v44 = vpop.f32.mrb[58].mxu0  ;;  %11430 = vst [vmem:[#allocation106_spill] sm:$0xff] %v9608_v3 }
 0x20b   : > { %11426 = vst [vmem:[#allocation102_spill] sm:$0xff] %v9596_v44  ;;  %v9598_v57 = vpop.f32.mrb[58].mxu1  ;;  %v9600_v50 = vpop.f32.mrb[59].mxu0  ;;  %3359 = vadd.xlane.f32.xlu0 %v9594_v62 }
 0x20c   : > { %11427 = vst [vmem:[#allocation103_spill] sm:$0xff] %v9598_v57  ;;  %11428 = vst [vmem:[#allocation104_spill] sm:$0xff] %v9600_v50  ;;  %v9603_v58 = vpop.f32.mrb[59].mxu1  ;;  %v9605_v28 = vpop.xlane.xlu0 %2767  ;;  %2765 = vmax.xlane.f32.xlu1 %v9292_v22 }
 0x20d   : > { %11429 = vst [vmem:[#allocation105_spill] sm:$0xff] %v9603_v58  ;;  %v9624_v22 = vpop.eup %7660 }
 0x20e   : > { %v9610_v20 = vpop.f32.mrb[60].mxu0 }
 0x20f   : > { %11431 = vst [vmem:[#allocation107_spill] sm:$0xff] %v9610_v20  ;;  %v9612_v37 = vpop.f32.mrb[60].mxu1  ;;  %v9614_v51 = vpop.f32.mrb[61].mxu0  ;;  %3363 = vadd.xlane.f32.xlu0 %v9608_v3 }
 0x210   : > { %11432 = vst [vmem:[#allocation108_spill] sm:$0xff] %v9612_v37  ;;  %11433 = vst [vmem:[#allocation109_spill] sm:$0xff] %v9614_v51  ;;  %v9617_v57 = vpop.f32.mrb[61].mxu1  ;;  %v9619_v44 = vpop.xlane.xlu0 %2799  ;;  %2769 = vmax.xlane.f32.xlu1 %v9303_v31 }
 0x211   : > { %11434 = vst [vmem:[#allocation110_spill] sm:$0xff] %v9617_v57 }
 0x212   : > { %v9626_v27 = vpop.f32.mrb[62].mxu0 }
 0x213   : > { %11435 = vst [vmem:[#allocation111_spill] sm:$0xff] %v9626_v27  ;;  %v9628_v20 = vpop.f32.mrb[62].mxu1  ;;  %v9630_v37 = vpop.f32.mrb[63].mxu0  ;;  %3367 = vadd.xlane.f32.xlu0 %v9624_v22 }
 0x214   : > { %11436 = vst [vmem:[#allocation112_spill] sm:$0xff] %v9628_v20  ;;  %11437 = vst [vmem:[#allocation113_spill] sm:$0xff] %v9630_v37  ;;  %v9633_v3 = vpop.f32.mrb[63].mxu1  ;;  %v9635_v32 = vpop.xlane.xlu0 %2771  ;;  %2773 = vmax.xlane.f32.xlu1 %v9314_v42 }
 0x215   : > { %11438 = vst [vmem:[#allocation114_spill] sm:$0xff] %v9633_v3 }
 0x217   : > { %2891 = vmax.xlane.f32.xlu0 %v9526_v14 }
 0x218   : > { %v9639_v31 = vpop.xlane.xlu0 %2803  ;;  %2777 = vmax.xlane.f32.xlu1 %v9325_v11 }
 0x21b   : > { %2923 = vmax.xlane.f32.xlu0 %v9529_v16  ;;  %v11286_v16 = vmov 0.0  }
 0x21c   : > { %v9645_v20 = vpop.xlane.xlu0 %2775  ;;  %2781 = vmax.xlane.f32.xlu1 %v9336_v26  ;;  %6624 = vmatprep.mubr.msk.f32.mxu0 %vm8221_vm2, %v11286_v16 }
 0x21d   : > { %6659 = vmatprep.mubr.msk.f32.mxu1 %vm8221_vm2, %v11286_v16 }
 0x21f   : > { %2895 = vmax.xlane.f32.xlu0 %v9542_v10 }
 0x220   : > { %v9649_v27 = vpop.xlane.xlu0 %2807  ;;  %2785 = vmax.xlane.f32.xlu1 %v9347_v9 }
 0x223   : > { %2927 = vmax.xlane.f32.xlu0 %v9546_v45 }
 0x224   : > { %v9653_v14 = vpop.xlane.xlu0 %2779  ;;  %2789 = vmax.xlane.f32.xlu1 %v9358_v60 }
 0x227   : > { %2899 = vmax.xlane.f32.xlu0 %v9555_v30 }
 0x228   : > { %v9657_v62 = vpop.xlane.xlu0 %2811  ;;  %2793 = vmax.xlane.f32.xlu1 %v9369_v25  ;;  %v11439_v25 = vld [vmem:[#allocation28_spill] sm:$0xff] }
 0x22b   : > { %2931 = vmax.xlane.f32.xlu0 %v9559_v63  ;;  %v11440_v63 = vld [vmem:[#allocation30_spill] sm:$0xff] }
 0x22c   : > { %v9665_v45 = vpop.xlane.xlu0 %2783  ;;  %2797 = vmax.xlane.f32.xlu1 %v9294_v24 }
 0x22f   : > { %2903 = vmax.xlane.f32.xlu0 %v9570_v33  ;;  %v11441_v33 = vld [vmem:[#allocation33_spill] sm:$0xff] }
 0x230   : > { %v9669_v30 = vpop.xlane.xlu0 %2815  ;;  %2801 = vmax.xlane.f32.xlu1 %v9305_v34 }
 0x233   : > { %2935 = vmax.xlane.f32.xlu0 %v9573_v17  ;;  %v11442_v17 = vld [vmem:[#allocation37_spill] sm:$0xff] }
 0x234   : > { %v9673_v10 = vpop.xlane.xlu0 %2787  ;;  %2805 = vmax.xlane.f32.xlu1 %v11439_v25 }
 0x237   : > { %2907 = vmax.xlane.f32.xlu0 %v9584_v61  ;;  %v11443_v61 = vld [vmem:[#allocation41_spill] sm:$0xff] }
 0x238   : > { %v9677_v16 = vpop.xlane.xlu0 %2819  ;;  %2809 = vmax.xlane.f32.xlu1 %v11440_v63 }
 0x23b   : > { %2939 = vmax.xlane.f32.xlu0 %v9587_v56  ;;  %v11444_v56 = vsub.f32 %v9175_v23, %v9451_v43  ;;  %v11447_v23 = vsub.f32 %v9218_v46, %v9482_v49  ;;  %v11450_v46 = vld [vmem:[#allocation55_spill] sm:$0xff] }
 0x23c   : > { %v9681_v60 = vpop.xlane.xlu0 %2791  ;;  %2813 = vmax.xlane.f32.xlu1 %v11441_v33  ;;  %v11445_v33 = vld [vmem:[#allocation45_spill] sm:$0xff] }
 0x23d   : > { %v3115_v63 = vmul.f32 1.442695, %v11444_v56  ;;  %v3123_v43 = vmul.f32 1.442695, %v11447_v23  ;;  %v11451_v23 = vsub.f32 %v9242_v55, %v9500_v13  ;;  %v11456_v55 = vld [vmem:[#allocation61_spill] sm:$0xff]  ;;  %v11457_v13 = vld [vmem:[#allocation59_spill] sm:$0xff] }
 0x23f   : > { %2911 = vmax.xlane.f32.xlu0 %v9600_v50  ;;  %7662 = vpow2.f32 %v3115_v63 }
 0x240   : > { %v9685_v34 = vpop.xlane.xlu0 %2823  ;;  %2817 = vmax.xlane.f32.xlu1 %v11442_v17 }
 0x243   : > { %2943 = vmax.xlane.f32.xlu0 %v9603_v58  ;;  %v11446_v58 = vsub.f32 %v9196_v35, %v9464_v18  ;;  %v11449_v35 = vsub.f32 %v9233_v52, %v9492_v41  ;;  %v11453_v41 = vld [vmem:[#allocation57_spill] sm:$0xff] }
 0x244   : > { %v9689_v25 = vpop.xlane.xlu0 %2827  ;;  %2821 = vmax.xlane.f32.xlu1 %v11443_v61 }
 0x245   : > { %v3119_v50 = vmul.f32 1.442695, %v11446_v58  ;;  %v3127_v18 = vmul.f32 1.442695, %v11449_v35 }
 0x247   : > { %2915 = vmax.xlane.f32.xlu0 %v9614_v51  ;;  %7664 = vpow2.f32 %v3119_v50  ;;  %v11455_v50 = vsub.f32 %v9251_v59, %v9512_v6  ;;  %v11459_v59 = vsub.f32 %v9262_v1, %v9531_v2  ;;  %v11464_v1 = vld [vmem:[#allocation23_spill] sm:$0xff] }
 0x248   : > { %v9696_v9 = vpop.xlane.xlu0 %2859  ;;  %2825 = vmax.xlane.f32.xlu1 %v11445_v33  ;;  %7666 = vpow2.f32 %v3123_v43  ;;  %v3131_v43 = vmul.f32 1.442695, %v11451_v23  ;;  %v2987_v2 = vsub.f32 %v11464_v1, %v9575_v4  ;;  %v11478_v1 = vld [vmem:[#allocation51_spill] sm:$0xff] }
 0x249   : > { %v9724_v49 = vpop.eup %7662  ;;  %7668 = vpow2.f32 %v3127_v18  ;;  %v3135_v18 = vmul.f32 1.442695, %v11455_v50  ;;  %v3139_v6 = vmul.f32 1.442695, %v11459_v59  ;;  %v11466_v59 = vld [vmem:[#allocation69_spill] sm:$0xff] }
 0x24a   : > { %7670 = vpow2.f32 %v3131_v43 }
 0x24b   : > { %2947 = vmax.xlane.f32.xlu0 %v9617_v57  ;;  %7672 = vpow2.f32 %v3135_v18 }
 0x24c   : > { %v9703_v17 = vpop.xlane.xlu0 %2831  ;;  %2829 = vmax.xlane.f32.xlu1 %v9396_v5 }
 0x24f   : > { %2919 = vmax.xlane.f32.xlu0 %v9630_v37 }
 0x250   : > { %v9710_v56 = vpop.xlane.xlu0 %2863  ;;  %2833 = vmax.xlane.f32.xlu1 %v9405_v15 }
 0x251   : > { %11448 = vst [vmem:[#allocation41_spill] sm:$0xff] %v9710_v56  ;;  %v11461_v56 = vld [vmem:[#allocation65_spill] sm:$0xff] }
 0x253   : > { %2951 = vmax.xlane.f32.xlu0 %v9633_v3  ;;  %v9735_v3 = vpop.eup %7664 }
 0x254   : > { %v9719_v58 = vpop.xlane.xlu0 %2835  ;;  %2837 = vmax.xlane.f32.xlu1 %v9414_v40  ;;  %v9746_v51 = vpop.eup %7666 }
 0x257   : > { %3371 = vadd.xlane.f32.xlu0 %v9724_v49 }
 0x258   : > { %v9730_v63 = vpop.xlane.xlu0 %2867  ;;  %2841 = vmax.xlane.f32.xlu1 %v11453_v41 }
 0x259   : > { %11452 = vst [vmem:[#allocation45_spill] sm:$0xff] %v9730_v63  ;;  %v11458_v63 = vld [vmem:[#allocation21_spill] sm:$0xff] }
 0x25a   : > { %v2985_v52 = vsub.f32 %v11458_v63, %v9561_v53  ;;  %v11463_v53 = vld [vmem:[#allocation7_spill] sm:$0xff] }
 0x25b   : > { %3375 = vadd.xlane.f32.xlu0 %v9735_v3 }
 0x25c   : > { %v9741_v57 = vpop.xlane.xlu0 %2839  ;;  %2845 = vmax.xlane.f32.xlu1 %v11456_v55  ;;  %v3143_v63 = vmul.f32 1.442695, %v2985_v52  ;;  %v11467_v52 = vld [vmem:[#allocation27_spill] sm:$0xff] }
 0x25d   : > { %v2706_v37 = vpop.xlane.xlu1 %2705 }
 0x25e   : > { %v2958_v35 = vsub.f32 %v9184_v29, %v2706_v37  ;;  %v9760_v29 = vpop.eup %7668 }
 0x25f   : > { %3379 = vadd.xlane.f32.xlu0 %v9746_v51  ;;  %v9771_v23 = vpop.eup %7670 }
 0x260   : > { %v3089_v50 = vmul.f32 1.442695, %v2958_v35  ;;  %v9755_v43 = vpop.xlane.xlu0 %2871  ;;  %2849 = vmax.xlane.f32.xlu1 %v11461_v56 }
 0x261   : > { %11460 = vst [vmem:[#allocation55_spill] sm:$0xff] %v9755_v43  ;;  %v2710_v55 = vpop.xlane.xlu1 %2709 }
 0x262   : > { %7674 = vpow2.f32 %v3089_v50  ;;  %v2960_v37 = vsub.f32 %v11463_v53, %v2710_v55  ;;  %v2989_v55 = vsub.f32 %v11467_v52, %v9605_v28  ;;  %v11469_v53 = vld [vmem:[#allocation73_spill] sm:$0xff]  ;;  %v11473_v52 = vld [vmem:[#allocation48_spill] sm:$0xff] }
 0x263   : > { %3383 = vadd.xlane.f32.xlu0 %v9760_v29  ;;  %7676 = vpow2.f32 %v3139_v6  ;;  %v3147_v6 = vmul.f32 1.442695, %v2987_v2  ;;  %v11471_v2 = vld [vmem:[#allocation29_spill] sm:$0xff] }
 0x264   : > { %v3093_v35 = vmul.f32 1.442695, %v2960_v37  ;;  %v9766_v18 = vpop.xlane.xlu0 %2843  ;;  %2853 = vmax.xlane.f32.xlu1 %v11466_v59  ;;  %7678 = vpow2.f32 %v3143_v63  ;;  %v9782_v59 = vpop.eup %7672  ;;  %v3151_v63 = vmul.f32 1.442695, %v2989_v55 }
 0x265   : > { %11465 = vst [vmem:[#allocation57_spill] sm:$0xff] %v9766_v18  ;;  %v2714_v43 = vpop.xlane.xlu1 %2713 }
 0x266   : > { %7680 = vpow2.f32 %v3093_v35  ;;  %v2962_v4 = vsub.f32 %v9224_v48, %v2714_v43  ;;  %v2991_v35 = vsub.f32 %v11471_v2, %v9635_v32 }
 0x267   : > { %3387 = vadd.xlane.f32.xlu0 %v9771_v23  ;;  %7682 = vpow2.f32 %v3147_v6  ;;  %v11475_v6 = vld [vmem:[#allocation31_spill] sm:$0xff] }
 0x268   : > { %v9777_v50 = vpop.xlane.xlu0 %2875  ;;  %2857 = vmax.xlane.f32.xlu1 %v11469_v53  ;;  %v3097_v48 = vmul.f32 1.442695, %v2962_v4  ;;  %7684 = vpow2.f32 %v3151_v63  ;;  %v2993_v56 = vsub.f32 %v11475_v6, %v9645_v20  ;;  %v3155_v32 = vmul.f32 1.442695, %v2991_v35  ;;  %v11476_v4 = vld [vmem:[#allocation12_spill] sm:$0xff] }
 0x269   : > { %11468 = vst [vmem:[#allocation59_spill] sm:$0xff] %v9777_v50  ;;  %v2718_v36 = vpop.xlane.xlu1 %2717 }
 0x26a   : > { %7686 = vpow2.f32 %v3097_v48  ;;  %v2964_v2 = vsub.f32 %v11476_v4, %v2718_v36  ;;  %v3159_v6 = vmul.f32 1.442695, %v2993_v56  ;;  %v11481_v36 = vld [vmem:[#allocation34_spill] sm:$0xff] }
 0x26b   : > { %3391 = vadd.xlane.f32.xlu0 %v9782_v59  ;;  %7688 = vpow2.f32 %v3155_v32  ;;  %v2995_v35 = vsub.f32 %v11481_v36, %v9653_v14  ;;  %v11483_v4 = vld [vmem:[#allocation54_spill] sm:$0xff] }
 0x26c   : > { %v9785_v28 = vpop.eup %7674  ;;  %v9789_v43 = vpop.xlane.xlu0 %2847  ;;  %2861 = vmax.xlane.f32.xlu1 %v11473_v52  ;;  %v3101_v48 = vmul.f32 1.442695, %v2964_v2  ;;  %7690 = vpow2.f32 %v3159_v6  ;;  %v11484_v32 = vld [vmem:[#allocation38_spill] sm:$0xff] }
 0x26d   : > { %11472 = vst [vmem:[#allocation21_spill] sm:$0xff] %v9789_v43  ;;  %v2722_v50 = vpop.xlane.xlu1 %2721  ;;  %v7260_v55 = vpack.c.bf16 %v9785_v28, %v9536_v12  ;;  %v9796_v37 = vpop.eup %7676  ;;  %v11479_v43 = vmov 0.0|0.0   ;;  %v3163_v14 = vmul.f32 1.442695, %v2995_v35  ;;  %v11485_v2 = vld [vmem:[#allocation14_spill] sm:$0xff] }
 0x26e   : > { %v9806_v12 = vpop.eup %7678  ;;  %7692 = vpow2.f32 %v3101_v48  ;;  %v2966_v36 = vsub.f32 %v11485_v2, %v2722_v50  ;;  %v11488_v48 = vld [vmem:[#allocation42_spill] sm:$0xff] }
 0x26f   : > { %3395 = vadd.xlane.f32.xlu0 %v9796_v37  ;;  %7261 = vmatpush3.bf16.xpose.msra.mxu0 %v7260_v55  ;;  %v2999_v50 = vsub.f32 %v11488_v48, %v9673_v10  ;;  %7694 = vpow2.f32 %v3163_v14  ;;  %v11491_v10 = vld [vmem:[#allocation6_spill] sm:$0xff]  ;;  %v11493_v48 = vld [vmem:[#allocation17_spill] sm:$0xff] }
 0x270   : > { %v9802_v18 = vpop.xlane.xlu0 %2879  ;;  %2865 = vmax.xlane.f32.xlu1 %v11478_v1  ;;  %7262 = vmatprep.subr.bf16.mxu0 %v11479_v43  ;;  %v9810_v20 = vpop.eup %7680  ;;  %v11487_v1 = vld [vmem:[#allocation58_spill] sm:$0xff] }
 0x271   : > { %11477 = vst [vmem:[#allocation7_spill] sm:$0xff] %v9802_v18  ;;  %v2726_v47 = vpop.xlane.xlu1 %2725  ;;  %v7263_v53 = vpack.c.bf16 %v9810_v20, %v9549_v21  ;;  %v9824_v56 = vpop.eup %7682  ;;  %v2997_v18 = vsub.f32 %v11484_v32, %v9665_v45  ;;  %v3105_v32 = vmul.f32 1.442695, %v2966_v36  ;;  %v3171_v14 = vmul.f32 1.442695, %v2999_v50  ;;  %v11492_v36 = vld [vmem:[#allocation46_spill] sm:$0xff] }
 0x272   : > { %v9834_v21 = vpop.eup %7684  ;;  %v2968_v6 = vsub.f32 %v11493_v48, %v2726_v47 }
 0x273   : > { %3399 = vadd.xlane.f32.xlu0 %v9806_v12  ;;  %v3167_v35 = vmul.f32 1.442695, %v2997_v18 }
 0x274   : > { %v9815_v55 = vpop.xlane.xlu0 %2851  ;;  %2869 = vmax.xlane.f32.xlu1 %v11483_v4  ;;  %v9838_v45 = vpop.eup %7686  ;;  %v3109_v47 = vmul.f32 1.442695, %v2968_v6  ;;  %v11504_v6 = vld [vmem:[#allocation19_spill] sm:$0xff] }
 0x275   : > { %11482 = vst [vmem:[#allocation23_spill] sm:$0xff] %v9815_v55  ;;  %v9820_v52 = vpop.xlane.xlu1 %2729  ;;  %v9851_v18 = vpop.eup %7688 }
 0x277   : > { %3403 = vadd.xlane.f32.xlu0 %v9824_v56  ;;  %7264 = vmatpush3.bf16.xpose.msra.mxu0 %v7263_v53 }
 0x278   : > { %v9830_v63 = vpop.xlane.xlu0 %2883  ;;  %2873 = vmax.xlane.f32.xlu1 %v11487_v1  ;;  %7265 = vmatprep.subr.bf16.mxu0 %v11479_v43 }
 0x279   : > { %11486 = vst [vmem:[#allocation27_spill] sm:$0xff] %v9830_v63  ;;  %v2734_v55 = vpop.xlane.xlu1 %2733 }
 0x27a   : > { %v2972_v53 = vsub.f32 %v9169_v19, %v2734_v55  ;;  %v7266_v19 = vpack.c.bf16 %v9838_v45, %v9564_v54  ;;  %v11495_v54 = vld [vmem:[#allocation66_spill] sm:$0xff] }
 0x27b   : > { %3407 = vadd.xlane.f32.xlu0 %v9834_v21 }
 0x27c   : > { %v3117_v2 = vmul.f32 1.442695, %v2972_v53  ;;  %v9844_v1 = vpop.xlane.xlu0 %2855  ;;  %2877 = vmax.xlane.f32.xlu1 %v11490_v0  ;;  %v3001_v53 = vsub.f32 %v11492_v36, %v9681_v60  ;;  %v11499_v36 = vld [vmem:[#allocation70_spill] sm:$0xff] }
 0x27d   : > { %11489 = vst [vmem:[#allocation29_spill] sm:$0xff] %v9844_v1  ;;  %v2738_v63 = vpop.xlane.xlu1 %2737 }
 0x27e   : > { %7696 = vpow2.f32 %v3117_v2  ;;  %v2974_v55 = vsub.f32 %v11491_v10, %v2738_v63  ;;  %v9862_v2 = vpop.eup %7690  ;;  %v11502_v63 = vld [vmem:[#allocation100_spill] sm:$0xff] }
 0x27f   : > { %7698 = vpow2.f32 %v3167_v35  ;;  %3411 = vadd.xlane.f32.xlu0 %v9851_v18  ;;  %7267 = vmatpush3.bf16.xpose.msra.mxu0 %v7266_v19  ;;  %v9866_v60 = vpop.eup %7692  ;;  %v3175_v19 = vmul.f32 1.442695, %v3001_v53 }
 0x280   : > { %7700 = vpow2.f32 %v3105_v32  ;;  %v3121_v7 = vmul.f32 1.442695, %v2974_v55  ;;  %v9858_v0 = vpop.xlane.xlu0 %2887  ;;  %2881 = vmax.xlane.f32.xlu1 %v11495_v54  ;;  %7268 = vmatprep.subr.bf16.mxu0 %v11479_v43  ;;  %v11497_v32 = vld [vmem:[#allocation9_spill] sm:$0xff]  ;;  %v11500_v54 = vld [vmem:[#allocation95_spill] sm:$0xff]  ;;  %v9875_v35 = vpop.eup %7694 }
 0x281   : > { %11494 = vst [vmem:[#allocation31_spill] sm:$0xff] %v9858_v0  ;;  %v2742_v50 = vpop.xlane.xlu1 %2741  ;;  %7702 = vpow2.f32 %v3171_v14  ;;  %v7269_v1 = vpack.c.bf16 %v9866_v60, %v11500_v54  ;;  %v11501_v0 = vld [vmem:[#allocation24_spill] sm:$0xff]  ;;  %v11506_v54 = vld [vmem:[#allocation74_spill] sm:$0xff] }
 0x282   : > { %7704 = vpow2.f32 %v3121_v7  ;;  %v2976_v10 = vsub.f32 %v11497_v32, %v2742_v50  ;;  %v11503_v14 = vsub.f32 %v11501_v0, %v11502_v63  ;;  %v2970_v50 = vsub.f32 %v11504_v6, %v9820_v52 }
 0x283   : > { %3415 = vadd.xlane.f32.xlu0 %v9862_v2  ;;  %7706 = vpow2.f32 %v3175_v19  ;;  %v11507_v19 = vsub.f32 %v9309_v38, %v9619_v44 }
 0x284   : > { %v9870_v55 = vpop.xlane.xlu0 %3339  ;;  %2885 = vmax.xlane.f32.xlu1 %v11499_v36  ;;  %v3179_v53 = vmul.f32 1.442695, %v11503_v14  ;;  %7708 = vpow2.f32 %v3109_v47  ;;  %v3125_v32 = vmul.f32 1.442695, %v2976_v10  ;;  %v3113_v47 = vmul.f32 1.442695, %v2970_v50 }
 0x285   : > { %11498 = vst [vmem:[#allocation12_spill] sm:$0xff] %v9870_v55  ;;  %v2746_v48 = vpop.xlane.xlu1 %2745  ;;  %v3183_v52 = vmul.f32 1.442695, %v11507_v19  ;;  %v11508_v10 = vld [vmem:[#allocation11_spill] sm:$0xff]  ;;  %v11512_v50 = vsub.f32 %v9320_v8, %v9639_v31 }
 0x286   : > { %7710 = vpow2.f32 %v3179_v53  ;;  %v2978_v14 = vsub.f32 %v11508_v10, %v2746_v48 }
 0x287   : > { %3419 = vadd.xlane.f32.xlu0 %v9875_v35  ;;  %7270 = vmatpush3.bf16.xpose.msra.mxu0 %v7269_v1  ;;  %7712 = vpow2.f32 %v3125_v32  ;;  %v3187_v48 = vmul.f32 1.442695, %v11512_v50  ;;  %v11513_v32 = vld [vmem:[#allocation32_spill] sm:$0xff] }
 0x288   : > { %v9881_v7 = vpop.eup %7696  ;;  %v9885_v55 = vpop.xlane.xlu0 %3343  ;;  %2889 = vmax.xlane.f32.xlu1 %v11506_v54  ;;  %7271 = vmatprep.subr.bf16.mxu0 %v11479_v43  ;;  %v11511_v54 = vld [vmem:[#allocation101_spill] sm:$0xff]  ;;  %7714 = vpow2.f32 %v3183_v52  ;;  %v3129_v19 = vmul.f32 1.442695, %v2978_v14 }
 0x289   : > { %11505 = vst [vmem:[#allocation34_spill] sm:$0xff] %v9885_v55  ;;  %v9889_v36 = vpop.eup %7698  ;;  %v2750_v0 = vpop.xlane.xlu1 %2749  ;;  %v7281_v63 = vpack.c.bf16 %v9881_v7, %v9724_v49  ;;  %v11510_v55 = vld [vmem:[#allocation79_spill] sm:$0xff]  ;;  %7716 = vpow2.f32 %v3113_v47 }
 0x28a   : > { %v9893_v1 = vpop.eup %7700  ;;  %7718 = vpow2.f32 %v3187_v48  ;;  %v11520_v48 = vld [vmem:[#allocation106_spill] sm:$0xff] }
 0x28b   : > { %3423 = vadd.xlane.f32.xlu0 %v9889_v36  ;;  %7282 = vmatpush3.bf16.xpose.msra.mxu1 %v7281_v63  ;;  %v9904_v49 = vpop.eup %7702  ;;  %v7272_v44 = vpack.c.bf16 %v9893_v1, %v11511_v54  ;;  %v3009_v63 = vsub.f32 %v11513_v32, %v9649_v27  ;;  %v11516_v27 = vld [vmem:[#allocation35_spill] sm:$0xff]  ;;  %7720 = vpow2.f32 %v3129_v19 }
 0x28c   : > { %v9900_v6 = vpop.xlane.xlu0 %3347  ;;  %2893 = vmax.xlane.f32.xlu1 %v11510_v55  ;;  %7283 = vmatprep.subr.bf16.mxu1 %v11479_v43  ;;  %v9910_v38 = vpop.eup %7704  ;;  %v3011_v47 = vsub.f32 %v11516_v27, %v9657_v62 }
 0x28d   : > { %11509 = vst [vmem:[#allocation38_spill] sm:$0xff] %v9900_v6  ;;  %v9906_v53 = vpop.xlane.xlu1 %2753  ;;  %v11515_v6 = vld [vmem:[#allocation83_spill] sm:$0xff]  ;;  %v9922_v54 = vpop.eup %7706  ;;  %v7284_v31 = vpack.c.bf16 %v9910_v38, %v9735_v3  ;;  %v3191_v14 = vmul.f32 1.442695, %v3009_v63 }
 0x28e   : > { %v9928_v8 = vpop.eup %7708 }
 0x28f   : > { %3427 = vadd.xlane.f32.xlu0 %v9904_v49  ;;  %7273 = vmatpush3.bf16.xpose.msra.mxu0 %v7272_v44  ;;  %v11517_v44 = vld [vmem:[#allocation13_spill] sm:$0xff]  ;;  %v7275_v62 = vpack.c.bf16 %v9928_v8, %v11520_v48  ;;  %7722 = vpow2.f32 %v3191_v14 }
 0x290   : > { %v9918_v10 = vpop.xlane.xlu0 %3351  ;;  %2897 = vmax.xlane.f32.xlu1 %v11515_v6  ;;  %7274 = vmatprep.subr.bf16.mxu0 %v11479_v43  ;;  %v2980_v50 = vsub.f32 %v11517_v44, %v2750_v0  ;;  %v9938_v3 = vpop.eup %7710  ;;  %v11522_v0 = vld [vmem:[#allocation39_spill] sm:$0xff] }
 0x291   : > { %11514 = vst [vmem:[#allocation14_spill] sm:$0xff] %v9918_v10  ;;  %v9924_v52 = vpop.xlane.xlu1 %2757  ;;  %v11519_v10 = vld [vmem:[#allocation87_spill] sm:$0xff]  ;;  %v9944_v27 = vpop.eup %7712  ;;  %v3013_v63 = vsub.f32 %v11522_v0, %v9669_v30 }
 0x292   : > { %11521 = vst [vmem:[#allocation6_spill] sm:$0xff] %v9944_v27  ;;  %v3133_v19 = vmul.f32 1.442695, %v2980_v50  ;;  %v11526_v30 = vld [vmem:[#allocation43_spill] sm:$0xff] }
 0x293   : > { %3431 = vadd.xlane.f32.xlu0 %v9922_v54  ;;  %7285 = vmatpush3.bf16.xpose.msra.mxu1 %v7284_v31  ;;  %v3195_v31 = vmul.f32 1.442695, %v3011_v47  ;;  %v7287_v47 = vpack.c.bf16 %v9944_v27, %v9746_v51  ;;  %v3015_v50 = vsub.f32 %v11526_v30, %v9677_v16  ;;  %v3199_v0 = vmul.f32 1.442695, %v3013_v63  ;;  %v11529_v51 = vld [vmem:[#allocation96_spill] sm:$0xff]  ;;  %v11531_v63 = vld [vmem:[#allocation25_spill] sm:$0xff] }
 0x294   : > { %v9934_v32 = vpop.xlane.xlu0 %3355  ;;  %2901 = vmax.xlane.f32.xlu1 %v11519_v10  ;;  %7286 = vmatprep.subr.bf16.mxu1 %v11479_v43  ;;  %v9953_v10 = vpop.eup %7714 }
 0x295   : > { %11518 = vst [vmem:[#allocation42_spill] sm:$0xff] %v9934_v32  ;;  %v9940_v6 = vpop.xlane.xlu1 %2761  ;;  %v11524_v32 = vld [vmem:[#allocation91_spill] sm:$0xff]  ;;  %v9957_v55 = vpop.eup %7716  ;;  %7724 = vpow2.f32 %v3195_v31 }
 0x296   : > { %7726 = vpow2.f32 %v3133_v19  ;;  %v7278_v16 = vpack.c.bf16 %v9957_v55, %v9624_v22 }
 0x297   : > { %3435 = vadd.xlane.f32.xlu0 %v9938_v3  ;;  %7276 = vmatpush3.bf16.xpose.msra.mxu0 %v7275_v62  ;;  %v11525_v62 = vld [vmem:[#allocation22_spill] sm:$0xff] }
 0x298   : > { %v9949_v44 = vpop.xlane.xlu0 %3359  ;;  %2905 = vmax.xlane.f32.xlu1 %v11524_v32  ;;  %7277 = vmatprep.subr.bf16.mxu0 %v11479_v43 }
 0x299   : > { %11523 = vst [vmem:[#allocation46_spill] sm:$0xff] %v9949_v44  ;;  %v2766_v48 = vpop.xlane.xlu1 %2765  ;;  %v11527_v44 = vld [vmem:[#allocation15_spill] sm:$0xff] }
 0x29a   : > { %v2988_v14 = vsub.f32 %v11525_v62, %v2766_v48  ;;  %v2982_v32 = vsub.f32 %v11527_v44, %v9906_v53  ;;  %v9969_v48 = vpop.eup %7718  ;;  %v11532_v53 = vld [vmem:[#allocation47_spill] sm:$0xff] }
 0x29b   : > { %3439 = vadd.xlane.f32.xlu0 %v9953_v10  ;;  %7288 = vmatpush3.bf16.xpose.msra.mxu1 %v7287_v47  ;;  %v9973_v62 = vpop.eup %7720  ;;  %v3203_v47 = vmul.f32 1.442695, %v3015_v50  ;;  %v3017_v44 = vsub.f32 %v11532_v53, %v9685_v34  ;;  %v11536_v34 = vld [vmem:[#allocation8_spill] sm:$0xff] }
 0x29c   : > { %v3149_v39 = vmul.f32 1.442695, %v2988_v14  ;;  %v9965_v4 = vpop.xlane.xlu0 %3363  ;;  %2909 = vmax.xlane.f32.xlu1 %v11529_v51  ;;  %7289 = vmatprep.subr.bf16.mxu1 %v11479_v43  ;;  %11530 = vst [vmem:[#allocation9_spill] sm:$0xff] %v9973_v62  ;;  %v3137_v14 = vmul.f32 1.442695, %v2982_v32  ;;  %v9985_v50 = vpop.eup %7722  ;;  %v7527_v32 = vunpack.i.l.bf16 %v11536_v34 }
 0x29d   : > { %11528 = vst [vmem:[#allocation17_spill] sm:$0xff] %v9965_v4  ;;  %v2770_v31 = vpop.xlane.xlu1 %2769  ;;  %v11534_v4 = vld [vmem:[#allocation102_spill] sm:$0xff] }
 0x29e   : > { %7728 = vpow2.f32 %v3149_v39  ;;  %v2990_v19 = vsub.f32 %v11531_v63, %v2770_v31  ;;  %v7290_v39 = vpack.c.bf16 %v9973_v62, %v9760_v29  ;;  %v11537_v63 = vld [vmem:[#allocation18_spill] sm:$0xff] }
 0x29f   : > { %3443 = vadd.xlane.f32.xlu0 %v9969_v48  ;;  %7279 = vmatpush3.bf16.xpose.msra.mxu0 %v7278_v16  ;;  %7730 = vpow2.f32 %v3199_v0  ;;  %v11535_v0 = vld [vmem:[#allocation49_spill] sm:$0xff]  ;;  %v3207_v16 = vmul.f32 1.442695, %v3017_v44  ;;  %v9997_v29 = vpop.eup %7724 }
 0x2a0   : > { %v9979_v30 = vpop.xlane.xlu0 %3367  ;;  %2913 = vmax.xlane.f32.xlu1 %v11534_v4  ;;  %7304 = vmatprep.subr.bf16.mxu0 %v11479_v43  ;;  %v3153_v22 = vmul.f32 1.442695, %v2990_v19  ;;  %7732 = vpow2.f32 %v3203_v47  ;;  %v3019_v31 = vsub.f32 %v11535_v0, %v9689_v25  ;;  %v2984_v19 = vsub.f32 %v11537_v63, %v9924_v52  ;;  %v11540_v0 = vld [vmem:[#allocation50_spill] sm:$0xff] }
 0x2a1   : > { %11533 = vst [vmem:[#allocation95_spill] sm:$0xff] %v9979_v30  ;;  %v2774_v51 = vpop.xlane.xlu1 %2773  ;;  %7734 = vpow2.f32 %v3137_v14  ;;  %v11538_v30 = vld [vmem:[#allocation107_spill] sm:$0xff]  ;;  %v11539_v14 = vmov 0.0   ;;  %v3035_v63 = vsub.f32 %v11540_v0, %v9696_v9 }
 0x2a2   : > { %7736 = vpow2.f32 %v3153_v22  ;;  %v2992_v25 = vsub.f32 %v9314_v42, %v2774_v51  ;;  %v3211_v44 = vmul.f32 1.442695, %v3019_v31  ;;  %v11541_v42 = vld [vmem:[#allocation111_spill] sm:$0xff] }
 0x2a3   : > { %3447 = vadd.xlane.f32.xlu0 %v9985_v50  ;;  %7291 = vmatpush3.bf16.xpose.msra.mxu1 %v7290_v39  ;;  %v10000_v39 = vpop.eup %7726  ;;  %7738 = vpow2.f32 %v3207_v16  ;;  %v11542_v16 = vld [vmem:[#allocation52_spill] sm:$0xff]  ;;  %v3243_v9 = vmul.f32 1.442695, %v3035_v63 }
 0x2a4   : > { %v9993_v53 = vpop.xlane.xlu0 %2891  ;;  %2917 = vmax.xlane.f32.xlu1 %v11538_v30  ;;  %7292 = vmatprep.subr.bf16.mxu1 %v11479_v43  ;;  %v3141_v30 = vmul.f32 1.442695, %v2984_v19  ;;  %v3157_v51 = vmul.f32 1.442695, %v2992_v25  ;;  %v7293_v31 = vpack.c.bf16 %v10000_v39, %v9771_v23  ;;  %7740 = vpow2.f32 %v3211_v44  ;;  %v11543_v19 = vld [vmem:[#allocation20_spill] sm:$0xff] }
 0x2a5   : > { %v2778_v47 = vpop.xlane.xlu1 %2777  ;;  %v3021_v27 = vsub.f32 %v11542_v16, %v9703_v17  ;;  %v2986_v25 = vsub.f32 %v11543_v19, %v9940_v6  ;;  %v11544_v23 = vld [vmem:[#allocation80_spill] sm:$0xff] }
 0x2a6   : > { %6625 = vmatmul.mubr.f32.vlgmr.msra.gmra.mrb[64].mxu0 %v7527_v32  ;;  %7742 = vpow2.f32 %v3141_v30  ;;  %v2994_v44 = vsub.f32 %v9325_v11, %v2778_v47 }
 0x2a7   : > { %3451 = vadd.xlane.f32.xlu0 %v9997_v29  ;;  %6694 = vmatprep.mubr.msk.f32.mxu0 %vm8221_vm2, %v11539_v14  ;;  %7744 = vpow2.f32 %v3157_v51  ;;  %v3215_v6 = vmul.f32 1.442695, %v3021_v27  ;;  %v3145_v63 = vmul.f32 1.442695, %v2986_v25 }
 0x2a8   : > { %v10005_v52 = vpop.eup %7728  ;;  %v10009_v22 = vpop.xlane.xlu0 %2923  ;;  %2921 = vmax.xlane.f32.xlu1 %v11541_v42  ;;  %7746 = vpow2.f32 %v3243_v9  ;;  %v3161_v51 = vmul.f32 1.442695, %v2994_v44  ;;  %v11548_v9 = vld [vmem:[#allocation88_spill] sm:$0xff] }
 0x2a9   : > { %v2782_v4 = vpop.xlane.xlu1 %2781  ;;  %v7305_v32 = vpack.c.bf16 %v10005_v52, %v9824_v56  ;;  %v10016_v62 = vpop.eup %7730  ;;  %7748 = vpow2.f32 %v3215_v6 }
 0x2aa   : > { %v10026_v56 = vpop.eup %7732  ;;  %7750 = vpow2.f32 %v3145_v63 }
 0x2ab   : > { %3455 = vadd.xlane.f32.xlu0 %v10016_v62  ;;  %7294 = vmatpush3.bf16.xpose.msra.mxu1 %v7293_v31  ;;  %v10031_v17 = vpop.eup %7734  ;;  %7752 = vpow2.f32 %v3161_v51 }
 0x2ac   : > { %7306 = vmatpush3.bf16.xpose.msra.mxu0 %v7305_v32  ;;  %v10023_v0 = vpop.xlane.xlu0 %2895  ;;  %2925 = vmax.xlane.f32.xlu1 %v11544_v23  ;;  %v10033_v30 = vpop.eup %7736  ;;  %v11546_v32 = vld [vmem:[#allocation84_spill] sm:$0xff]  ;;  %v7296_v47 = vpack.c.bf16 %v10031_v17, %v9782_v59  ;;  %v2996_v59 = vsub.f32 %v9336_v26, %v2782_v4 }
 0x2ad   : > { %v2786_v42 = vpop.xlane.xlu1 %2785  ;;  %7295 = vmatprep.subr.bf16.mxu1 %v11479_v43  ;;  %7307 = vmatprep.subr.bf16.mxu0 %v11479_v43  ;;  %v10043_v16 = vpop.eup %7738  ;;  %v7308_v19 = vpack.c.bf16 %v10033_v30, %v9834_v21 }
 0x2ae   : > { %v10051_v25 = vpop.eup %7740 }
 0x2af   : > { %3459 = vadd.xlane.f32.xlu0 %v10026_v56 }
 0x2b0   : > { %v10036_v31 = vpop.xlane.xlu0 %2927  ;;  %2929 = vmax.xlane.f32.xlu1 %v11546_v32  ;;  %v10058_v21 = vpop.eup %7742 }
 0x2b1   : > { %11545 = vst [vmem:[#allocation24_spill] sm:$0xff] %v10036_v31  ;;  %v10039_v11 = vpop.xlane.xlu1 %2789  ;;  %v10060_v6 = vpop.eup %7744  ;;  %v7299_v26 = vpack.c.bf16 %v10058_v21, %v9796_v37  ;;  %v11553_v37 = vld [vmem:[#allocation36_spill] sm:$0xff] }
 0x2b2   : > { %v10068_v4 = vpop.eup %7746  ;;  %v7311_v32 = vpack.c.bf16 %v10060_v6, %v9851_v18  ;;  %v2998_v31 = vsub.f32 %v11553_v37, %v2786_v42  ;;  %v11554_v18 = vld [vmem:[#allocation26_spill] sm:$0xff] }
 0x2b3   : > { %3463 = vadd.xlane.f32.xlu0 %v10043_v16  ;;  %7297 = vmatpush3.bf16.xpose.msra.mxu1 %v7296_v47  ;;  %v11550_v47 = vld [vmem:[#allocation92_spill] sm:$0xff] }
 0x2b4   : > { %7309 = vmatpush3.bf16.xpose.msra.mxu0 %v7308_v19  ;;  %v10048_v27 = vpop.xlane.xlu0 %2899  ;;  %2933 = vmax.xlane.f32.xlu1 %v11548_v9  ;;  %v3165_v19 = vmul.f32 1.442695, %v2996_v59  ;;  %v10077_v59 = vpop.eup %7748 }
 0x2b5   : > { %11547 = vst [vmem:[#allocation100_spill] sm:$0xff] %v10048_v27  ;;  %v10054_v44 = vpop.xlane.xlu1 %2793  ;;  %7298 = vmatprep.subr.bf16.mxu1 %v11479_v43  ;;  %7310 = vmatprep.subr.bf16.mxu0 %v11479_v43 }
 0x2b6   : > { %7754 = vpow2.f32 %v3165_v19  ;;  %v3169_v19 = vmul.f32 1.442695, %v2998_v31 }
 0x2b7   : > { %3467 = vadd.xlane.f32.xlu0 %v10051_v25 }
 0x2b8   : > { %v10063_v63 = vpop.xlane.xlu0 %2931  ;;  %2937 = vmax.xlane.f32.xlu1 %v11550_v47  ;;  %v11552_v47 = vld [vmem:[#allocation97_spill] sm:$0xff] }
 0x2b9   : > { %11549 = vst [vmem:[#allocation19_spill] sm:$0xff] %v10063_v63  ;;  %v2798_v51 = vpop.xlane.xlu1 %2797 }
 0x2ba   : > { %v3004_v9 = vsub.f32 %v9294_v24, %v2798_v51  ;;  %v10082_v24 = vpop.eup %7750 }
 0x2bb   : > { %3499 = vadd.xlane.f32.xlu0 %v10068_v4  ;;  %7300 = vmatpush3.bf16.xpose.msra.mxu1 %v7299_v26  ;;  %v11555_v26 = vld [vmem:[#allocation103_spill] sm:$0xff]  ;;  %v7302_v42 = vpack.c.bf16 %v10082_v24, %v9806_v12 }
 0x2bc   : > { %v3181_v23 = vmul.f32 1.442695, %v3004_v9  ;;  %7312 = vmatpush3.bf16.xpose.msra.mxu0 %v7311_v32  ;;  %v10074_v63 = vpop.xlane.xlu0 %2903  ;;  %2941 = vmax.xlane.f32.xlu1 %v11552_v47  ;;  %v10085_v32 = vpop.eup %7752 }
 0x2bd   : > { %11551 = vst [vmem:[#allocation11_spill] sm:$0xff] %v10074_v63  ;;  %v2802_v27 = vpop.xlane.xlu1 %2801  ;;  %7301 = vmatprep.subr.bf16.mxu1 %v11479_v43  ;;  %7313 = vmatprep.subr.bf16.mxu0 %v11479_v43  ;;  %v7314_v63 = vpack.c.bf16 %v10085_v32, %v9862_v2  ;;  %v7530_v2 = vunpack.i.h.bf16 %v11536_v34  ;;  %v11561_v34 = vld [vmem:[#allocation30_spill] sm:$0xff] }
 0x2be   : > { %7756 = vpow2.f32 %v3181_v23  ;;  %v3006_v9 = vsub.f32 %v11554_v18, %v2802_v27  ;;  %v11557_v23 = vld [vmem:[#allocation28_spill] sm:$0xff] }
 0x2bf   : > { %3471 = vadd.xlane.f32.xlu0 %v10077_v59  ;;  %v11558_v18 = vld [vmem:[#allocation108_spill] sm:$0xff] }
 0x2c0   : > { %v3185_v51 = vmul.f32 1.442695, %v3006_v9  ;;  %2945 = vmax.xlane.f32.xlu1 %v11555_v26  ;;  %v10091_v37 = vpop.xlane.xlu0 %2935  ;;  %v11559_v9 = vld [vmem:[#allocation40_spill] sm:$0xff]  ;;  %v10101_v12 = vpop.eup %7754 }
 0x2c1   : > { %v2806_v47 = vpop.xlane.xlu1 %2805  ;;  %11556 = vst [vmem:[#allocation101_spill] sm:$0xff] %v10091_v37  ;;  %v3000_v31 = vsub.f32 %v11559_v9, %v10039_v11  ;;  %v11562_v9 = vld [vmem:[#allocation77_spill] sm:$0xff] }
 0x2c2   : > { %7758 = vpow2.f32 %v3185_v51  ;;  %v3008_v27 = vsub.f32 %v11557_v23, %v2806_v47  ;;  %v7317_v23 = vpack.c.bf16 %v10101_v12, %v9875_v35 }
 0x2c3   : > { %7303 = vmatpush3.bf16.xpose.msra.mxu1 %v7302_v42  ;;  %7760 = vpow2.f32 %v3169_v19  ;;  %v3173_v19 = vmul.f32 1.442695, %v3000_v31  ;;  %v11563_v31 = vld [vmem:[#allocation44_spill] sm:$0xff] }
 0x2c4   : > { %7315 = vmatpush3.bf16.xpose.msra.mxu0 %v7314_v63  ;;  %2949 = vmax.xlane.f32.xlu1 %v11558_v18  ;;  %v3189_v51 = vmul.f32 1.442695, %v3008_v27  ;;  %v10106_v47 = vpop.xlane.xlu0 %2907  ;;  %v11560_v63 = vld [vmem:[#allocation112_spill] sm:$0xff] }
 0x2c5   : > { %v2810_v26 = vpop.xlane.xlu1 %2809  ;;  %7316 = vmatprep.subr.bf16.mxu0 %v11479_v43  ;;  %7328 = vmatprep.subr.bf16.mxu1 %v11479_v43 }
 0x2c6   : > { %7762 = vpow2.f32 %v3189_v51  ;;  %v3010_v27 = vsub.f32 %v11561_v34, %v2810_v26 }
 0x2c7   : > { %7764 = vpow2.f32 %v3173_v19 }
 0x2c8   : > { %v10103_v37 = vpop.eup %7756  ;;  %2953 = vmax.xlane.f32.xlu1 %v11560_v63  ;;  %v3002_v63 = vsub.f32 %v11563_v31, %v10054_v44  ;;  %v3193_v51 = vmul.f32 1.442695, %v3010_v27 }
 0x2c9   : > { %v2814_v42 = vpop.xlane.xlu1 %2813  ;;  %v7329_v11 = vpack.c.bf16 %v10103_v37, %v9938_v3  ;;  %v10123_v3 = vpop.xlane.xlu0 %2939 }
 0x2ca   : > { %6660 = vmatmul.mubr.f32.vlgmr.msra.gmra.mrb[64].mxu1 %v7530_v2  ;;  %v3177_v26 = vmul.f32 1.442695, %v3002_v63  ;;  %7766 = vpow2.f32 %v3193_v51 }
 0x2cb   : > { %7330 = vmatpush3.bf16.xpose.msra.mxu1 %v7329_v11  ;;  %6729 = vmatprep.mubr.msk.f32.mxu1 %vm8221_vm2, %v11539_v14 }
 0x2cc   : > { %7318 = vmatpush3.bf16.xpose.msra.mxu0 %v7317_v23  ;;  %3341 = vadd.xlane.f32.xlu1 %v11562_v9  ;;  %v10121_v35 = vpop.eup %7758  ;;  %v11564_v23 = vld [vmem:[#allocation33_spill] sm:$0xff]  ;;  %7768 = vpow2.f32 %v3177_v26 }
 0x2cd   : > { %v2818_v18 = vpop.xlane.xlu1 %2817  ;;  %7319 = vmatprep.subr.bf16.mxu0 %v11479_v43  ;;  %7331 = vmatprep.subr.bf16.mxu1 %v11479_v43  ;;  %v10125_v2 = vpop.eup %7760  ;;  %v7332_v19 = vpack.c.bf16 %v10121_v35, %v9953_v10  ;;  %v3012_v34 = vsub.f32 %v11564_v23, %v2814_v42  ;;  %v11565_v26 = vld [vmem:[#allocation37_spill] sm:$0xff] }
 0x2ce   : > { %v7320_v44 = vpack.c.bf16 %v10125_v2, %v9889_v36  ;;  %v10133_v9 = vpop.xlane.xlu0 %2911 }
 0x2cf   : > { %v3197_v36 = vmul.f32 1.442695, %v3012_v34 }
 0x2d0   : > { %3345 = vadd.xlane.f32.xlu1 %v9785_v28  ;;  %v10140_v28 = vpop.eup %7762 }
 0x2d1   : > { %v2822_v11 = vpop.xlane.xlu1 %2821  ;;  %v10142_v10 = vpop.eup %7764  ;;  %v7335_v42 = vpack.c.bf16 %v10140_v28, %v9969_v48  ;;  %7770 = vpow2.f32 %v3197_v36 }
 0x2d2   : > { %v10147_v31 = vpop.xlane.xlu0 %2943  ;;  %v7323_v51 = vpack.c.bf16 %v10142_v10, %v9904_v49 }
 0x2d3   : > { %7333 = vmatpush3.bf16.xpose.msra.mxu1 %v7332_v19  ;;  %v3014_v19 = vsub.f32 %v11565_v26, %v2818_v18 }
 0x2d4   : > { %7321 = vmatpush3.bf16.xpose.msra.mxu0 %v7320_v44  ;;  %3349 = vadd.xlane.f32.xlu1 %v9810_v20  ;;  %v10156_v48 = vpop.eup %7766 }
 0x2d5   : > { %v10136_v27 = vpop.xlane.xlu1 %2825  ;;  %7322 = vmatprep.subr.bf16.mxu0 %v11479_v43  ;;  %7334 = vmatprep.subr.bf16.mxu1 %v11479_v43  ;;  %v3201_v49 = vmul.f32 1.442695, %v3014_v19 }
 0x2d6   : > { %v10159_v23 = vpop.eup %7768  ;;  %v10161_v34 = vpop.xlane.xlu0 %2915 }
 0x2d8   : > { %3353 = vadd.xlane.f32.xlu1 %v9838_v45 }
 0x2d9   : > { %v2830_v63 = vpop.xlane.xlu1 %2829 }
 0x2da   : > { %v3020_v20 = vsub.f32 %v9396_v5, %v2830_v63 }
 0x2db   : > { %7336 = vmatpush3.bf16.xpose.msra.mxu1 %v7335_v42  ;;  %v7338_v42 = vpack.c.bf16 %v10156_v48, %v9985_v50 }
 0x2dc   : > { %v3213_v44 = vmul.f32 1.442695, %v3020_v20  ;;  %7324 = vmatpush3.bf16.xpose.msra.mxu0 %v7323_v51  ;;  %3357 = vadd.xlane.f32.xlu1 %v9866_v60  ;;  %v11566_v60 = vsub.f32 %v11450_v46, %v9719_v58  ;;  %v3016_v51 = vsub.f32 %v11443_v61, %v2822_v11  ;;  %v11567_v58 = vsub.f32 %v11457_v13, %v9741_v57  ;;  %v11568_v13 = vld [vmem:[#allocation16_spill] sm:$0xff] }
 0x2dd   : > { %v2834_v45 = vpop.xlane.xlu1 %2833  ;;  %7325 = vmatprep.subr.bf16.mxu0 %v11479_v43  ;;  %7337 = vmatprep.subr.bf16.mxu1 %v11479_v43  ;;  %v7564_v19 = vunpack.i.l.bf16 %v11568_v13 }
 0x2de   : > { %7772 = vpow2.f32 %v3213_v44  ;;  %v3022_v5 = vsub.f32 %v9405_v15, %v2834_v45  ;;  %v3219_v36 = vmul.f32 1.442695, %v11566_v60  ;;  %v7326_v15 = vpack.c.bf16 %v10159_v23, %v9922_v54  ;;  %v10181_v54 = vpop.xlane.xlu0 %2947 }
 0x2df   : > { %v3223_v46 = vmul.f32 1.442695, %v11567_v58  ;;  %v11571_v58 = vld [vmem:[#allocation6_spill] sm:$0xff] }
 0x2e0   : > { %v3217_v18 = vmul.f32 1.442695, %v3022_v5  ;;  %3361 = vadd.xlane.f32.xlu1 %v9893_v1  ;;  %v11569_v5 = vld [vmem:[#allocation81_spill] sm:$0xff] }
 0x2e1   : > { %v2838_v63 = vpop.xlane.xlu1 %2837 }
 0x2e2   : > { %7774 = vpow2.f32 %v3217_v18  ;;  %v3024_v20 = vsub.f32 %v9414_v40, %v2838_v63  ;;  %v10179_v40 = vpop.eup %7770  ;;  %v10196_v18 = vpop.xlane.xlu0 %2919 }
 0x2e3   : > { %7339 = vmatpush3.bf16.xpose.msra.mxu1 %v7338_v42  ;;  %7776 = vpow2.f32 %v3201_v49  ;;  %v7341_v44 = vpack.c.bf16 %v10179_v40, %v9997_v29  ;;  %v3051_v49 = vsub.f32 %v11569_v5, %v9993_v53 }
 0x2e4   : > { %v3221_v26 = vmul.f32 1.442695, %v3024_v20  ;;  %7327 = vmatpush3.bf16.xpose.msra.mxu0 %v7326_v15  ;;  %3365 = vadd.xlane.f32.xlu1 %v9928_v8  ;;  %7778 = vpow2.f32 %v3219_v36  ;;  %v3205_v8 = vmul.f32 1.442695, %v3016_v51  ;;  %v11570_v36 = vld [vmem:[#allocation82_spill] sm:$0xff] }
 0x2e5   : > { %v2842_v1 = vpop.xlane.xlu1 %2841  ;;  %7340 = vmatprep.subr.bf16.mxu1 %v11479_v43  ;;  %7352 = vmatprep.subr.bf16.mxu0 %v11479_v43  ;;  %v3275_v60 = vmul.f32 1.442695, %v3051_v49  ;;  %v3067_v63 = vsub.f32 %v11570_v36, %v10009_v22  ;;  %v11575_v49 = vld [vmem:[#allocation63_spill] sm:$0xff] }
 0x2e6   : > { %7780 = vpow2.f32 %v3221_v26  ;;  %v3026_v61 = vsub.f32 %v11453_v41, %v2842_v1  ;;  %v10213_v22 = vpop.xlane.xlu0 %2951 }
 0x2e7   : > { %7782 = vpow2.f32 %v3223_v46  ;;  %v3307_v15 = vmul.f32 1.442695, %v3067_v63  ;;  %v11578_v63 = vld [vmem:[#allocation65_spill] sm:$0xff] }
 0x2e8   : > { %v10184_v50 = vpop.eup %7772  ;;  %v3225_v11 = vmul.f32 1.442695, %v3026_v61  ;;  %3369 = vadd.xlane.f32.xlu1 %v9957_v55  ;;  %v3018_v55 = vsub.f32 %v11445_v33, %v10136_v27 }
 0x2e9   : > { %v2846_v57 = vpop.xlane.xlu1 %2845  ;;  %v7353_v45 = vpack.c.bf16 %v10184_v50, %v10051_v25 }
 0x2ea   : > { %7784 = vpow2.f32 %v3225_v11  ;;  %v11573_v11 = vld [vmem:[#allocation9_spill] sm:$0xff] }
 0x2eb   : > { %6695 = vmatmul.mubr.f32.vlgmr.msra.gmra.mrb[66].mxu0 %v7564_v19  ;;  %7342 = vmatpush3.bf16.xpose.msra.mxu1 %v7341_v44  ;;  %7786 = vpow2.f32 %v3205_v8  ;;  %v10226_v8 = vpop.xlane.xlu0 %3371 }
 0x2ec   : > { %v7775_v41 = vpop.eup %7774  ;;  %7354 = vmatpush3.bf16.xpose.msra.mxu0 %v7353_v45  ;;  %3373 = vadd.xlane.f32.xlu1 %v9881_v7  ;;  %v3209_v7 = vmul.f32 1.442695, %v3018_v55  ;;  %7788 = vpow2.f32 %v3275_v60  ;;  %v11574_v45 = vld [vmem:[#allocation48_spill] sm:$0xff] }
 0x2ed   : > { %v2850_v29 = vpop.xlane.xlu1 %2849  ;;  %3473 = vadd.xlane.f32.xlu0 %v7775_v41  ;;  %7343 = vmatprep.subr.bf16.mxu1 %v11479_v43  ;;  %v7356_v25 = vpack.c.bf16 %v7775_v41, %v10077_v59  ;;  %v10201_v53 = vpop.eup %7776  ;;  %v11576_v41 = vld [vmem:[#allocation57_spill] sm:$0xff] }
 0x2ee   : > { %7355 = vmatprep.subr.bf16.mxu0 %v11479_v43  ;;  %6764 = vmatprep.mubr.msk.f32.mxu0 %vm8221_vm2, %v11539_v14  ;;  %v7779_v33 = vpop.eup %7778  ;;  %v7344_v59 = vpack.c.bf16 %v10201_v53, %v10016_v62  ;;  %7790 = vpow2.f32 %v3209_v7  ;;  %v11577_v55 = vsub.f32 %v11575_v49, %v11576_v41 }
 0x2ef   : > { %7792 = vpow2.f32 %v3307_v15  ;;  %v10243_v7 = vpop.xlane.xlu0 %3375 }
 0x2f0   : > { %v7781_v27 = vpop.eup %7780  ;;  %3377 = vadd.xlane.f32.xlu1 %v9910_v38  ;;  %v11572_v38 = vld [vmem:[#allocation61_spill] sm:$0xff] }
 0x2f1   : > { %v10209_v42 = vpop.xlane.xlu1 %2853  ;;  %3475 = vadd.xlane.f32.xlu0 %v7779_v33  ;;  %v7359_v20 = vpack.c.bf16 %v7781_v27, %v7779_v33  ;;  %v7783_v51 = vpop.eup %7782  ;;  %v3028_v46 = vsub.f32 %v11572_v38, %v2846_v57  ;;  %v3030_v33 = vsub.f32 %v11578_v63, %v2850_v29  ;;  %v11580_v38 = vld [vmem:[#allocation53_spill] sm:$0xff] }
 0x2f3   : > { %7345 = vmatpush3.bf16.xpose.msra.mxu1 %v7344_v59  ;;  %v3229_v19 = vmul.f32 1.442695, %v3028_v46  ;;  %v11579_v59 = vld [vmem:[#allocation51_spill] sm:$0xff]  ;;  %v3233_v29 = vmul.f32 1.442695, %v3030_v33  ;;  %v11581_v46 = vld [vmem:[#allocation41_spill] sm:$0xff]  ;;  %v10259_v49 = vpop.xlane.xlu0 %3379 }
 0x2f4   : > { %v10215_v26 = vpop.eup %7784  ;;  %7357 = vmatpush3.bf16.xpose.msra.mxu0 %v7356_v25  ;;  %3381 = vadd.xlane.f32.xlu1 %v11571_v58  ;;  %v3227_v25 = vmul.f32 1.442695, %v11577_v55 }
 0x2f5   : > { %v10219_v1 = vpop.xlane.xlu1 %2857  ;;  %3477 = vadd.xlane.f32.xlu0 %v7781_v27  ;;  %7346 = vmatprep.subr.bf16.mxu1 %v11479_v43  ;;  %v7362_v62 = vpack.c.bf16 %v10215_v26, %v7783_v51  ;;  %v10223_v61 = vpop.eup %7786  ;;  %7794 = vpow2.f32 %v3229_v19 }
 0x2f6   : > { %7358 = vmatprep.subr.bf16.mxu0 %v11479_v43  ;;  %v7347_v57 = vpack.c.bf16 %v10223_v61, %v10026_v56  ;;  %v10235_v60 = vpop.eup %7788 }
 0x2f8   : > { %3385 = vadd.xlane.f32.xlu1 %v11573_v11  ;;  %v10241_v56 = vpop.eup %7790  ;;  %v11582_v11 = vsub.f32 %v11580_v38, %v11581_v46  ;;  %v11592_v46 = vld [vmem:[#allocation23_spill] sm:$0xff] }
 0x2f9   : > { %v2862_v44 = vpop.xlane.xlu1 %2861  ;;  %3479 = vadd.xlane.f32.xlu0 %v7783_v51  ;;  %v7350_v58 = vpack.c.bf16 %v10241_v56, %v10043_v16  ;;  %v11587_v16 = vld [vmem:[#allocation69_spill] sm:$0xff] }
 0x2fa   : > { %v3036_v5 = vsub.f32 %v11574_v45, %v2862_v44  ;;  %v3247_v19 = vmul.f32 1.442695, %v11582_v11  ;;  %v11583_v44 = vld [vmem:[#allocation67_spill] sm:$0xff]  ;;  %v3032_v55 = vsub.f32 %v11587_v16, %v10209_v42 }
 0x2fb   : > { %7348 = vmatpush3.bf16.xpose.msra.mxu1 %v7347_v57  ;;  %v11584_v57 = vld [vmem:[#allocation21_spill] sm:$0xff] }
 0x2fc   : > { %v3245_v36 = vmul.f32 1.442695, %v3036_v5  ;;  %7360 = vmatpush3.bf16.xpose.msra.mxu0 %v7359_v20  ;;  %3389 = vadd.xlane.f32.xlu1 %v10000_v39  ;;  %v10247_v20 = vpop.eup %7792  ;;  %v11585_v45 = vsub.f32 %v11583_v44, %v11584_v57  ;;  %v11595_v44 = vld [vmem:[#allocation73_spill] sm:$0xff] }
 0x2fd   : > { %v2866_v27 = vpop.xlane.xlu1 %2865  ;;  %3531 = vadd.xlane.f32.xlu0 %v10235_v60  ;;  %7349 = vmatprep.subr.bf16.mxu1 %v11479_v43  ;;  %v3034_v57 = vsub.f32 %v11595_v44, %v10219_v1 }
 0x2fe   : > { %7796 = vpow2.f32 %v3245_v36  ;;  %v3038_v15 = vsub.f32 %v11579_v59, %v2866_v27  ;;  %7361 = vmatprep.subr.bf16.mxu0 %v11479_v43  ;;  %v3231_v5 = vmul.f32 1.442695, %v11585_v45  ;;  %v3237_v27 = vmul.f32 1.442695, %v3032_v55 }
 0x2ff   : > { %7798 = vpow2.f32 %v3227_v25  ;;  %v10267_v36 = vpop.eup %7794  ;;  %v3241_v1 = vmul.f32 1.442695, %v3034_v57  ;;  %v11604_v57 = vld [vmem:[#allocation64_spill] sm:$0xff] }
 0x300   : > { %v3249_v39 = vmul.f32 1.442695, %v3038_v15  ;;  %3393 = vadd.xlane.f32.xlu1 %v10031_v17  ;;  %v11586_v17 = vld [vmem:[#allocation54_spill] sm:$0xff]  ;;  %v11588_v15 = vld [vmem:[#allocation56_spill] sm:$0xff] }
 0x301   : > { %v2870_v51 = vpop.xlane.xlu1 %2869  ;;  %3563 = vadd.xlane.f32.xlu0 %v10247_v20 }
 0x302   : > { %7800 = vpow2.f32 %v3249_v39  ;;  %v3040_v41 = vsub.f32 %v11586_v17, %v2870_v51  ;;  %v11589_v39 = vld [vmem:[#allocation45_spill] sm:$0xff] }
 0x303   : > { %7351 = vmatpush3.bf16.xpose.msra.mxu1 %v7350_v58  ;;  %7802 = vpow2.f32 %v3233_v29  ;;  %v11590_v29 = vsub.f32 %v11588_v15, %v11589_v39  ;;  %v10280_v58 = vpop.xlane.xlu0 %3383 }
 0x304   : > { %7363 = vmatpush3.bf16.xpose.msra.mxu0 %v7362_v62  ;;  %3397 = vadd.xlane.f32.xlu1 %v10058_v21  ;;  %7804 = vpow2.f32 %v3247_v19  ;;  %v3253_v33 = vmul.f32 1.442695, %v3040_v41  ;;  %v7567_v21 = vunpack.i.h.bf16 %v11568_v13 }
 0x305   : > { %v2874_v25 = vpop.xlane.xlu1 %2873  ;;  %7364 = vmatprep.subr.bf16.mxu0 %v11479_v43  ;;  %7376 = vmatprep.subr.bf16.mxu1 %v11479_v43  ;;  %7806 = vpow2.f32 %v3231_v5  ;;  %v3251_v51 = vmul.f32 1.442695, %v11590_v29  ;;  %v11599_v29 = vld [vmem:[#allocation75_spill] sm:$0xff] }
 0x306   : > { %7808 = vpow2.f32 %v3253_v33 }
 0x307   : > { %7810 = vpow2.f32 %v3237_v27  ;;  %v10301_v16 = vpop.xlane.xlu0 %3387  ;;  %v11597_v27 = vld [vmem:[#allocation55_spill] sm:$0xff] }
 0x308   : > { %v10269_v63 = vpop.eup %7796  ;;  %3401 = vadd.xlane.f32.xlu1 %v10082_v24  ;;  %v11591_v24 = vld [vmem:[#allocation71_spill] sm:$0xff]  ;;  %7812 = vpow2.f32 %v3251_v51  ;;  %v11600_v51 = vld [vmem:[#allocation29_spill] sm:$0xff] }
 0x309   : > { %v10273_v62 = vpop.eup %7798  ;;  %v2878_v42 = vpop.xlane.xlu1 %2877  ;;  %v7377_v59 = vpack.c.bf16 %v10269_v63, %v10068_v4  ;;  %v11593_v13 = vsub.f32 %v11591_v24, %v11592_v46  ;;  %v11594_v4 = vld [vmem:[#allocation58_spill] sm:$0xff] }
 0x30a   : > { %6730 = vmatmul.mubr.f32.vlgmr.msra.gmra.mrb[66].mxu1 %v7567_v21  ;;  %v7365_v38 = vpack.c.bf16 %v10267_v36, %v10273_v62  ;;  %v3042_v19 = vsub.f32 %v11594_v4, %v2874_v25  ;;  %v11596_v21 = vld [vmem:[#allocation60_spill] sm:$0xff] }
 0x30b   : > { %v3235_v11 = vmul.f32 1.442695, %v11593_v13  ;;  %7378 = vmatpush3.bf16.xpose.msra.mxu1 %v7377_v59  ;;  %6799 = vmatprep.mubr.msk.f32.mxu1 %vm8221_vm2, %v11539_v14  ;;  %v11598_v59 = vsub.f32 %v11596_v21, %v11597_v27  ;;  %v10326_v4 = vpop.xlane.xlu0 %3391  ;;  %v11607_v21 = vld [vmem:[#allocation85_spill] sm:$0xff] }
 0x30c   : > { %7366 = vmatpush3.bf16.xpose.msra.mxu0 %v7365_v38  ;;  %3405 = vadd.xlane.f32.xlu1 %v10005_v52  ;;  %v10295_v5 = vpop.eup %7800  ;;  %v3257_v52 = vmul.f32 1.442695, %v3042_v19  ;;  %v11601_v38 = vsub.f32 %v11599_v29, %v11600_v51  ;;  %11603 = vst [vmem:[#allocation32_spill] sm:$0xff] %v10326_v4  ;;  %v3053_v27 = vsub.f32 %v11607_v21, %v10023_v0 }
 0x30d   : > { %v2882_v45 = vpop.xlane.xlu1 %2881  ;;  %7367 = vmatprep.subr.bf16.mxu0 %v11479_v43  ;;  %7379 = vmatprep.subr.bf16.mxu1 %v11479_v43  ;;  %v10297_v17 = vpop.eup %7802  ;;  %7814 = vpow2.f32 %v3235_v11  ;;  %v3255_v15 = vmul.f32 1.442695, %v11598_v59 }
 0x30e   : > { %v10299_v41 = vpop.eup %7804  ;;  %v3239_v24 = vmul.f32 1.442695, %v11601_v38  ;;  %7816 = vpow2.f32 %v3257_v52  ;;  %v11605_v52 = vld [vmem:[#allocation59_spill] sm:$0xff]  ;;  %v11610_v38 = vld [vmem:[#allocation66_spill] sm:$0xff]  ;;  %v3279_v0 = vmul.f32 1.442695, %v3053_v27 }
 0x30f   : > { %v10304_v55 = vpop.eup %7806  ;;  %v7380_v33 = vpack.c.bf16 %v10295_v5, %v10299_v41  ;;  %7818 = vpow2.f32 %v3241_v1  ;;  %v11606_v1 = vsub.f32 %v11604_v57, %v11605_v52  ;;  %v11612_v57 = vld [vmem:[#allocation89_spill] sm:$0xff] }
 0x310   : > { %3409 = vadd.xlane.f32.xlu1 %v10033_v30  ;;  %v7368_v39 = vpack.c.bf16 %v10297_v17, %v10304_v55  ;;  %v11602_v30 = vld [vmem:[#allocation62_spill] sm:$0xff]  ;;  %v10324_v11 = vpop.eup %7808  ;;  %7820 = vpow2.f32 %v3255_v15 }
 0x311   : > { %v10306_v25 = vpop.xlane.xlu1 %2885  ;;  %v3044_v46 = vsub.f32 %v11602_v30, %v2878_v42  ;;  %v10328_v19 = vpop.eup %7810  ;;  %7822 = vpow2.f32 %v3239_v24  ;;  %v3046_v24 = vsub.f32 %v11610_v38, %v2882_v45 }
 0x312   : > { %v10330_v44 = vpop.eup %7812 }
 0x313   : > { %7381 = vmatpush3.bf16.xpose.msra.mxu1 %v7380_v33  ;;  %v3261_v42 = vmul.f32 1.442695, %v3044_v46  ;;  %v3259_v33 = vmul.f32 1.442695, %v11606_v1  ;;  %v7383_v15 = vpack.c.bf16 %v10324_v11, %v10330_v44  ;;  %v11611_v46 = vld [vmem:[#allocation100_spill] sm:$0xff] }
 0x314   : > { %7369 = vmatpush3.bf16.xpose.msra.mxu0 %v7368_v39  ;;  %3413 = vadd.xlane.f32.xlu1 %v10060_v6  ;;  %v11608_v39 = vld [vmem:[#allocation79_spill] sm:$0xff]  ;;  %v3055_v52 = vsub.f32 %v11612_v57, %v11611_v46 }
 0x315   : > { %v10320_v13 = vpop.xlane.xlu1 %2889  ;;  %7370 = vmatprep.subr.bf16.mxu0 %v11479_v43  ;;  %7382 = vmatprep.subr.bf16.mxu1 %v11479_v43  ;;  %7824 = vpow2.f32 %v3261_v42  ;;  %v11613_v42 = vld [vmem:[#allocation83_spill] sm:$0xff] }
 0x316   : > { %7826 = vpow2.f32 %v3259_v33  ;;  %v3283_v46 = vmul.f32 1.442695, %v3055_v52  ;;  %v11617_v57 = vld [vmem:[#allocation11_spill] sm:$0xff] }
 0x317   : > { %v10333_v6 = vpop.eup %7814 }
 0x318   : > { %3417 = vadd.xlane.f32.xlu1 %v10085_v32  ;;  %v7371_v51 = vpack.c.bf16 %v10328_v19, %v10333_v6  ;;  %v10345_v32 = vpop.xlane.xlu0 %3395  ;;  %v10353_v21 = vpop.eup %7816 }
 0x319   : > { %v2894_v59 = vpop.xlane.xlu1 %2893  ;;  %11609 = vst [vmem:[#allocation35_spill] sm:$0xff] %v10345_v32  ;;  %v10356_v45 = vpop.eup %7818 }
 0x31a   : > { %v3052_v29 = vsub.f32 %v11608_v39, %v2894_v59  ;;  %v11615_v39 = vld [vmem:[#allocation7_spill] sm:$0xff]  ;;  %v10361_v27 = vpop.eup %7820 }
 0x31b   : > { %7384 = vmatpush3.bf16.xpose.msra.mxu1 %v7383_v15  ;;  %v11614_v15 = vld [vmem:[#allocation68_spill] sm:$0xff]  ;;  %v10364_v38 = vpop.eup %7822 }
 0x31c   : > { %v3277_v30 = vmul.f32 1.442695, %v3052_v29  ;;  %7372 = vmatpush3.bf16.xpose.msra.mxu0 %v7371_v51  ;;  %3421 = vadd.xlane.f32.xlu1 %v10101_v12  ;;  %v11616_v12 = vsub.f32 %v11614_v15, %v11615_v39  ;;  %v3265_v29 = vmul.f32 1.442695, %v3046_v24  ;;  %v10370_v4 = vpop.xlane.xlu0 %3399  ;;  %v11619_v15 = vld [vmem:[#allocation87_spill] sm:$0xff]  ;;  %v7374_v24 = vpack.c.bf16 %v10356_v45, %v10364_v38 }
 0x31d   : > { %v2898_v1 = vpop.xlane.xlu1 %2897  ;;  %7373 = vmatprep.subr.bf16.mxu0 %v11479_v43  ;;  %7385 = vmatprep.subr.bf16.mxu1 %v11479_v43 }
 0x31e   : > { %7828 = vpow2.f32 %v3277_v30  ;;  %v3054_v59 = vsub.f32 %v11613_v42, %v2898_v1  ;;  %v3263_v33 = vmul.f32 1.442695, %v11616_v12  ;;  %v11618_v30 = vld [vmem:[#allocation93_spill] sm:$0xff]  ;;  %v7386_v42 = vpack.c.bf16 %v10353_v21, %v10361_v27  ;;  %v11621_v12 = vld [vmem:[#allocation98_spill] sm:$0xff] }
 0x31f   : > { %7830 = vpow2.f32 %v3279_v0  ;;  %v3057_v32 = vsub.f32 %v11618_v30, %v11617_v57 }
 0x320   : > { %v3281_v51 = vmul.f32 1.442695, %v3054_v59  ;;  %3425 = vadd.xlane.f32.xlu1 %v10125_v2  ;;  %v11620_v2 = vld [vmem:[#allocation70_spill] sm:$0xff] }
 0x321   : > { %v2902_v1 = vpop.xlane.xlu1 %2901  ;;  %v3048_v0 = vsub.f32 %v11620_v2, %v10306_v25  ;;  %v3287_v59 = vmul.f32 1.442695, %v3057_v32 }
 0x322   : > { %7832 = vpow2.f32 %v3281_v51  ;;  %v3056_v39 = vsub.f32 %v11619_v15, %v2902_v1  ;;  %v3059_v51 = vsub.f32 %v11621_v12, %v10106_v47  ;;  %v11624_v1 = vld [vmem:[#allocation72_spill] sm:$0xff] }
 0x323   : > { %7834 = vpow2.f32 %v3263_v33  ;;  %7387 = vmatpush3.bf16.xpose.msra.mxu1 %v7386_v42  ;;  %v10382_v33 = vpop.eup %7824  ;;  %v11625_v42 = vld [vmem:[#allocation27_spill] sm:$0xff]  ;;  %v11627_v47 = vld [vmem:[#allocation104_spill] sm:$0xff] }
 0x324   : > { %7836 = vpow2.f32 %v3265_v29  ;;  %v3285_v52 = vmul.f32 1.442695, %v3056_v39  ;;  %7375 = vmatpush3.bf16.xpose.msra.mxu0 %v7374_v24  ;;  %3429 = vadd.xlane.f32.xlu1 %v10142_v10  ;;  %11622 = vst [vmem:[#allocation13_spill] sm:$0xff] %v10382_v33  ;;  %v11623_v29 = vld [vmem:[#allocation91_spill] sm:$0xff]  ;;  %v10385_v25 = vpop.eup %7826  ;;  %v11626_v10 = vsub.f32 %v11624_v1, %v11625_v42  ;;  %v3061_v15 = vsub.f32 %v11627_v47, %v10133_v9  ;;  %v10394_v39 = vpop.xlane.xlu0 %3403 }
 0x325   : > { %7838 = vpow2.f32 %v3283_v46  ;;  %v2906_v57 = vpop.xlane.xlu1 %2905  ;;  %7388 = vmatprep.subr.bf16.mxu1 %v11479_v43  ;;  %7400 = vmatprep.subr.bf16.mxu0 %v11479_v43  ;;  %11628 = vst [vmem:[#allocation106_spill] sm:$0xff] %v10394_v39  ;;  %v3269_v24 = vmul.f32 1.442695, %v3048_v0  ;;  %v7389_v1 = vpack.c.bf16 %v10382_v33, %v10385_v25  ;;  %v11639_v33 = vld [vmem:[#allocation107_spill] sm:$0xff] }
 0x326   : > { %7840 = vpow2.f32 %v3285_v52  ;;  %v3058_v30 = vsub.f32 %v11623_v29, %v2906_v57  ;;  %v3267_v46 = vmul.f32 1.442695, %v11626_v10  ;;  %v11629_v52 = vld [vmem:[#allocation10_spill] sm:$0xff]  ;;  %v3291_v57 = vmul.f32 1.442695, %v3059_v51  ;;  %v11630_v10 = vld [vmem:[#allocation96_spill] sm:$0xff] }
 0x327   : > { %v7601_v12 = vunpack.i.l.bf16 %v11629_v52  ;;  %7842 = vpow2.f32 %v3287_v59  ;;  %v11631_v59 = vld [vmem:[#allocation74_spill] sm:$0xff] }
 0x328   : > { %v10390_v32 = vpop.eup %7828  ;;  %v3289_v2 = vmul.f32 1.442695, %v3058_v30  ;;  %3433 = vadd.xlane.f32.xlu1 %v10159_v23  ;;  %v3295_v23 = vmul.f32 1.442695, %v3061_v15  ;;  %v3050_v51 = vsub.f32 %v11631_v59, %v10320_v13  ;;  %v11634_v13 = vld [vmem:[#allocation102_spill] sm:$0xff] }
 0x329   : > { %v2910_v29 = vpop.xlane.xlu1 %2909  ;;  %v7401_v42 = vpack.c.bf16 %v10390_v32, %v10235_v60  ;;  %v7831_v47 = vpop.eup %7830  ;;  %v11632_v60 = vld [vmem:[#allocation109_spill] sm:$0xff] }
 0x32a   : > { %7844 = vpow2.f32 %v3289_v2  ;;  %v3060_v9 = vsub.f32 %v11630_v10, %v2910_v29  ;;  %v3063_v2 = vsub.f32 %v11632_v60, %v10161_v34  ;;  %v11636_v34 = vld [vmem:[#allocation31_spill] sm:$0xff] }
 0x32b   : > { %7846 = vpow2.f32 %v3267_v46  ;;  %6765 = vmatmul.mubr.f32.vlgmr.msra.gmra.mrb[68].mxu0 %v7601_v12  ;;  %7390 = vmatpush3.bf16.xpose.msra.mxu1 %v7389_v1 }
 0x32c   : > { %v7833_v0 = vpop.eup %7832  ;;  %7848 = vpow2.f32 %v3269_v24  ;;  %v3293_v30 = vmul.f32 1.442695, %v3060_v9  ;;  %7402 = vmatpush3.bf16.xpose.msra.mxu0 %v7401_v42  ;;  %3437 = vadd.xlane.f32.xlu1 %v10103_v37  ;;  %v10413_v24 = vpop.xlane.xlu0 %3407  ;;  %v3273_v9 = vmul.f32 1.442695, %v3050_v51  ;;  %v3299_v59 = vmul.f32 1.442695, %v3063_v2 }
 0x32d   : > { %v10406_v39 = vpop.eup %7834  ;;  %7850 = vpow2.f32 %v3291_v57  ;;  %v2914_v29 = vpop.xlane.xlu1 %2913  ;;  %3537 = vadd.xlane.f32.xlu0 %v7833_v0  ;;  %7391 = vmatprep.subr.bf16.mxu1 %v11479_v43  ;;  %v7404_v46 = vpack.c.bf16 %v7833_v0, %v7831_v47  ;;  %11633 = vst [vmem:[#allocation39_spill] sm:$0xff] %v10413_v24  ;;  %v11635_v57 = vld [vmem:[#allocation76_spill] sm:$0xff] }
 0x32e   : > { %v10411_v15 = vpop.eup %7836  ;;  %7852 = vpow2.f32 %v3293_v30  ;;  %v3062_v12 = vsub.f32 %v11634_v13, %v2914_v29  ;;  %7403 = vmatprep.subr.bf16.mxu0 %v11479_v43  ;;  %6834 = vmatprep.mubr.msk.f32.mxu0 %vm8221_vm2, %v11539_v14  ;;  %v11637_v1 = vsub.f32 %v11635_v57, %v11636_v34  ;;  %v11638_v30 = vld [vmem:[#allocation113_spill] sm:$0xff] }
 0x32f   : > { %v7839_v37 = vpop.eup %7838  ;;  %7854 = vpow2.f32 %v3295_v23  ;;  %v3065_v60 = vsub.f32 %v11638_v30, %v10196_v18  ;;  %v7392_v13 = vpack.c.bf16 %v10411_v15, %v10406_v39 }
 0x330   : > { %v3271_v42 = vmul.f32 1.442695, %v11637_v1  ;;  %v7841_v10 = vpop.eup %7840  ;;  %v3297_v0 = vmul.f32 1.442695, %v3062_v12  ;;  %3441 = vadd.xlane.f32.xlu1 %v10121_v35  ;;  %v10432_v35 = vpop.xlane.xlu0 %3411  ;;  %v11642_v1 = vld [vmem:[#allocation111_spill] sm:$0xff] }
 0x331   : > { %v2918_v29 = vpop.xlane.xlu1 %2917  ;;  %3535 = vadd.xlane.f32.xlu0 %v7831_v47  ;;  %v7407_v24 = vpack.c.bf16 %v7841_v10, %v7839_v37  ;;  %v10428_v34 = vpop.eup %7842  ;;  %v3303_v47 = vmul.f32 1.442695, %v3065_v60 }
 0x332   : > { %7856 = vpow2.f32 %v3297_v0  ;;  %v3064_v57 = vsub.f32 %v11639_v33, %v2918_v29  ;;  %v11644_v0 = vld [vmem:[#allocation86_spill] sm:$0xff] }
 0x333   : > { %7858 = vpow2.f32 %v3271_v42  ;;  %7393 = vmatpush3.bf16.xpose.msra.mxu1 %v7392_v13 }
 0x334   : > { %v10430_v23 = vpop.eup %7844  ;;  %7860 = vpow2.f32 %v3273_v9  ;;  %v3301_v51 = vmul.f32 1.442695, %v3064_v57  ;;  %7405 = vmatpush3.bf16.xpose.msra.mxu0 %v7404_v46  ;;  %3445 = vadd.xlane.f32.xlu1 %v10140_v28  ;;  %v11643_v9 = vld [vmem:[#allocation24_spill] sm:$0xff]  ;;  %v10457_v57 = vpop.xlane.xlu0 %3415 }
 0x335   : > { %v10435_v18 = vpop.eup %7846  ;;  %7862 = vpow2.f32 %v3299_v59  ;;  %v2922_v2 = vpop.xlane.xlu1 %2921  ;;  %3541 = vadd.xlane.f32.xlu0 %v7841_v10  ;;  %7394 = vmatprep.subr.bf16.mxu1 %v11479_v43  ;;  %v7410_v33 = vpack.c.bf16 %v10430_v23, %v10428_v34  ;;  %v3069_v59 = vsub.f32 %v11644_v0, %v11643_v9  ;;  %v11648_v9 = vld [vmem:[#allocation90_spill] sm:$0xff] }
 0x336   : > { %11640 = vst [vmem:[#allocation22_spill] sm:$0xff] %v10435_v18  ;;  %v10440_v12 = vpop.eup %7848  ;;  %7864 = vpow2.f32 %v3301_v51  ;;  %v3066_v42 = vsub.f32 %v11642_v1, %v2922_v2  ;;  %7406 = vmatprep.subr.bf16.mxu0 %v11479_v43  ;;  %v11645_v51 = vld [vmem:[#allocation80_spill] sm:$0xff] }
 0x337   : > { %11641 = vst [vmem:[#allocation43_spill] sm:$0xff] %v10440_v12  ;;  %v10444_v46 = vpop.eup %7850  ;;  %7866 = vpow2.f32 %v3303_v47  ;;  %v7395_v60 = vpack.c.bf16 %v10440_v12, %v10435_v18 }
 0x338   : > { %v10446_v28 = vpop.eup %7852  ;;  %v3305_v10 = vmul.f32 1.442695, %v3066_v42  ;;  %3449 = vadd.xlane.f32.xlu1 %v10156_v48  ;;  %v3311_v48 = vmul.f32 1.442695, %v3069_v59  ;;  %v11647_v42 = vld [vmem:[#allocation19_spill] sm:$0xff]  ;;  %v11650_v59 = vld [vmem:[#allocation84_spill] sm:$0xff] }
 0x339   : > { %v2926_v30 = vpop.xlane.xlu1 %2925  ;;  %3539 = vadd.xlane.f32.xlu0 %v7839_v37  ;;  %v10455_v13 = vpop.eup %7854  ;;  %v3071_v0 = vsub.f32 %v11648_v9, %v11647_v42  ;;  %v11651_v42 = vld [vmem:[#allocation101_spill] sm:$0xff]  ;;  %v11652_v9 = vld [vmem:[#allocation94_spill] sm:$0xff] }
 0x33a   : > { %7868 = vpow2.f32 %v3305_v10  ;;  %v3068_v2 = vsub.f32 %v11645_v51, %v2926_v30  ;;  %v10479_v51 = vpop.xlane.xlu0 %3419  ;;  %v3073_v10 = vsub.f32 %v11652_v9, %v11651_v42 }
 0x33b   : > { %7396 = vmatpush3.bf16.xpose.msra.mxu1 %v7395_v60 }
 0x33c   : > { %v10460_v1 = vpop.eup %7856  ;;  %v3309_v47 = vmul.f32 1.442695, %v3068_v2  ;;  %7408 = vmatpush3.bf16.xpose.msra.mxu0 %v7407_v24  ;;  %3453 = vadd.xlane.f32.xlu1 %v10179_v40  ;;  %v3315_v2 = vmul.f32 1.442695, %v3071_v0 }
 0x33d   : > { %v10463_v37 = vpop.eup %7858  ;;  %v2930_v29 = vpop.xlane.xlu1 %2929  ;;  %3543 = vadd.xlane.f32.xlu0 %v10428_v34  ;;  %7397 = vmatprep.subr.bf16.mxu1 %v11479_v43 }
 0x33e   : > { %11646 = vst [vmem:[#allocation15_spill] sm:$0xff] %v10463_v37  ;;  %v10471_v30 = vpop.eup %7860  ;;  %7870 = vpow2.f32 %v3309_v47  ;;  %v3070_v24 = vsub.f32 %v11650_v59, %v2930_v29  ;;  %7409 = vmatprep.subr.bf16.mxu0 %v11479_v43 }
 0x33f   : > { %11649 = vst [vmem:[#allocation25_spill] sm:$0xff] %v10471_v30  ;;  %v10475_v40 = vpop.eup %7862  ;;  %7872 = vpow2.f32 %v3311_v48  ;;  %v7398_v29 = vpack.c.bf16 %v10471_v30, %v10463_v37  ;;  %v11653_v48 = vld [vmem:[#allocation88_spill] sm:$0xff]  ;;  %v11672_v30 = vld [vmem:[#allocation78_spill] sm:$0xff] }
 0x340   : > { %v10477_v60 = vpop.eup %7864  ;;  %v3313_v34 = vmul.f32 1.442695, %v3070_v24  ;;  %3457 = vadd.xlane.f32.xlu1 %v10201_v53  ;;  %v11654_v24 = vld [vmem:[#allocation99_spill] sm:$0xff] }
 0x341   : > { %v2934_v12 = vpop.xlane.xlu1 %2933  ;;  %3481 = vadd.xlane.f32.xlu0 %v10215_v26  ;;  %v7419_v47 = vpack.c.bf16 %v10477_v60, %v10475_v40  ;;  %v10490_v18 = vpop.eup %7866  ;;  %v3319_v26 = vmul.f32 1.442695, %v3073_v10  ;;  %v3075_v42 = vsub.f32 %v11654_v24, %v10123_v3  ;;  %v7604_v3 = vunpack.i.h.bf16 %v11629_v52 }
 0x342   : > { %7874 = vpow2.f32 %v3313_v34  ;;  %v3072_v59 = vsub.f32 %v11653_v48, %v2934_v12  ;;  %v10501_v34 = vpop.xlane.xlu0 %3423 }
 0x343   : > { %7399 = vmatpush3.bf16.xpose.msra.mxu1 %v7398_v29  ;;  %7876 = vpow2.f32 %v3315_v2  ;;  %v11655_v29 = vld [vmem:[#allocation92_spill] sm:$0xff]  ;;  %v11656_v2 = vld [vmem:[#allocation105_spill] sm:$0xff] }
 0x344   : > { %v10492_v53 = vpop.eup %7868  ;;  %v3317_v0 = vmul.f32 1.442695, %v3072_v59  ;;  %7411 = vmatpush3.bf16.xpose.msra.mxu0 %v7410_v33  ;;  %3461 = vadd.xlane.f32.xlu1 %v10223_v61  ;;  %v3077_v48 = vsub.f32 %v11656_v2, %v10147_v31 }
 0x345   : > { %v2938_v9 = vpop.xlane.xlu1 %2937  ;;  %3545 = vadd.xlane.f32.xlu0 %v10430_v23  ;;  %7412 = vmatprep.subr.bf16.mxu0 %v11479_v43  ;;  %v7422_v12 = vpack.c.bf16 %v10492_v53, %v10490_v18  ;;  %v3323_v23 = vmul.f32 1.442695, %v3075_v42 }
 0x346   : > { %7878 = vpow2.f32 %v3317_v0  ;;  %v3074_v33 = vsub.f32 %v11655_v29, %v2938_v9  ;;  %7424 = vmatprep.subr.bf16.mxu1 %v11479_v43  ;;  %v11657_v9 = vld [vmem:[#allocation97_spill] sm:$0xff]  ;;  %v10521_v52 = vpop.xlane.xlu0 %3427 }
 0x347   : > { %7880 = vpow2.f32 %v3319_v26  ;;  %v11659_v26 = vld [vmem:[#allocation110_spill] sm:$0xff] }
 0x348   : > { %v10505_v61 = vpop.eup %7870  ;;  %v3321_v10 = vmul.f32 1.442695, %v3074_v33  ;;  %3465 = vadd.xlane.f32.xlu1 %v10241_v56  ;;  %v3079_v42 = vsub.f32 %v11659_v26, %v10181_v54 }
 0x349   : > { %v2942_v59 = vpop.xlane.xlu1 %2941  ;;  %3483 = vadd.xlane.f32.xlu0 %v10273_v62  ;;  %v7425_v0 = vpack.c.bf16 %v10505_v61, %v10247_v20  ;;  %v10514_v24 = vpop.eup %7872  ;;  %v11658_v62 = vpack.c.bf16 %v10446_v28, %v10444_v46  ;;  %v3327_v20 = vmul.f32 1.442695, %v3077_v48 }
 0x34a   : > { %7882 = vpow2.f32 %v3321_v10  ;;  %v3076_v29 = vsub.f32 %v11657_v9, %v2942_v59  ;;  %6800 = vmatmul.mubr.f32.vlgmr.msra.gmra.mrb[68].mxu1 %v7604_v3  ;;  %v11660_v10 = vld [vmem:[#allocation103_spill] sm:$0xff]  ;;  %v3331_v54 = vmul.f32 1.442695, %v3079_v42  ;;  %v10543_v59 = vpop.xlane.xlu0 %3431 }
 0x34b   : > { %7426 = vmatpush3.bf16.xpose.msra.mxu1 %v7425_v0  ;;  %6869 = vmatprep.mubr.msk.f32.mxu1 %vm8221_vm2, %v11539_v14  ;;  %7884 = vpow2.f32 %v3323_v23  ;;  %11661 = vst [vmem:[#allocation47_spill] sm:$0xff] %v10543_v59  ;;  %v11662_v0 = vld [vmem:[#allocation108_spill] sm:$0xff] }
 0x34c   : > { %v10519_v56 = vpop.eup %7874  ;;  %v3325_v31 = vmul.f32 1.442695, %v3076_v29  ;;  %7414 = vmatpush3.bf16.xpose.msra.mxu0 %v11658_v62  ;;  %3469 = vadd.xlane.f32.xlu1 %v10184_v50 }
 0x34d   : > { %v2946_v33 = vpop.xlane.xlu1 %2945  ;;  %3547 = vadd.xlane.f32.xlu0 %v10444_v46  ;;  %7415 = vmatprep.subr.bf16.mxu0 %v11479_v43  ;;  %v7428_v14 = vpack.c.bf16 %v10519_v56, %v10514_v24  ;;  %v10535_v2 = vpop.eup %7876 }
 0x34e   : > { %7886 = vpow2.f32 %v3325_v31  ;;  %v3078_v3 = vsub.f32 %v11660_v10, %v2946_v33  ;;  %7427 = vmatprep.subr.bf16.mxu1 %v11479_v43  ;;  %v4667_v33 = vlaneseq }
 0x34f   : > { %7888 = vpow2.f32 %v3327_v20 }
 0x350   : > { %v10537_v50 = vpop.eup %7878  ;;  %v3329_v23 = vmul.f32 1.442695, %v3078_v3  ;;  %3501 = vadd.xlane.f32.xlu1 %v10269_v63  ;;  %v11663_v63 = vpack.c.bf16 %v10460_v1, %v10455_v13  ;;  %v11666_v3 = vld [vmem:[#allocation34_spill] sm:$0xff] }
 0x351   : > { %v2950_v46 = vpop.xlane.xlu1 %2949  ;;  %3485 = vadd.xlane.f32.xlu0 %v10267_v36  ;;  %v7431_v48 = vpack.c.bf16 %v10537_v50, %v10535_v2  ;;  %v10546_v29 = vpop.eup %7880 }
 0x352   : > { %7890 = vpow2.f32 %v3329_v23  ;;  %v3080_v9 = vsub.f32 %v11662_v0, %v2950_v46  ;;  %v10577_v46 = vand.u32 127, %v4667_v33  ;;  %v10587_v0 = vshrl.u32 %v4667_v33, 7 }
 0x353   : > { %7429 = vmatpush3.bf16.xpose.msra.mxu1 %v7428_v14  ;;  %7892 = vpow2.f32 %v3331_v54  ;;  %v10565_v14 = vpop.xlane.xlu0 %3435 }
 0x354   : > { %v10548_v31 = vpop.eup %7882  ;;  %v3333_v62 = vmul.f32 1.442695, %v3080_v9  ;;  %7417 = vmatpush3.bf16.xpose.msra.mxu0 %v11663_v63  ;;  %3503 = vadd.xlane.f32.xlu1 %v10299_v41  ;;  %11664 = vst [vmem:[#allocation49_spill] sm:$0xff] %v10565_v14  ;;  %v11665_v41 = vld [vmem:[#allocation12_spill] sm:$0xff]  ;;  %v4673_v9 = vadd.s32 4294967288, %v10577_v46  ;;  %v4687_v63 = vadd.s32 4294967272, %v10577_v46 }
 0x355   : > { %v10554_v36 = vpop.xlane.xlu1 %2953  ;;  %3549 = vadd.xlane.f32.xlu0 %v10446_v28  ;;  %7418 = vmatprep.subr.bf16.mxu0 %v11479_v43  ;;  %v7434_v20 = vpack.c.bf16 %v10548_v31, %v10546_v29  ;;  %v10561_v26 = vpop.eup %7884 }
 0x356   : > { %7894 = vpow2.f32 %v3333_v62  ;;  %7430 = vmatprep.subr.bf16.mxu1 %v11479_v43  ;;  %v11668_v62 = vld [vmem:[#allocation38_spill] sm:$0xff] }
 0x357   : > { %7896 = vrcp.f32 %v11665_v41 }
 0x358   : > { %v10563_v42 = vpop.eup %7886  ;;  %3505 = vadd.xlane.f32.xlu1 %v10295_v5  ;;  %7898 = vrcp.f32 %v11666_v3  ;;  %v10609_v3 = vsub.s32 %v4673_v9, %v10587_v0 }
 0x359   : > { %v3342_v28 = vpop.xlane.xlu1 %3341  ;;  %3487 = vadd.xlane.f32.xlu0 %v10304_v55  ;;  %v10573_v23 = vpop.eup %7888 }
 0x35a   : > { %7900 = vrcp.f32 %v3342_v28  ;;  %v10606_v28 = vsub.s32 %v10577_v46, %v10587_v0 }
 0x35b   : > { %7432 = vmatpush3.bf16.xpose.msra.mxu1 %v7431_v48  ;;  %v10589_v48 = vpop.xlane.xlu0 %3439 }
 0x35c   : > { %v10575_v54 = vpop.eup %7890  ;;  %7420 = vmatpush3.bf16.xpose.msra.mxu0 %v7419_v47  ;;  %3507 = vadd.xlane.f32.xlu1 %v10330_v44  ;;  %11667 = vst [vmem:[#allocation8_spill] sm:$0xff] %v10589_v48  ;;  %v4680_v44 = vadd.s32 4294967280, %v10577_v46 }
 0x35d   : > { %v3346_v5 = vpop.xlane.xlu1 %3345  ;;  %3551 = vadd.xlane.f32.xlu0 %v10455_v13  ;;  %7421 = vmatprep.subr.bf16.mxu0 %v11479_v43  ;;  %v10593_v47 = vpop.eup %7892 }
 0x35e   : > { %7902 = vrcp.f32 %v3346_v5  ;;  %7433 = vmatprep.subr.bf16.mxu1 %v11479_v43 }
 0x35f   : > { %7904 = vrcp.f32 %v11668_v62  ;;  %v10612_v62 = vsub.s32 %v4680_v44, %v10587_v0  ;;  %v10616_v10 = vpop.xlane.xlu0 %3443  ;;  %v4701_v44 = vadd.s32 4294967256, %v10577_v46 }
 0x360   : > { %v10597_v13 = vpop.eup %7894  ;;  %3509 = vadd.xlane.f32.xlu1 %v10324_v11  ;;  %v11669_v11 = vld [vmem:[#allocation14_spill] sm:$0xff]  ;;  %11670 = vst [vmem:[#allocation18_spill] sm:$0xff] %v10616_v10 }
 0x361   : > { %v3350_v33 = vpop.xlane.xlu1 %3349  ;;  %3489 = vadd.xlane.f32.xlu0 %v10297_v17  ;;  %v7897_v5 = vpop.eup %7896  ;;  %v4694_v17 = vadd.s32 4294967264, %v10577_v46 }
 0x362   : > { %7906 = vrcp.f32 %v3350_v33  ;;  %v7899_v55 = vpop.eup %7898  ;;  %v10623_v33 = vsub.s32 %v4687_v63, %v10587_v0  ;;  %v7638_v63 = vunpack.i.l.bf16 %v11672_v30 }
 0x363   : > { %7908 = vrcp.f32 %v11669_v11  ;;  %7435 = vmatpush3.bf16.xpose.msra.mxu1 %v7434_v20  ;;  %v4672_v20 = vrot.slane %v7897_v5, %v10606_v28  ;;  %v10634_v37 = vsub.s32 %v4694_v17, %v10587_v0  ;;  %v10646_v17 = vpop.xlane.xlu0 %3447 }
 0x364   : > { %7423 = vmatpush3.bf16.xpose.msra.mxu0 %v7422_v12  ;;  %3511 = vadd.xlane.f32.xlu1 %v10361_v27  ;;  %v7901_v9 = vpop.eup %7900  ;;  %v4684_v27 = vrot.slane %v7899_v55, %v10612_v62  ;;  %v11671_v12 = vld [vmem:[#allocation42_spill] sm:$0xff]  ;;  %11673 = vst [vmem:[#allocation50_spill] sm:$0xff] %v10646_v17 }
 0x365   : > { %v3354_v11 = vpop.xlane.xlu1 %3353  ;;  %3553 = vadd.xlane.f32.xlu0 %v10460_v1  ;;  %7436 = vmatprep.subr.bf16.mxu1 %v11479_v43  ;;  %v4677_v41 = vrot.slane %v7901_v9, %v10609_v3  ;;  %v4708_v1 = vadd.s32 4294967248, %v10577_v46 }
 0x366   : > { %7910 = vrcp.f32 %v3354_v11  ;;  %v10642_v11 = vsub.s32 %v4701_v44, %v10587_v0 }
 0x367   : > { %7912 = vrcp.f32 %v11671_v12  ;;  %v4679_v48 = vsel %vm4678_vm3, %v4677_v41, %v4672_v20  ;;  %v4715_v12 = vadd.s32 4294967240, %v10577_v46  ;;  %v4722_v41 = vadd.s32 4294967232, %v10577_v46  ;;  %v11674_v20 = vld [vmem:[#allocation46_spill] sm:$0xff]  ;;  %v10678_v17 = vpop.xlane.xlu0 %3451 }
 0x368   : > { %v7903_v10 = vpop.eup %7902  ;;  %3533 = vadd.xlane.f32.xlu1 %v10390_v32  ;;  %v4686_v9 = vsel %vm4685_vm4, %v4684_v27, %v4679_v48 }
 0x369   : > { %v7905_v5 = vpop.eup %7904  ;;  %v4691_v55 = vrot.slane %v7903_v10, %v10623_v33  ;;  %v3358_v14 = vpop.xlane.xlu1 %3357  ;;  %3491 = vadd.xlane.f32.xlu0 %v10333_v6  ;;  %v11675_v10 = vpack.c.bf16 %v10563_v42, %v10561_v26  ;;  %v10656_v6 = vsub.s32 %v4708_v1, %v10587_v0  ;;  %v4729_v1 = vadd.s32 4294967224, %v10577_v46 }
 0x36a   : > { %7914 = vrcp.f32 %v3358_v14  ;;  %v4698_v44 = vrot.slane %v7905_v5, %v10634_v37  ;;  %v11676_v14 = vld [vmem:[#allocation112_spill] sm:$0xff] }
 0x36b   : > { %7916 = vrcp.f32 %v11674_v20  ;;  %v4693_v32 = vsel %vm4692_vm5, %v4691_v55, %v4686_v9  ;;  %6835 = vmatmul.mubr.f32.vlgmr.msra.gmra.mrb[70].mxu0 %v7638_v63  ;;  %7438 = vmatpush3.bf16.xpose.msra.mxu1 %v11675_v10  ;;  %v3082_v27 = vsub.f32 %v11676_v14, %v10554_v36  ;;  %v11677_v63 = vld [vmem:[#allocation114_spill] sm:$0xff]  ;;  %v10666_v10 = vsub.s32 %v4715_v12, %v10587_v0  ;;  %v11678_v14 = vld [vmem:[#allocation17_spill] sm:$0xff] }
 0x36c   : > { %v7907_v48 = vpop.eup %7906  ;;  %3565 = vadd.xlane.f32.xlu1 %v10505_v61  ;;  %7439 = vmatprep.subr.bf16.mxu1 %v11479_v43  ;;  %v3081_v55 = vsub.f32 %v11677_v63, %v10213_v22  ;;  %v4700_v36 = vsel %vm4699_vm6, %v4698_v44, %v4693_v32  ;;  %v10672_v61 = vsub.s32 %v4722_v41, %v10587_v0  ;;  %v4736_v63 = vadd.s32 4294967216, %v10577_v46 }
 0x36d   : > { %v7909_v9 = vpop.eup %7908  ;;  %v4705_v20 = vrot.slane %v7907_v48, %v10642_v11  ;;  %v3362_v5 = vpop.xlane.xlu1 %3361  ;;  %3555 = vadd.xlane.f32.xlu0 %v10475_v40  ;;  %v3337_v59 = vmul.f32 1.442695, %v3082_v27  ;;  %v10683_v44 = vsub.s32 %v4729_v1, %v10587_v0  ;;  %v4750_v27 = vadd.s32 4294967200, %v10577_v46 }
 0x36e   : > { %7918 = vrcp.f32 %v3362_v5  ;;  %v4712_v12 = vrot.slane %v7909_v9, %v10656_v6  ;;  %v3335_v32 = vmul.f32 1.442695, %v3081_v55  ;;  %v11680_v55 = vpack.c.bf16 %v10575_v54, %v10573_v23 }
 0x36f   : > { %7920 = vrcp.f32 %v11678_v14  ;;  %v4707_v22 = vsel %vm4706_vm7, %v4705_v20, %v4700_v36  ;;  %v4743_v20 = vadd.s32 4294967208, %v10577_v46  ;;  %v11679_v36 = vld [vmem:[#allocation95_spill] sm:$0xff] }
 0x370   : > { %v7911_v48 = vpop.eup %7910  ;;  %3569 = vadd.xlane.f32.xlu1 %v10519_v56  ;;  %v4714_v9 = vsel %vm4713_vm8, %v4712_v12, %v4707_v22 }
 0x371   : > { %v7913_v40 = vpop.eup %7912  ;;  %v4719_v41 = vrot.slane %v7911_v48, %v10666_v10  ;;  %v3366_v5 = vpop.xlane.xlu1 %3365  ;;  %3493 = vadd.xlane.f32.xlu0 %v10328_v19  ;;  %v10696_v48 = vsub.s32 %v4736_v63, %v10587_v0  ;;  %v10702_v12 = vsub.s32 %v4743_v20, %v10587_v0 }
 0x372   : > { %7922 = vrcp.f32 %v3366_v5  ;;  %v4726_v14 = vrot.slane %v7913_v40, %v10672_v61  ;;  %v4757_v40 = vadd.s32 4294967192, %v10577_v46  ;;  %v10706_v63 = vpop.xlane.xlu0 %3455 }
 0x373   : > { %7924 = vrcp.f32 %v11679_v36  ;;  %v4721_v56 = vsel %vm4720_vm9, %v4719_v41, %v4714_v9  ;;  %7441 = vmatpush3.bf16.xpose.msra.mxu1 %v11680_v55 }
 0x374   : > { %v7915_v1 = vpop.eup %7914  ;;  %7926 = vpow2.f32 %v3337_v59  ;;  %3567 = vadd.xlane.f32.xlu1 %v10514_v24  ;;  %7442 = vmatprep.subr.bf16.mxu1 %v11479_v43  ;;  %v4728_v24 = vsel %vm4727_vm10, %v4726_v14, %v4721_v56  ;;  %v10710_v59 = vsub.s32 %v4750_v27, %v10587_v0  ;;  %v10720_v55 = vsub.s32 %v4757_v40, %v10587_v0 }
 0x375   : > { %v7917_v19 = vpop.eup %7916  ;;  %7928 = vpow2.f32 %v3335_v32  ;;  %v4733_v22 = vrot.slane %v7915_v1, %v10683_v44  ;;  %v3370_v41 = vpop.xlane.xlu1 %3369  ;;  %3557 = vadd.xlane.f32.xlu0 %v10477_v60  ;;  %v4764_v60 = vadd.s32 4294967184, %v10577_v46  ;;  %v4771_v1 = vadd.s32 4294967176, %v10577_v46 }
 0x376   : > { %7930 = vrcp.f32 %v3370_v41  ;;  %v4740_v20 = vrot.slane %v7917_v19, %v10696_v48  ;;  %v11681_v19 = vpack.c.bf16 %v10597_v13, %v10593_v47 }
 0x377   : > { %v4735_v32 = vsel %vm4734_vm11, %v4733_v22, %v4728_v24  ;;  %7932 = vrcp.f32 %v10226_v8  ;;  %v10729_v22 = vpop.xlane.xlu0 %3459  ;;  %v10733_v46 = vsub.s32 %v4764_v60, %v10587_v0  ;;  %v10740_v24 = vsub.s32 %v4771_v1, %v10587_v0 }
 0x378   : > { %v7919_v5 = vpop.eup %7918  ;;  %3573 = vadd.xlane.f32.xlu1 %v10537_v50  ;;  %v4742_v8 = vsel %vm4741_vm12, %v4740_v20, %v4735_v32 }
 0x379   : > { %v7921_v9 = vpop.eup %7920  ;;  %v4747_v36 = vrot.slane %v7919_v5, %v10702_v12  ;;  %v3374_v56 = vpop.xlane.xlu1 %3373  ;;  %3495 = vadd.xlane.f32.xlu0 %v10364_v38 }
 0x37a   : > { %v3693_v27 = vpop.f32.mrb[64].mxu0  ;;  %7934 = vrcp.f32 %v3374_v56  ;;  %v4754_v41 = vrot.slane %v7921_v9, %v10710_v59 }
 0x37b   : > { %v6626_v50 = vpop.f32.mrb[65].mxu0  ;;  %7936 = vrcp.f32 %v10243_v7  ;;  %v4749_v14 = vsel %vm4748_vm13, %v4747_v36, %v4742_v8  ;;  %7444 = vmatpush3.bf16.xpose.msra.mxu1 %v11681_v19  ;;  %v10758_v56 = vpop.xlane.xlu0 %3463 }
 0x37c   : > { %v7923_v38 = vpop.eup %7922  ;;  %3571 = vadd.xlane.f32.xlu1 %v10535_v2  ;;  %7445 = vmatprep.subr.bf16.mxu1 %v11479_v43  ;;  %v4756_v20 = vsel %vm4755_vm14, %v4754_v41, %v4749_v14 }
 0x37d   : > { %v7925_v7 = vpop.eup %7924  ;;  %v4761_v40 = vrot.slane %v7923_v38, %v10720_v55  ;;  %v3378_v32 = vpop.xlane.xlu1 %3377  ;;  %3559 = vadd.xlane.f32.xlu0 %v10490_v18 }
 0x37e   : > { %v10743_v5 = vpop.eup %7926  ;;  %7938 = vrcp.f32 %v3378_v32  ;;  %v4768_v0 = vrot.slane %v7925_v7, %v10733_v46  ;;  %v7641_v7 = vunpack.i.h.bf16 %v11672_v30 }
 0x37f   : > { %v10746_v60 = vpop.eup %7928  ;;  %7940 = vrcp.f32 %v10259_v49  ;;  %v4763_v43 = vsel %vm4762_vm15, %v4761_v40, %v4756_v20  ;;  %v10773_v41 = vpop.xlane.xlu0 %3467 }
 0x380   : > { %v7931_v2 = vpop.eup %7930  ;;  %3575 = vadd.xlane.f32.xlu1 %v10546_v29  ;;  %v7446_v36 = vpack.c.bf16 %v10743_v5, %v10746_v60  ;;  %v4770_v1 = vsel %vm4769_vm0, %v4768_v0, %v4763_v43 }
 0x381   : > { %v4775_v18 = vrot.slane %v7931_v2, %v10740_v24  ;;  %v3382_v9 = vpop.xlane.xlu1 %3381  ;;  %3497 = vadd.xlane.f32.xlu0 %v10356_v45  ;;  %v7933_v49 = vpop.eup %7932 }
 0x382   : > { %7942 = vrcp.f32 %v3382_v9  ;;  %v4781_v45 = vrot.slane %v7933_v49, %v10606_v28  ;;  %v11683_v49 = vld [vmem:[#allocation35_spill] sm:$0xff] }
 0x383   : > { %7944 = vrcp.f32 %v10280_v58  ;;  %v4777_v8 = vsel %vm4776_vm1, %v4775_v18, %v4770_v1  ;;  %7447 = vmatpush3.bf16.xpose.msra.mxu1 %v7446_v36  ;;  %v10784_v9 = vpop.xlane.xlu0 %3499 }
 0x384   : > { %v7935_v29 = vpop.eup %7934  ;;  %v5357_v50 = vmul.f32 %v4777_v8, %v3693_v27  ;;  %3513 = vadd.xlane.f32.xlu1 %v10353_v21 }
 0x385   : > { %v7937_v14 = vpop.eup %7936  ;;  %v4785_v19 = vrot.slane %v7935_v29, %v10609_v3  ;;  %v3386_v38 = vpop.xlane.xlu1 %3385  ;;  %3561 = vadd.xlane.f32.xlu0 %v10492_v53 }
 0x386   : > { %5365 = vst [vmem:[%s10767_s21] sm:$0xf] %v5357_v50  ;;  %7946 = vrcp.f32 %v3386_v38  ;;  %v4790_v21 = vrot.slane %v7937_v14, %v10612_v62 }
 0x387   : > { %7948 = vrcp.f32 %v10301_v16  ;;  %v4786_v58 = vsel %vm4678_vm3, %v4785_v19, %v4781_v45  ;;  %v11682_v16 = vld [vmem:[#allocation32_spill] sm:$0xff] }
 0x388   : > { %v7939_v27 = vpop.eup %7938  ;;  %3577 = vadd.xlane.f32.xlu1 %v10548_v31  ;;  %v4791_v20 = vsel %vm4685_vm4, %v4790_v21, %v4786_v58  ;;  %v11684_v21 = vld [vmem:[#allocation13_spill] sm:$0xff] }
 0x389   : > { %v7941_v40 = vpop.eup %7940  ;;  %v4795_v53 = vrot.slane %v7939_v27, %v10623_v33  ;;  %v3390_v32 = vpop.xlane.xlu1 %3389 }
 0x38a   : > { %7950 = vrcp.f32 %v3390_v32  ;;  %6870 = vmatmul.mubr.f32.vlgmr.msra.gmra.mrb[70].mxu1 %v7641_v7  ;;  %v4800_v0 = vrot.slane %v7941_v40, %v10634_v37  ;;  %v10796_v27 = vpop.xlane.xlu0 %3471 }
 0x38b   : > { %7952 = vrcp.f32 %v11682_v16  ;;  %v4796_v43 = vsel %vm4692_vm5, %v4795_v53, %v4791_v20  ;;  %v11685_v16 = vld [vmem:[#allocation106_spill] sm:$0xff] }
 0x38c   : > { %v7943_v2 = vpop.eup %7942  ;;  %3515 = vadd.xlane.f32.xlu1 %v10385_v25  ;;  %v4801_v36 = vsel %vm4699_vm6, %v4800_v0, %v4796_v43  ;;  %v11686_v0 = vld [vmem:[#allocation39_spill] sm:$0xff] }
 0x38d   : > { %v7945_v31 = vpop.eup %7944  ;;  %v4805_v30 = vrot.slane %v7943_v2, %v10642_v11  ;;  %v3394_v18 = vpop.xlane.xlu1 %3393 }
 0x38e   : > { %7954 = vrcp.f32 %v3394_v18  ;;  %v4810_v29 = vrot.slane %v7945_v31, %v10656_v6  ;;  %v10804_v43 = vpop.xlane.xlu0 %3473 }
 0x38f   : > { %7956 = vrcp.f32 %v11683_v49  ;;  %v4806_v1 = vsel %vm4706_vm7, %v4805_v30, %v4801_v36 }
 0x390   : > { %v7947_v8 = vpop.eup %7946  ;;  %3579 = vadd.xlane.f32.xlu1 %v10561_v26  ;;  %v4811_v45 = vsel %vm4713_vm8, %v4810_v29, %v4806_v1 }
 0x391   : > { %v7949_v50 = vpop.eup %7948  ;;  %v4815_v25 = vrot.slane %v7947_v8, %v10666_v10  ;;  %v3398_v14 = vpop.xlane.xlu1 %3397 }
 0x392   : > { %7958 = vrcp.f32 %v3398_v14  ;;  %v4820_v58 = vrot.slane %v7949_v50, %v10672_v61 }
 0x393   : > { %7960 = vrcp.f32 %v10370_v4  ;;  %v4816_v19 = vsel %vm4720_vm9, %v4815_v25, %v4811_v45  ;;  %v10815_v25 = vpop.xlane.xlu0 %3475 }
 0x394   : > { %v7951_v38 = vpop.eup %7950  ;;  %3517 = vadd.xlane.f32.xlu1 %v11684_v21  ;;  %v4821_v53 = vsel %vm4727_vm10, %v4820_v58, %v4816_v19 }
 0x395   : > { %v7953_v7 = vpop.eup %7952  ;;  %v4825_v26 = vrot.slane %v7951_v38, %v10683_v44  ;;  %v3402_v40 = vpop.xlane.xlu1 %3401 }
 0x396   : > { %7962 = vrcp.f32 %v3402_v40  ;;  %v4830_v4 = vrot.slane %v7953_v7, %v10696_v48 }
 0x397   : > { %v4826_v32 = vsel %vm4734_vm11, %v4825_v26, %v4821_v53  ;;  %7964 = vrcp.f32 %v11685_v16 }
 0x398   : > { %v7955_v20 = vpop.eup %7954  ;;  %3581 = vadd.xlane.f32.xlu1 %v10563_v42  ;;  %7966 = vrcp.f32 %v11686_v0  ;;  %v4831_v18 = vsel %vm4741_vm12, %v4830_v4, %v4826_v32  ;;  %v10825_v32 = vpop.xlane.xlu0 %3477 }
 0x399   : > { %v7957_v2 = vpop.eup %7956  ;;  %v4835_v31 = vrot.slane %v7955_v20, %v10702_v12  ;;  %v3406_v30 = vpop.xlane.xlu1 %3405 }
 0x39a   : > { %7968 = vrcp.f32 %v3406_v30  ;;  %v4840_v1 = vrot.slane %v7957_v2, %v10710_v59 }
 0x39b   : > { %v4836_v36 = vsel %vm4748_vm13, %v4835_v31, %v4831_v18  ;;  %7970 = vrcp.f32 %v10432_v35 }
 0x39c   : > { %v7959_v49 = vpop.eup %7958  ;;  %3519 = vadd.xlane.f32.xlu1 %v10406_v39  ;;  %v4841_v14 = vsel %vm4755_vm14, %v4840_v1, %v4836_v36  ;;  %v10839_v36 = vpop.xlane.xlu0 %3479 }
 0x39d   : > { %v7961_v8 = vpop.eup %7960  ;;  %v3795_v42 = vpop.f32.mrb[64].mxu1  ;;  %v4845_v29 = vrot.slane %v7959_v49, %v10720_v55 }
 0x39e   : > { %v3410_v50 = vpop.xlane.xlu1 %3409  ;;  %v6661_v45 = vpop.f32.mrb[65].mxu1  ;;  %v4850_v39 = vrot.slane %v7961_v8, %v10733_v46 }
 0x39f   : > { %7972 = vrcp.f32 %v3410_v50  ;;  %v4846_v19 = vsel %vm4762_vm15, %v4845_v29, %v4841_v14  ;;  %v11687_v29 = vld [vmem:[#allocation22_spill] sm:$0xff] }
 0x3a0   : > { %v7963_v38 = vpop.eup %7962  ;;  %3583 = vadd.xlane.f32.xlu1 %v10573_v23  ;;  %7974 = vrcp.f32 %v10457_v57  ;;  %v4851_v7 = vsel %vm4769_vm0, %v4850_v39, %v4846_v19 }
 0x3a1   : > { %v4855_v35 = vrot.slane %v7963_v38, %v10740_v24  ;;  %v7965_v21 = vpop.eup %7964  ;;  %v10848_v38 = vpop.xlane.xlu0 %3531 }
 0x3a2   : > { %v3414_v58 = vpop.xlane.xlu1 %3413  ;;  %v7967_v26 = vpop.eup %7966  ;;  %v4860_v23 = vrot.slane %v7965_v21, %v10606_v28 }
 0x3a3   : > { %7976 = vrcp.f32 %v3414_v58  ;;  %v4856_v40 = vsel %vm4776_vm1, %v4855_v35, %v4851_v7  ;;  %v4869_v16 = vrot.slane %v7967_v26, %v10612_v62  ;;  %v11688_v35 = vld [vmem:[#allocation47_spill] sm:$0xff] }
 0x3a4   : > { %v7969_v53 = vpop.eup %7968  ;;  %v5358_v20 = vmul.f32 %v4856_v40, %v3795_v42  ;;  %3521 = vadd.xlane.f32.xlu1 %v10411_v15  ;;  %7978 = vrcp.f32 %v10479_v51 }
 0x3a5   : > { %v4864_v57 = vrot.slane %v7969_v53, %v10609_v3  ;;  %v7971_v2 = vpop.eup %7970  ;;  %v11689_v53 = vld [vmem:[#allocation43_spill] sm:$0xff] }
 0x3a6   : > { %v3418_v4 = vpop.xlane.xlu1 %3417  ;;  %5366 = vst [vmem:[%s10767_s21 + $0x4] sm:$0xf] %v5358_v20  ;;  %v4879_v18 = vrot.slane %v7971_v2, %v10634_v37 }
 0x3a7   : > { %7980 = vrcp.f32 %v3418_v4  ;;  %v4865_v0 = vsel %vm4678_vm3, %v4864_v57, %v4860_v23  ;;  %v10860_v4 = vpop.xlane.xlu0 %3563 }
 0x3a8   : > { %v4870_v30 = vsel %vm4685_vm4, %v4869_v16, %v4865_v0  ;;  %3585 = vadd.xlane.f32.xlu1 %v10575_v54  ;;  %7982 = vrcp.f32 %v10501_v34 }
 0x3a9   : > { %v7973_v31 = vpop.eup %7972 }
 0x3aa   : > { %v4874_v15 = vrot.slane %v7973_v31, %v10623_v33  ;;  %v3422_v51 = vpop.xlane.xlu1 %3421  ;;  %v7975_v49 = vpop.eup %7974  ;;  %v11690_v31 = vld [vmem:[#allocation49_spill] sm:$0xff] }
 0x3ab   : > { %7984 = vrcp.f32 %v3422_v51  ;;  %v4889_v50 = vrot.slane %v7975_v49, %v10656_v6 }
 0x3ac   : > { %v4875_v1 = vsel %vm4692_vm5, %v4874_v15, %v4870_v30  ;;  %3523 = vadd.xlane.f32.xlu1 %v11687_v29  ;;  %7986 = vrcp.f32 %v10521_v52  ;;  %v11691_v15 = vld [vmem:[#allocation8_spill] sm:$0xff] }
 0x3ad   : > { %v7977_v8 = vpop.eup %7976  ;;  %v4880_v42 = vsel %vm4699_vm6, %v4879_v18, %v4875_v1 }
 0x3ae   : > { %v4884_v34 = vrot.slane %v7977_v8, %v10642_v11  ;;  %v3426_v54 = vpop.xlane.xlu1 %3425  ;;  %v7979_v14 = vpop.eup %7978 }
 0x3af   : > { %7988 = vrcp.f32 %v3426_v54  ;;  %v4899_v21 = vrot.slane %v7979_v14, %v10672_v61  ;;  %v11693_v54 = vld [vmem:[#allocation18_spill] sm:$0xff] }
 0x3b0   : > { %v4885_v45 = vsel %vm4706_vm7, %v4884_v34, %v4880_v42  ;;  %3587 = vadd.xlane.f32.xlu1 %v10593_v47  ;;  %7990 = vrcp.f32 %v11688_v35  ;;  %v11692_v34 = vld [vmem:[#allocation15_spill] sm:$0xff] }
 0x3b1   : > { %v7981_v19 = vpop.eup %7980  ;;  %v4890_v39 = vsel %vm4713_vm8, %v4889_v50, %v4885_v45 }
 0x3b2   : > { %v4894_v52 = vrot.slane %v7981_v19, %v10666_v10  ;;  %v3430_v58 = vpop.xlane.xlu1 %3429  ;;  %v7983_v7 = vpop.eup %7982 }
 0x3b3   : > { %7992 = vrcp.f32 %v3430_v58  ;;  %v4909_v47 = vrot.slane %v7983_v7, %v10696_v48  ;;  %v11694_v7 = vld [vmem:[#allocation50_spill] sm:$0xff] }
 0x3b4   : > { %v4895_v26 = vsel %vm4720_vm9, %v4894_v52, %v4890_v39  ;;  %3525 = vadd.xlane.f32.xlu1 %v11689_v53 }
 0x3b5   : > { %v7985_v40 = vpop.eup %7984  ;;  %v4900_v20 = vsel %vm4727_vm10, %v4899_v21, %v4895_v26 }
 0x3b6   : > { %v4904_v23 = vrot.slane %v7985_v40, %v10683_v44  ;;  %v3434_v57 = vpop.xlane.xlu1 %3433  ;;  %v7987_v16 = vpop.eup %7986 }
 0x3b7   : > { %7994 = vrcp.f32 %v3434_v57  ;;  %v4919_v49 = vrot.slane %v7987_v16, %v10710_v59 }
 0x3b8   : > { %v4905_v2 = vsel %vm4734_vm11, %v4904_v23, %v4900_v20  ;;  %7996 = vrcp.f32 %v11690_v31  ;;  %3589 = vadd.xlane.f32.xlu1 %v10597_v13 }
 0x3b9   : > { %v7989_v0 = vpop.eup %7988  ;;  %v4910_v30 = vsel %vm4741_vm12, %v4909_v47, %v4905_v2  ;;  %7998 = vrcp.f32 %v11691_v15  ;;  %v11695_v2 = vld [vmem:[#allocation25_spill] sm:$0xff] }
 0x3ba   : > { %v4914_v51 = vrot.slane %v7989_v0, %v10702_v12  ;;  %v3438_v18 = vpop.xlane.xlu1 %3437  ;;  %v10869_v1 = vpop.xlane.xlu0 %3537 }
 0x3bb   : > { %8000 = vrcp.f32 %v3438_v18  ;;  %v7991_v8 = vpop.eup %7990 }
 0x3bc   : > { %v4915_v42 = vsel %vm4748_vm13, %v4914_v51, %v4910_v30  ;;  %3527 = vadd.xlane.f32.xlu1 %v11692_v34  ;;  %8002 = vrcp.f32 %v11693_v54  ;;  %v4929_v19 = vrot.slane %v7991_v8, %v10733_v46 }
 0x3bd   : > { %v7993_v29 = vpop.eup %7992  ;;  %v4920_v13 = vsel %vm4755_vm14, %v4919_v49, %v4915_v42 }
 0x3be   : > { %v3442_v50 = vpop.xlane.xlu1 %3441  ;;  %v4924_v14 = vrot.slane %v7993_v29, %v10720_v55  ;;  %v3897_v45 = vpop.f32.mrb[66].mxu0 }
 0x3bf   : > { %8004 = vrcp.f32 %v3442_v50  ;;  %v10877_v39 = vpop.xlane.xlu0 %3535  ;;  %v6696_v52 = vpop.f32.mrb[67].mxu0 }
 0x3c0   : > { %v4925_v35 = vsel %vm4762_vm15, %v4924_v14, %v4920_v13  ;;  %3591 = vadd.xlane.f32.xlu1 %v10746_v60  ;;  %8006 = vrcp.f32 %v11694_v7 }
 0x3c1   : > { %v7995_v58 = vpop.eup %7994  ;;  %v4930_v21 = vsel %vm4769_vm0, %v4929_v19, %v4925_v35 }
 0x3c2   : > { %v4934_v26 = vrot.slane %v7995_v58, %v10740_v24  ;;  %v3446_v40 = vpop.xlane.xlu1 %3445  ;;  %v7997_v53 = vpop.eup %7996 }
 0x3c3   : > { %8008 = vrcp.f32 %v3446_v40  ;;  %v10884_v20 = vpop.xlane.xlu0 %3541  ;;  %v7999_v23 = vpop.eup %7998  ;;  %v4939_v0 = vrot.slane %v7997_v53, %v10606_v28 }
 0x3c4   : > { %v4935_v57 = vsel %vm4776_vm1, %v4934_v26, %v4930_v21  ;;  %3529 = vadd.xlane.f32.xlu1 %v11695_v2  ;;  %8010 = vrcp.f32 %v10678_v17  ;;  %v4948_v30 = vrot.slane %v7999_v23, %v10612_v62 }
 0x3c5   : > { %v8001_v47 = vpop.eup %8000  ;;  %v5359_v16 = vmul.f32 %v4935_v57, %v3897_v45 }
 0x3c6   : > { %v4943_v60 = vrot.slane %v8001_v47, %v10609_v3  ;;  %v3450_v31 = vpop.xlane.xlu1 %3449  ;;  %v8003_v51 = vpop.eup %8002 }
 0x3c7   : > { %5367 = vst [vmem:[%s10767_s21 + $0x8] sm:$0xf] %v5359_v16  ;;  %8012 = vrcp.f32 %v3450_v31  ;;  %v10893_v15 = vpop.xlane.xlu0 %3539  ;;  %v4958_v29 = vrot.slane %v8003_v51, %v10634_v37 }
 0x3c8   : > { %v4944_v18 = vsel %vm4678_vm3, %v4943_v60, %v4939_v0  ;;  %3593 = vadd.xlane.f32.xlu1 %v10743_v5  ;;  %8014 = vrcp.f32 %v10706_v63 }
 0x3c9   : > { %v8005_v49 = vpop.eup %8004  ;;  %v4949_v8 = vsel %vm4685_vm4, %v4948_v30, %v4944_v18 }
 0x3ca   : > { %v4953_v17 = vrot.slane %v8005_v49, %v10623_v33  ;;  %v3454_v42 = vpop.xlane.xlu1 %3453  ;;  %v8007_v13 = vpop.eup %8006 }
 0x3cb   : > { %8016 = vrcp.f32 %v3454_v42  ;;  %v10901_v34 = vpop.xlane.xlu0 %3543  ;;  %v4968_v63 = vrot.slane %v8007_v13, %v10656_v6 }
 0x3cc   : > { %v4954_v54 = vsel %vm4692_vm5, %v4953_v17, %v4949_v8  ;;  %8018 = vrcp.f32 %v10729_v22 }
 0x3cd   : > { %v8009_v50 = vpop.eup %8008  ;;  %v4959_v14 = vsel %vm4699_vm6, %v4958_v29, %v4954_v54 }
 0x3ce   : > { %v4963_v5 = vrot.slane %v8009_v50, %v10642_v11  ;;  %v3458_v45 = vpop.xlane.xlu1 %3457  ;;  %v8011_v35 = vpop.eup %8010 }
 0x3cf   : > { %8020 = vrcp.f32 %v3458_v45  ;;  %v10908_v19 = vpop.xlane.xlu0 %3481  ;;  %v4978_v22 = vrot.slane %v8011_v35, %v10672_v61 }
 0x3d0   : > { %v4964_v52 = vsel %vm4706_vm7, %v4963_v5, %v4959_v14  ;;  %8022 = vrcp.f32 %v10758_v56 }
 0x3d1   : > { %v8013_v58 = vpop.eup %8012  ;;  %v4969_v21 = vsel %vm4713_vm8, %v4968_v63, %v4964_v52 }
 0x3d2   : > { %v4973_v7 = vrot.slane %v8013_v58, %v10666_v10  ;;  %v3462_v26 = vpop.xlane.xlu1 %3461  ;;  %v8015_v53 = vpop.eup %8014 }
 0x3d3   : > { %8024 = vrcp.f32 %v3462_v26  ;;  %v10915_v40 = vpop.xlane.xlu0 %3545  ;;  %v4988_v56 = vrot.slane %v8015_v53, %v10696_v48 }
 0x3d4   : > { %v4974_v23 = vsel %vm4720_vm9, %v4973_v7, %v4969_v21  ;;  %8026 = vrcp.f32 %v10773_v41 }
 0x3d5   : > { %v8017_v57 = vpop.eup %8016  ;;  %v4979_v47 = vsel %vm4727_vm10, %v4978_v22, %v4974_v23 }
 0x3d6   : > { %v4983_v16 = vrot.slane %v8017_v57, %v10683_v44  ;;  %v3466_v2 = vpop.xlane.xlu1 %3465  ;;  %v8019_v60 = vpop.eup %8018 }
 0x3d7   : > { %8028 = vrcp.f32 %v3466_v2  ;;  %v10922_v0 = vpop.xlane.xlu0 %3483  ;;  %v4998_v49 = vrot.slane %v8019_v60, %v10710_v59 }
 0x3d8   : > { %8030 = vrcp.f32 %v10784_v9  ;;  %v4984_v31 = vsel %vm4734_vm11, %v4983_v16, %v4979_v47 }
 0x3d9   : > { %v8021_v30 = vpop.eup %8020  ;;  %8032 = vrcp.f32 %v10796_v27  ;;  %v4989_v51 = vsel %vm4741_vm12, %v4988_v56, %v4984_v31 }
 0x3da   : > { %8034 = vrcp.f32 %v10804_v43  ;;  %v4993_v41 = vrot.slane %v8021_v30, %v10702_v12  ;;  %v3470_v18 = vpop.xlane.xlu1 %3469  ;;  %v8023_v17 = vpop.eup %8022 }
 0x3db   : > { %8036 = vrcp.f32 %v3470_v18  ;;  %v10931_v8 = vpop.xlane.xlu0 %3547  ;;  %v5008_v54 = vrot.slane %v8023_v17, %v10733_v46 }
 0x3dc   : > { %8038 = vrcp.f32 %v10815_v25  ;;  %v4994_v9 = vsel %vm4748_vm13, %v4993_v41, %v4989_v51 }
 0x3dd   : > { %v8025_v42 = vpop.eup %8024  ;;  %8040 = vrcp.f32 %v10825_v32  ;;  %v4999_v27 = vsel %vm4755_vm14, %v4998_v49, %v4994_v9  ;;  %v3999_v43 = vpop.f32.mrb[66].mxu1 }
 0x3de   : > { %8042 = vrcp.f32 %v10839_v36  ;;  %v5003_v29 = vrot.slane %v8025_v42, %v10720_v55  ;;  %v3502_v13 = vpop.xlane.xlu1 %3501  ;;  %v6731_v50 = vpop.f32.mrb[67].mxu1 }
 0x3df   : > { %8044 = vrcp.f32 %v3502_v13  ;;  %v10940_v14 = vpop.xlane.xlu0 %3485  ;;  %v8027_v25 = vpop.eup %8026 }
 0x3e0   : > { %v5004_v5 = vsel %vm4762_vm15, %v5003_v29, %v4999_v27  ;;  %v5018_v23 = vrot.slane %v8027_v25, %v10606_v28 }
 0x3e1   : > { %v8029_v45 = vpop.eup %8028  ;;  %v5009_v32 = vsel %vm4769_vm0, %v5008_v54, %v5004_v5 }
 0x3e2   : > { %v8031_v63 = vpop.eup %8030  ;;  %v5013_v36 = vrot.slane %v8029_v45, %v10740_v24  ;;  %v3504_v35 = vpop.xlane.xlu1 %3503 }
 0x3e3   : > { %v8033_v52 = vpop.eup %8032  ;;  %8046 = vrcp.f32 %v3504_v35  ;;  %v10945_v58 = vpop.xlane.xlu0 %3549  ;;  %v5097_v49 = vrot.slane %v8031_v63, %v10606_v28 }
 0x3e4   : > { %v8035_v21 = vpop.eup %8034  ;;  %v5014_v7 = vsel %vm4776_vm1, %v5013_v36, %v5009_v32  ;;  %v5027_v2 = vrot.slane %v8033_v52, %v10612_v62 }
 0x3e5   : > { %v8037_v26 = vpop.eup %8036  ;;  %v5360_v22 = vmul.f32 %v5014_v7, %v3999_v43  ;;  %v5032_v31 = vrot.slane %v8035_v21, %v10623_v33 }
 0x3e6   : > { %v8039_v53 = vpop.eup %8038  ;;  %v5022_v57 = vrot.slane %v8037_v26, %v10609_v3  ;;  %v3506_v47 = vpop.xlane.xlu1 %3505 }
 0x3e7   : > { %v8041_v16 = vpop.eup %8040  ;;  %5368 = vst [vmem:[%s10767_s21 + $0xc] sm:$0xf] %v5360_v22  ;;  %8048 = vrcp.f32 %v3506_v47  ;;  %v10952_v56 = vpop.xlane.xlu0 %3487  ;;  %v5037_v41 = vrot.slane %v8039_v53, %v10634_v37 }
 0x3e8   : > { %v8043_v60 = vpop.eup %8042  ;;  %v5023_v30 = vsel %vm4678_vm3, %v5022_v57, %v5018_v23  ;;  %v5042_v17 = vrot.slane %v8041_v16, %v10642_v11 }
 0x3e9   : > { %v8045_v51 = vpop.eup %8044  ;;  %v5028_v18 = vsel %vm4685_vm4, %v5027_v2, %v5023_v30  ;;  %v5047_v43 = vrot.slane %v8043_v60, %v10656_v6 }
 0x3ea   : > { %v5033_v9 = vsel %vm4692_vm5, %v5032_v31, %v5028_v18  ;;  %v5101_v42 = vrot.slane %v8045_v51, %v10609_v3  ;;  %v3508_v27 = vpop.xlane.xlu1 %3507 }
 0x3eb   : > { %v5038_v29 = vsel %vm4699_vm6, %v5037_v41, %v5033_v9  ;;  %8050 = vrcp.f32 %v3508_v27  ;;  %v3552_v13 = vpop.xlane.xlu0 %3551 }
 0x3ec   : > { %v5102_v54 = vsel %vm4678_vm3, %v5101_v42, %v5097_v49  ;;  %v5043_v50 = vsel %vm4706_vm7, %v5042_v17, %v5038_v29 }
 0x3ed   : > { %v8047_v25 = vpop.eup %8046  ;;  %v10967_v5 = vsel %vm4713_vm8, %v5047_v43, %v5043_v50 }
 0x3ee   : > { %v5106_v45 = vrot.slane %v8047_v25, %v10612_v62  ;;  %v3510_v32 = vpop.xlane.xlu1 %3509 }
 0x3ef   : > { %8052 = vrcp.f32 %v3510_v32  ;;  %v10970_v63 = vpop.xlane.xlu0 %3489 }
 0x3f0   : > { %v5107_v36 = vsel %vm4685_vm4, %v5106_v45, %v5102_v54  ;;  %8054 = vrcp.f32 %v10848_v38 }
 0x3f1   : > { %v8049_v35 = vpop.eup %8048  ;;  %8056 = vrcp.f32 %v10860_v4 }
 0x3f2   : > { %v5111_v52 = vrot.slane %v8049_v35, %v10623_v33  ;;  %v3512_v21 = vpop.xlane.xlu1 %3511 }
 0x3f3   : > { %8058 = vrcp.f32 %v3512_v21  ;;  %v10976_v7 = vpop.xlane.xlu0 %3553 }
 0x3f4   : > { %8060 = vrcp.f32 %v10869_v1  ;;  %v5112_v26 = vsel %vm4692_vm5, %v5111_v52, %v5107_v36 }
 0x3f5   : > { %v8051_v22 = vpop.eup %8050  ;;  %8062 = vrcp.f32 %v10877_v39 }
 0x3f6   : > { %8064 = vrcp.f32 %v10884_v20  ;;  %v5116_v53 = vrot.slane %v8051_v22, %v10634_v37  ;;  %v3534_v38 = vpop.xlane.xlu1 %3533 }
 0x3f7   : > { %8066 = vrcp.f32 %v3534_v38  ;;  %v3492_v4 = vpop.xlane.xlu0 %3491 }
 0x3f8   : > { %8068 = vrcp.f32 %v10893_v15  ;;  %v5117_v23 = vsel %vm4699_vm6, %v5116_v53, %v5112_v26 }
 0x3f9   : > { %v8053_v57 = vpop.eup %8052  ;;  %8070 = vrcp.f32 %v10901_v34 }
 0x3fa   : > { %8072 = vrcp.f32 %v10915_v40  ;;  %v5121_v1 = vrot.slane %v8053_v57, %v10642_v11  ;;  %v3566_v47 = vpop.xlane.xlu1 %3565  ;;  %v8055_v39 = vpop.eup %8054 }
 0x3fb   : > { %8074 = vrcp.f32 %v3566_v47  ;;  %v10988_v20 = vpop.xlane.xlu0 %3555  ;;  %v8057_v16 = vpop.eup %8056  ;;  %v5176_v17 = vrot.slane %v8055_v39, %v10606_v28 }
 0x3fc   : > { %8076 = vrcp.f32 %v10931_v8  ;;  %v5122_v2 = vsel %vm4706_vm7, %v5121_v1, %v5117_v23  ;;  %v5255_v50 = vrot.slane %v8057_v16, %v10606_v28 }
 0x3fd   : > { %v8059_v15 = vpop.eup %8058  ;;  %8078 = vrcp.f32 %v10945_v58 }
 0x3fe   : > { %v8061_v60 = vpop.eup %8060  ;;  %8080 = vrcp.f32 %v3552_v13  ;;  %v5126_v34 = vrot.slane %v8059_v15, %v10656_v6  ;;  %v3570_v40 = vpop.xlane.xlu1 %3569 }
 0x3ff   : > { %v8063_v31 = vpop.eup %8062  ;;  %v10994_v30 = vpop.f32.mrb[68].mxu0  ;;  %8082 = vrcp.f32 %v10908_v19  ;;  %v5190_v13 = vrot.slane %v8061_v60, %v10623_v33 }
 0x400   : > { %v3494_v51 = vpop.xlane.xlu0 %3493  ;;  %v8065_v41 = vpop.eup %8064  ;;  %v10998_v18 = vsel %vm4713_vm8, %v5126_v34, %v5122_v2  ;;  %8084 = vrcp.f32 %v10922_v0  ;;  %v5185_v43 = vrot.slane %v8063_v31, %v10612_v62 }
 0x401   : > { %v6766_v8 = vpop.f32.mrb[69].mxu0  ;;  %v8067_v49 = vpop.eup %8066  ;;  %8086 = vrcp.f32 %v3570_v40  ;;  %v5200_v36 = vrot.slane %v8065_v41, %v10642_v11 }
 0x402   : > { %v8069_v58 = vpop.eup %8068  ;;  %v5180_v9 = vrot.slane %v8067_v49, %v10609_v3  ;;  %v3568_v42 = vpop.xlane.xlu1 %3567 }
 0x403   : > { %v8071_v27 = vpop.eup %8070  ;;  %8088 = vrcp.f32 %v3568_v42  ;;  %v5195_v25 = vrot.slane %v8069_v58, %v10634_v37 }
 0x404   : > { %v11004_v29 = vpop.xlane.xlu0 %3557  ;;  %v8073_v19 = vpop.eup %8072  ;;  %8090 = vrcp.f32 %v10940_v14  ;;  %v5181_v0 = vsel %vm4678_vm3, %v5180_v9, %v5176_v17  ;;  %v5205_v26 = vrot.slane %v8071_v27, %v10656_v6 }
 0x405   : > { %v8075_v54 = vpop.eup %8074  ;;  %8092 = vrcp.f32 %v10952_v56  ;;  %v5186_v45 = vsel %vm4685_vm4, %v5185_v43, %v5181_v0  ;;  %v5210_v53 = vrot.slane %v8073_v19, %v10666_v10 }
 0x406   : > { %v8077_v32 = vpop.eup %8076  ;;  %8094 = vrcp.f32 %v10970_v63  ;;  %v5191_v35 = vsel %vm4692_vm5, %v5190_v13, %v5186_v45  ;;  %v5259_v14 = vrot.slane %v8075_v54, %v10609_v3  ;;  %v3574_v52 = vpop.xlane.xlu1 %3573 }
 0x407   : > { %v8079_v21 = vpop.eup %8078  ;;  %v5196_v28 = vsel %vm4699_vm6, %v5195_v25, %v5191_v35  ;;  %8096 = vrcp.f32 %v3492_v4  ;;  %v5215_v23 = vrot.slane %v8077_v32, %v10672_v61 }
 0x408   : > { %v3496_v22 = vpop.xlane.xlu0 %3495  ;;  %v8081_v56 = vpop.eup %8080  ;;  %v5260_v38 = vsel %vm4678_vm3, %v5259_v14, %v5255_v50  ;;  %8098 = vrcp.f32 %v3494_v51  ;;  %v5201_v63 = vsel %vm4706_vm7, %v5200_v36, %v5196_v28  ;;  %v5220_v1 = vrot.slane %v8079_v21, %v10683_v44 }
 0x409   : > { %8100 = vrcp.f32 %v3574_v52  ;;  %v5206_v3 = vsel %vm4713_vm8, %v5205_v26, %v5201_v63  ;;  %v8083_v57 = vpop.eup %8082  ;;  %v5225_v16 = vrot.slane %v8081_v56, %v10696_v48 }
 0x40a   : > { %8102 = vrcp.f32 %v3496_v22  ;;  %v3572_v47 = vpop.xlane.xlu1 %3571  ;;  %v5211_v4 = vsel %vm4720_vm9, %v5210_v53, %v5206_v3  ;;  %v8085_v39 = vpop.eup %8084  ;;  %v5052_v58 = vrot.slane %v8083_v57, %v10666_v10 }
 0x40b   : > { %8104 = vrcp.f32 %v3572_v47  ;;  %v5216_v15 = vsel %vm4727_vm10, %v5215_v23, %v5211_v4  ;;  %v8087_v60 = vpop.eup %8086 }
 0x40c   : > { %v3560_v2 = vpop.xlane.xlu0 %3559  ;;  %v5221_v34 = vsel %vm4734_vm11, %v5220_v1, %v5216_v15  ;;  %v5269_v17 = vrot.slane %v8087_v60, %v10623_v33  ;;  %v5053_v19 = vsel %vm4720_vm9, %v5052_v58, %v10967_v5 }
 0x40d   : > { %v8089_v40 = vpop.eup %8088  ;;  %v11030_v31 = vsel %vm4741_vm12, %v5225_v16, %v5221_v34 }
 0x40e   : > { %v8091_v51 = vpop.eup %8090  ;;  %v5264_v41 = vrot.slane %v8089_v40, %v10612_v62  ;;  %v11033_v8 = vpop.xlane.xlu1 %3575  ;;  %v5057_v62 = vrot.slane %v8085_v39, %v10672_v61 }
 0x40f   : > { %v8093_v49 = vpop.eup %8092  ;;  %v5062_v36 = vrot.slane %v8091_v51, %v10683_v44 }
 0x410   : > { %v3498_v9 = vpop.xlane.xlu0 %3497  ;;  %v8095_v42 = vpop.eup %8094  ;;  %v5265_v27 = vsel %vm4685_vm4, %v5264_v41, %v5260_v38  ;;  %v5058_v33 = vsel %vm4727_vm10, %v5057_v62, %v5053_v19  ;;  %v5067_v45 = vrot.slane %v8093_v49, %v10696_v48 }
 0x411   : > { %8106 = vrcp.f32 %v3498_v9  ;;  %v8097_v43 = vpop.eup %8096  ;;  %v5270_v13 = vsel %vm4692_vm5, %v5269_v17, %v5265_v27  ;;  %v5072_v35 = vrot.slane %v8095_v42, %v10702_v12  ;;  %v5063_v21 = vsel %vm4734_vm11, %v5062_v36, %v5058_v33 }
 0x412   : > { %v8099_v0 = vpop.eup %8098  ;;  %v11042_v54 = vpop.xlane.xlu1 %3513  ;;  %v5077_v5 = vrot.slane %v8097_v43, %v10710_v59  ;;  %v5068_v22 = vsel %vm4741_vm12, %v5067_v45, %v5063_v21  ;;  %8108 = vrcp.f32 %v10976_v7 }
 0x413   : > { %v8101_v50 = vpop.eup %8100  ;;  %v5082_v26 = vrot.slane %v8099_v0, %v10720_v55  ;;  %v5073_v38 = vsel %vm4748_vm13, %v5072_v35, %v5068_v22  ;;  %8110 = vrcp.f32 %v10988_v20 }
 0x414   : > { %v8103_v25 = vpop.eup %8102  ;;  %v5279_v28 = vrot.slane %v8101_v50, %v10642_v11  ;;  %v5078_v23 = vsel %vm4755_vm14, %v5077_v5, %v5073_v38  ;;  %v3562_v51 = vpop.xlane.xlu0 %3561  ;;  %8112 = vrcp.f32 %v11004_v29 }
 0x415   : > { %v8105_v32 = vpop.eup %8104  ;;  %v5087_v56 = vrot.slane %v8103_v25, %v10733_v46  ;;  %v5083_v57 = vsel %vm4762_vm15, %v5082_v26, %v5078_v23  ;;  %8114 = vrcp.f32 %v3560_v2 }
 0x416   : > { %v5274_v14 = vrot.slane %v8105_v32, %v10634_v37  ;;  %v3578_v52 = vpop.xlane.xlu1 %3577  ;;  %8116 = vrcp.f32 %v3562_v51 }
 0x417   : > { %v5088_v1 = vsel %vm4769_vm0, %v5087_v56, %v5083_v57  ;;  %8118 = vrcp.f32 %v11033_v8 }
 0x418   : > { %v5275_v53 = vsel %vm4699_vm6, %v5274_v14, %v5270_v13  ;;  %8120 = vrcp.f32 %v11042_v54 }
 0x419   : > { %v11058_v63 = vsel %vm4706_vm7, %v5279_v28, %v5275_v53  ;;  %8122 = vrcp.f32 %v3578_v52 }
 0x41a   : > { %v3516_v3 = vpop.xlane.xlu1 %3515 }
 0x41b   : > { %v8107_v37 = vpop.eup %8106  ;;  %8124 = vrcp.f32 %v3516_v3 }
 0x41c   : > { %v5092_v11 = vrot.slane %v8107_v37, %v10740_v24  ;;  %v8109_v49 = vpop.eup %8108 }
 0x41d   : > { %v11066_v39 = vpop.f32.mrb[68].mxu1  ;;  %v8111_v58 = vpop.eup %8110  ;;  %v5230_v17 = vrot.slane %v8109_v49, %v10702_v12 }
 0x41e   : > { %v5093_v47 = vsel %vm4776_vm1, %v5092_v11, %v5088_v1  ;;  %v3580_v16 = vpop.xlane.xlu1 %3579  ;;  %v6801_v15 = vpop.f32.mrb[69].mxu1  ;;  %v5235_v20 = vrot.slane %v8111_v58, %v10710_v59 }
 0x41f   : > { %v5361_v4 = vmul.f32 %v5093_v47, %v10994_v30  ;;  %v8113_v9 = vpop.eup %8112  ;;  %v5231_v7 = vsel %vm4748_vm13, %v5230_v17, %v11030_v31  ;;  %8126 = vrcp.f32 %v3580_v16 }
 0x420   : > { %v8115_v27 = vpop.eup %8114  ;;  %v5240_v29 = vrot.slane %v8113_v9, %v10720_v55  ;;  %v5236_v19 = vsel %vm4755_vm14, %v5235_v20, %v5231_v7 }
 0x421   : > { %5369 = vst [vmem:[%s10767_s21 + $0x10] sm:$0xf] %v5361_v4  ;;  %v8117_v43 = vpop.eup %8116  ;;  %v5245_v13 = vrot.slane %v8115_v27, %v10733_v46 }
 0x422   : > { %v3518_v60 = vpop.xlane.xlu1 %3517  ;;  %v5250_v0 = vrot.slane %v8117_v43, %v10740_v24  ;;  %v5241_v62 = vsel %vm4762_vm15, %v5240_v29, %v5236_v19  ;;  %v8119_v14 = vpop.eup %8118 }
 0x423   : > { %v5246_v25 = vsel %vm4769_vm0, %v5245_v13, %v5241_v62  ;;  %8128 = vrcp.f32 %v3518_v60  ;;  %v8121_v21 = vpop.eup %8120  ;;  %v5284_v4 = vrot.slane %v8119_v14, %v10656_v6 }
 0x424   : > { %v5251_v31 = vsel %vm4776_vm1, %v5250_v0, %v5246_v25  ;;  %v8123_v26 = vpop.eup %8122  ;;  %v5131_v37 = vrot.slane %v8121_v21, %v10666_v10 }
 0x425   : > { %v8125_v28 = vpop.eup %8124 }
 0x426   : > { %v3582_v34 = vpop.xlane.xlu1 %3581  ;;  %v5136_v3 = vrot.slane %v8125_v28, %v10672_v61  ;;  %v5132_v60 = vsel %vm4720_vm9, %v5131_v37, %v10998_v18 }
 0x427   : > { %8130 = vrcp.f32 %v3582_v34  ;;  %v5289_v34 = vrot.slane %v8123_v26, %v10666_v10  ;;  %v5285_v10 = vsel %vm4713_vm8, %v5284_v4, %v11058_v63 }
 0x429   : > { %v8127_v54 = vpop.eup %8126  ;;  %v5290_v43 = vsel %vm4720_vm9, %v5289_v34, %v5285_v10 }
 0x42a   : > { %v3520_v40 = vpop.xlane.xlu1 %3519  ;;  %v5294_v49 = vrot.slane %v8127_v54, %v10672_v61 }
 0x42b   : > { %8132 = vrcp.f32 %v3520_v40 }
 0x42d   : > { %v8129_v52 = vpop.eup %8128 }
 0x42e   : > { %v3584_v41 = vpop.xlane.xlu1 %3583  ;;  %v5141_v11 = vrot.slane %v8129_v52, %v10683_v44 }
 0x42f   : > { %8134 = vrcp.f32 %v3584_v41  ;;  %v5137_v41 = vsel %vm4727_vm10, %v5136_v3, %v5132_v60 }
 0x430   : > { %v5142_v6 = vsel %vm4734_vm11, %v5141_v11, %v5137_v41 }
 0x431   : > { %v8131_v22 = vpop.eup %8130 }
 0x432   : > { %v3522_v30 = vpop.xlane.xlu1 %3521  ;;  %v5299_v17 = vrot.slane %v8131_v22, %v10683_v44 }
 0x433   : > { %8136 = vrcp.f32 %v3522_v30 }
 0x435   : > { %v8133_v53 = vpop.eup %8132 }
 0x436   : > { %v3586_v42 = vpop.xlane.xlu1 %3585  ;;  %v5146_v16 = vrot.slane %v8133_v53, %v10696_v48 }
 0x438   : > { %v5147_v18 = vsel %vm4741_vm12, %v5146_v16, %v5142_v6 }
 0x439   : > { %v8135_v38 = vpop.eup %8134 }
 0x43a   : > { %v3524_v2 = vpop.xlane.xlu1 %3523  ;;  %v5304_v27 = vrot.slane %v8135_v38, %v10696_v48 }
 0x43b   : > { %8138 = vrcp.f32 %v3524_v2  ;;  %v5295_v2 = vsel %vm4727_vm10, %v5294_v49, %v5290_v43 }
 0x43c   : > { %v5300_v62 = vsel %vm4734_vm11, %v5299_v17, %v5295_v2 }
 0x43d   : > { %v8137_v23 = vpop.eup %8136  ;;  %v5305_v25 = vsel %vm4741_vm12, %v5304_v27, %v5300_v62 }
 0x43e   : > { %v3588_v50 = vpop.xlane.xlu1 %3587  ;;  %v4305_v33 = vpop.f32.mrb[70].mxu0  ;;  %v5151_v40 = vrot.slane %v8137_v23, %v10702_v12 }
 0x43f   : > { %v5363_v45 = vmul.f32 %v5251_v31, %v4305_v33  ;;  %v6836_v32 = vpop.f32.mrb[71].mxu0 }
 0x440   : > { %v5152_v20 = vsel %vm4748_vm13, %v5151_v40, %v5147_v18 }
 0x441   : > { %5371 = vst [vmem:[%s10767_s21 + $0x18] sm:$0xf] %v5363_v45 }
 0x442   : > { %v3526_v36 = vpop.xlane.xlu1 %3525 }
 0x443   : > { %8140 = vrcp.f32 %v3526_v36 }
 0x445   : > { %v8139_v57 = vpop.eup %8138 }
 0x446   : > { %v3590_v35 = vpop.xlane.xlu1 %3589  ;;  %v5156_v30 = vrot.slane %v8139_v57, %v10710_v59 }
 0x448   : > { %v5157_v19 = vsel %vm4755_vm14, %v5156_v30, %v5152_v20 }
 0x44a   : > { %v3528_v5 = vpop.xlane.xlu1 %3527 }
 0x44b   : > { %8142 = vrcp.f32 %v3528_v5 }
 0x44c   : > { %8144 = vrcp.f32 %v3586_v42 }
 0x44d   : > { %8146 = vrcp.f32 %v3588_v50  ;;  %v8141_v47 = vpop.eup %8140 }
 0x44e   : > { %v3592_v8 = vpop.xlane.xlu1 %3591  ;;  %8148 = vrcp.f32 %v3590_v35  ;;  %v5161_v9 = vrot.slane %v8141_v47, %v10720_v55 }
 0x44f   : > { %8150 = vrcp.f32 %v3592_v8 }
 0x450   : > { %v5162_v48 = vsel %vm4762_vm15, %v5161_v9, %v5157_v19 }
 0x452   : > { %v3530_v56 = vpop.xlane.xlu1 %3529 }
 0x453   : > { %8152 = vrcp.f32 %v3530_v56 }
 0x455   : > { %v8143_v15 = vpop.eup %8142 }
 0x456   : > { %v3594_v1 = vpop.xlane.xlu1 %3593  ;;  %v8145_v51 = vpop.eup %8144  ;;  %v5166_v7 = vrot.slane %v8143_v15, %v10733_v46 }
 0x457   : > { %8154 = vrcp.f32 %v3594_v1  ;;  %v8147_v58 = vpop.eup %8146  ;;  %v5309_v29 = vrot.slane %v8145_v51, %v10702_v12 }
 0x458   : > { %v8149_v42 = vpop.eup %8148  ;;  %v5314_v63 = vrot.slane %v8147_v58, %v10710_v59  ;;  %v5167_v12 = vsel %vm4769_vm0, %v5166_v7, %v5162_v48 }
 0x459   : > { %v8151_v61 = vpop.eup %8150  ;;  %v5319_v50 = vrot.slane %v8149_v42, %v10720_v55  ;;  %v5310_v45 = vsel %vm4748_vm13, %v5309_v29, %v5305_v25 }
 0x45a   : > { %v5324_v33 = vrot.slane %v8151_v61, %v10733_v46  ;;  %v5315_v35 = vsel %vm4755_vm14, %v5314_v63, %v5310_v45 }
 0x45b   : > { %v5320_v55 = vsel %vm4762_vm15, %v5319_v50, %v5315_v35 }
 0x45c   : > { %v5325_v46 = vsel %vm4769_vm0, %v5324_v33, %v5320_v55 }
 0x45d   : > { %v8153_v44 = vpop.eup %8152  ;;  %v4407_v0 = vpop.f32.mrb[70].mxu1 }
 0x45e   : > { %v5171_v13 = vrot.slane %v8153_v44, %v10740_v24  ;;  %v6871_v31 = vpop.f32.mrb[71].mxu1 }
 0x460   : > { %v5172_v59 = vsel %vm4776_vm1, %v5171_v13, %v5167_v12 }
 0x461   : > { %v8155_v32 = vpop.eup %8154  ;;  %v5362_v36 = vmul.f32 %v5172_v59, %v11066_v39 }
 0x462   : > { %v5329_v5 = vrot.slane %v8155_v32, %v10740_v24 }
 0x463   : > { %5370 = vst [vmem:[%s10767_s21 + $0x14] sm:$0xf] %v5362_v36 }
 0x464   : > { %v5330_v14 = vsel %vm4776_vm1, %v5329_v5, %v5325_v46 }
 0x465   : > { %v5364_v39 = vmul.f32 %v5330_v14, %v4407_v0 }
 0x467   : > { %5372 = vst [vmem:[%s10767_s21 + $0x1c] sm:$0xf] %v5364_v39 }
 0x468   : > { %8169 = shalt.err (!%p8166_p3)
}
 0x469   : > { %s8170_s9 = scalar_lea.hbm %s11133_s30, 512  ;;  %s8174_s12 = scalar_lea.hbm %s11185_s4, 1024 }
 0x46a   : > { %p8171_p4 = scmp.ne.s32.totalorder %s11133_s30, %s8170_s9  ;;  %p8175_p9 = scmp.lt.u32.totalorder %s11133_s30, %s11185_s4 }
 0x46b   : > { %p8176_p10 = scmp.lt.u32.totalorder %s8174_s12, %s8170_s9  ;;  %p8178_p12 = scmp.lt.u32.totalorder %s8170_s9, %s11133_s30 }
 0x46c   : > { %p8172_p7 = pnand %p8171_p4, %p8292_p5 }
 0x46d   : > { %p8177_p11 = por %p8176_p10, %p8175_p9 }
 0x46e   : > { %p8173_p8 = pneg %p8172_p7 }
 0x46f   : > { %p8179_p13 = por %p8178_p12, %p8177_p11 }
 0x471   : > { %p8180_p0 = pnand %p8179_p13, %p8173_p8 }
 0x473   : > { %8183 = shalt.err (!%p8180_p0)
}
 0x474   : > { %s8224_s15 = smov 64   ;;  %s8225_s16 = smov 4  }
 0x475   : > { %7450 = dma.vmem_to_hbm [thread:$0]  (%p8292_p5), %s11135_s24, 512, %s11133_s30, %s11140_s0, %s8224_s15, %s8224_s15, %s8225_s16  }
 0x476 PF: > { %p7456_p1 = scmp.ge.s32.totalorder %s8218_s20, 2  ;;  %s5402_s21 = sand.u32 1, %s8206_s17  }
 0x477   : > { %s5403_s23 = scalar_lea.sflag [#allocation4], %s5402_s21 }
 0x478   : > { %p7453_p2 = pnand %p7456_p1, %p8296_p6 }
 0x47a   : > { %8201 = dma.done.wait (!%p7453_p2), %s5403_s23, 512  }
 0x47b   : > { %8203 = vsyncadd (!%p7453_p2), %s5403_s23, 4294966784  ;;  %p15_p3 = scmp.ge.s32.totalorder %s8279_s22, 4   ;;  %s11696_s17 = smov %s8210_s18 }
 0x47c   : > { %s11697_s18 = smov %s8214_s19  ;;  %s11698_s19 = smov %s8290_s25 }
 0x47d   : > { %s11699_s20 = smov %s8279_s22  ;;  %17 = sbr.rel (!%p15_p3) target bundleno = 5 (0x5), region = 77 }
 0x484   :  { %5408 = vsyncpa [#allocation4], 1 }
 0x485   :  { %5410 = vsyncpa [#allocation4 + $0x1], 1 }

</bundles_post_ra>
